<compile_context>
chip_gen: v7x
topology: tpu7x:2x2x1
jax: 0.10.0
libtpu: 0.0.40
codegen_flags: <defaults>
</compile_context>

<pallas_src>
import functools

import jax
import jax.numpy as jnp
from jax import lax
from jax.experimental import pallas as pl
from jax.experimental.pallas import tpu as pltpu

DIM = 32        # MAC hidden dim
N_KNOW = 16     # number of knowledge slots
BATCH = 2
MAX_STEP = 12   # module default


# --------------------------------------------------------------------------
# Parameter init (deterministic, mimics xavier_uniform_ + zero bias)
# --------------------------------------------------------------------------
def _xavier_uniform(key, out_dim, in_dim):
    bound = (6.0 / (in_dim + out_dim)) ** 0.5
    return jax.random.uniform(key, (out_dim, in_dim), jnp.float32, -bound, bound)


def init_params(key, dim):
    ks = jax.random.split(key, 4)
    return dict(
        wmem=_xavier_uniform(ks[0], dim, dim),        # ReadUnit.mem
        bmem=jnp.zeros((1, dim), jnp.float32),
        wcr=_xavier_uniform(ks[1], dim, 2 * dim),     # ReadUnit.concat
        bcr=jnp.zeros((1, dim), jnp.float32),
        wattn=_xavier_uniform(ks[2], 1, dim),         # ReadUnit.attn
        battn=jnp.zeros((1, 1), jnp.float32),
        wcw=_xavier_uniform(ks[3], dim, 2 * dim),     # WriteUnit.concat
        bcw=jnp.zeros((1, dim), jnp.float32),
    )


def pack_params(params):
    """One-time parameter packing. Call ONCE and reuse across invocations so the
    tiny stack/transpose/concat ops are not re-launched on every call."""
    dim = params["wmem"].shape[0]
    # Per-step fused weight: memory @ [wmem.T | wcw_b.T]  -> (dim, 2*dim)
    w_step = jnp.concatenate([params["wmem"].T, params["wcw"][:, dim:].T], axis=1)
    # Single lane-packed slab: [ w_step | wcr | wcw_a.T ] -> (dim, 5*dim)
    W = jnp.concatenate([w_step, params["wcr"], params["wcw"][:, :dim].T], axis=1)
    # Bias/attn vector rows actually used: bmem, wattn, bcw (bcr/battn cancel).
    bvec = jnp.concatenate([params["bmem"], params["wattn"], params["bcw"]], axis=0)
    return W, bvec


# --------------------------------------------------------------------------
# Pallas kernel: single invocation, whole problem resident in VMEM.
# --------------------------------------------------------------------------
def mac_kernel(q_ref, know_ref, w_ref, b_ref, out_ref, *, max_step, batch, n_know):
    B, N = batch, n_know
    dim = q_ref.shape[1]

    # ---- loop-invariant loads: question / knowledge / packed weights, once ----
    control = q_ref[...]                        # (B, dim)      ControlUnit == identity
    know = know_ref[...]                        # (B*N, dim)    knowledge, dim on lanes
    W = w_ref[...]                              # (dim, 5*dim)  packed weights
    bvec = b_ref[...]                           # (3, dim)

    w_step = W[:, :2 * dim]                     # [wmem.T | wcw_b.T]
    wcr = W[:, 2 * dim:4 * dim]                 # ReadUnit.concat weight (out, in-pair)
    wcw_a_t = W[:, 4 * dim:]                    # wcw[:, :dim].T
    bmem = bvec[0:1, :]
    wattn = bvec[1:2, :]
    bcw = bvec[2:3, :]

    def rep_rows(x):                            # (B, dim) -> (B*N, dim), row b -> rows [bN,(b+1)N)
        return jnp.concatenate(
            [jnp.broadcast_to(x[b:b + 1, :], (N, dim)) for b in range(B)], axis=0)

    # ---- hoisted precompute (control constant; attention Linear rank-1) ----
    wac = control * wattn                                                 # (B, dim)
    vvb = jnp.dot(wac, wcr, preferred_element_type=jnp.float32)           # (B, 2*dim)  fused v|vb
    v = vvb[:, :dim]
    vbias = bmem * v + vvb[:, dim:]                                       # folds ReadUnit.mem bias
    v_rep = rep_rows(v)                                                   # (B*N, dim)
    vbias_rep = rep_rows(vbias)                                           # (B*N, dim)
    # NOTE: bcr / battn are constant over N -> cancel in the softmax (dropped).

    # Hoisted write-projection of knowledge: read @ wcw_a.T == sum_n attn * know_a
    know_a = jnp.dot(know, wcw_a_t, preferred_element_type=jnp.float32)   # (B*N, dim)
    bcw_rep = jnp.broadcast_to(bcw, (B * N, dim))                         # (B*N, dim)

    def step(_, mem_rep):                       # mem_rep: (B*N, dim), rows replicated per batch
        # single memory-dependent MXU op per step: memory @ [wmem.T | wcw_b.T]
        mw = jnp.dot(mem_rep, w_step, preferred_element_type=jnp.float32)  # (B*N, 2*dim)
        u = mw[:, :dim] * v_rep + vbias_rep                                 # (B*N, dim)
        # all B*N attention logits: one VPU multiply + one XLU lane reduce
        logits = jnp.sum(know * u, axis=-1, keepdims=True)                  # (B*N, 1)
        # per-batch softmax over tile-aligned N-row segments (N % 8 == 0); exp once
        m_rep = jnp.concatenate(
            [jnp.broadcast_to(
                jnp.max(logits[b * N:(b + 1) * N, :], axis=0, keepdims=True), (N, 1))
             for b in range(B)], axis=0)                                    # (B*N, 1)
        e = jnp.exp(logits - m_rep)                                         # (B*N, 1)
        weighted = e * know_a                                               # (B*N, dim)
        reads = []
        for b in range(B):                      # cheap tile-aligned segment reduces
            sl = slice(b * N, (b + 1) * N)
            wsum = jnp.sum(weighted[sl, :], axis=0, keepdims=True)          # (1, dim)
            denom = jnp.sum(e[sl, :], axis=0, keepdims=True)                # (1, 1)
            # deferred normalisation: scale the reduced vector, not the attn weights
            reads.append(jnp.broadcast_to(wsum * pl.reciprocal(denom), (N, dim)))
        read_w = jnp.concatenate(reads, axis=0)                             # == read @ wcw_a.T (replicated)
        # WriteUnit: Linear(cat([read, memory], ch))
        return read_w + mw[:, dim:] + bcw_rep                               # (B*N, dim)

    mem0 = jnp.zeros((B * N, dim), jnp.float32)        # mem_0 parameter is zeros
    mem_rep = lax.fori_loop(0, max_step, step, mem0, unroll=True)
    out_ref[...] = jnp.concatenate(
        [mem_rep[b * N:b * N + 1, :] for b in range(B)], axis=0)            # (B, dim)


# --------------------------------------------------------------------------
# Wrapper (weights already packed once by pack_params)
# --------------------------------------------------------------------------
@functools.partial(jax.jit, static_argnames=("max_step",))
def mac_unit_pallas(question, knowledge, W, bvec, max_step=MAX_STEP):
    B, dim = question.shape
    N = knowledge.shape[2]
    # The only per-call input transform (data dependent, cannot be cached):
    # (B, dim, N) -> (B*N, dim) with dim on lanes.
    know_flat = jnp.transpose(knowledge, (0, 2, 1)).reshape(B * N, dim)

    kernel = functools.partial(mac_kernel, max_step=max_step, batch=B, n_know=N)
    vmem = lambda: pl.BlockSpec(memory_space=pltpu.MemorySpace.VMEM)
    return pl.pallas_call(
        kernel,
        out_shape=jax.ShapeDtypeStruct((B, dim), jnp.float32),
        in_specs=[vmem(), vmem(), vmem(), vmem()],
        out_specs=vmem(),
    )(question, know_flat, W, bvec)


# --------------------------------------------------------------------------
# Pure-JAX reference (mirrors the PyTorch forward in eval mode)
# --------------------------------------------------------------------------
def mac_unit_reference(question, knowledge, params, max_step=MAX_STEP):
    B, dim = question.shape
    memory = jnp.zeros((B, dim), jnp.float32)
    control = question
    know = knowledge                                                # (B, dim, N)
    for _ in range(max_step):
        mem = memory @ params["wmem"].T + params["bmem"]            # (B, dim)
        mk = mem[:, :, None] * know                                 # (B, dim, N)
        x = jnp.concatenate([mk, know], axis=1)                     # (B, 2*dim, N)
        xp = jnp.transpose(x, (0, 2, 1))                            # (B, N, 2*dim)
        c = xp @ params["wcr"].T + params["bcr"]                    # (B, N, dim)
        ap = c * control[:, None, :]
        logits = (ap @ params["wattn"].T + params["battn"])[..., 0]  # (B, N)
        attn = jax.nn.softmax(logits, axis=1)
        read = jnp.einsum("bn,bdn->bd", attn, know)                 # (B, dim)
        cat = jnp.concatenate([read, memory], axis=1)               # (B, 2*dim)
        memory = cat @ params["wcw"].T + params["bcw"]              # (B, dim)
    return memory


if __name__ == "__main__":
    key = jax.random.PRNGKey(0)
    kq, kk, kp = jax.random.split(key, 3)
    question = jax.random.normal(kq, (BATCH, DIM), jnp.float32)
    knowledge = jax.random.normal(kk, (BATCH, DIM, N_KNOW), jnp.float32)
    params = init_params(kp, DIM)

    # One-time packing of weights (reused across calls).
    W, bvec = pack_params(params)

    out = jax.block_until_ready(
        mac_unit_pallas(question, knowledge, W, bvec, max_step=MAX_STEP))
    ref = mac_unit_reference(question, knowledge, params)

    assert out.shape == (BATCH, DIM)
    max_err = float(jnp.max(jnp.abs(out - ref)))
    assert jnp.allclose(out, ref, atol=1e-4, rtol=1e-3), max_err
    print("KERNEL_OK")
</pallas_src>

<mosaic_0001>
module attributes {stable_mosaic.version = 11 : i64} {
  func.func @mac_kernel(%arg0: memref<2x32xf32, #tpu.memory_space<vmem>>, %arg1: memref<32x32xf32, #tpu.memory_space<vmem>>, %arg2: memref<32x160xf32, #tpu.memory_space<vmem>>, %arg3: memref<3x32xf32, #tpu.memory_space<vmem>>, %arg4: memref<2x32xf32, #tpu.memory_space<vmem>>) attributes {dimension_semantics = [], scalar_prefetch = 0 : i64, scratch_operands = 0 : i64, tpu.core_type = #tpu.core_type<tc>} {
    %c0 = arith.constant 0 : index
    %c0_0 = arith.constant 0 : index
    %0 = vector.load %arg0[%c0, %c0_0] : memref<2x32xf32, #tpu.memory_space<vmem>>, vector<2x32xf32>
    %c0_1 = arith.constant 0 : index
    %c0_2 = arith.constant 0 : index
    %1 = vector.load %arg1[%c0_1, %c0_2] : memref<32x32xf32, #tpu.memory_space<vmem>>, vector<32x32xf32>
    %c0_3 = arith.constant 0 : index
    %c0_4 = arith.constant 0 : index
    %2 = vector.load %arg2[%c0_3, %c0_4] : memref<32x160xf32, #tpu.memory_space<vmem>>, vector<32x160xf32>
    %c0_5 = arith.constant 0 : index
    %c0_6 = arith.constant 0 : index
    %3 = vector.load %arg3[%c0_5, %c0_6] : memref<3x32xf32, #tpu.memory_space<vmem>>, vector<3x32xf32>
    %4 = vector.extract_strided_slice %2 {offsets = [0, 0], sizes = [32, 64], strides = [1, 1]} : vector<32x160xf32> to vector<32x64xf32>
    %5 = vector.extract_strided_slice %2 {offsets = [0, 64], sizes = [32, 64], strides = [1, 1]} : vector<32x160xf32> to vector<32x64xf32>
    %6 = vector.extract_strided_slice %2 {offsets = [0, 128], sizes = [32, 32], strides = [1, 1]} : vector<32x160xf32> to vector<32x32xf32>
    %7 = vector.extract_strided_slice %3 {offsets = [0, 0], sizes = [1, 32], strides = [1, 1]} : vector<3x32xf32> to vector<1x32xf32>
    %8 = vector.extract_strided_slice %3 {offsets = [1, 0], sizes = [1, 32], strides = [1, 1]} : vector<3x32xf32> to vector<1x32xf32>
    %9 = vector.extract_strided_slice %3 {offsets = [2, 0], sizes = [1, 32], strides = [1, 1]} : vector<3x32xf32> to vector<1x32xf32>
    %10 = vector.broadcast %8 : vector<1x32xf32> to vector<2x32xf32>
    %11 = arith.mulf %0, %10 : vector<2x32xf32>
    %cst = arith.constant dense<0.000000e+00> : vector<2x64xf32>
    %12 = tpu.matmul %11, %5, %cst {dimension_numbers = #tpu.dot_dimension_numbers<[1], [0], [0], [1], [0, 0, 1, 1], [], []>} : vector<2x32xf32>, vector<32x64xf32>, vector<2x64xf32> -> vector<2x64xf32>
    %13 = vector.extract_strided_slice %12 {offsets = [0, 0], sizes = [2, 32], strides = [1, 1]} : vector<2x64xf32> to vector<2x32xf32>
    %14 = vector.broadcast %7 : vector<1x32xf32> to vector<2x32xf32>
    %15 = arith.mulf %14, %13 : vector<2x32xf32>
    %16 = vector.extract_strided_slice %12 {offsets = [0, 32], sizes = [2, 32], strides = [1, 1]} : vector<2x64xf32> to vector<2x32xf32>
    %17 = arith.addf %15, %16 : vector<2x32xf32>
    %18 = vector.extract_strided_slice %13 {offsets = [0, 0], sizes = [1, 32], strides = [1, 1]} : vector<2x32xf32> to vector<1x32xf32>
    %19 = vector.shape_cast %18 : vector<1x32xf32> to vector<1x32xf32>
    %20 = vector.broadcast %19 : vector<1x32xf32> to vector<16x32xf32>
    %21 = vector.extract_strided_slice %13 {offsets = [1, 0], sizes = [1, 32], strides = [1, 1]} : vector<2x32xf32> to vector<1x32xf32>
    %22 = vector.shape_cast %21 : vector<1x32xf32> to vector<1x32xf32>
    %23 = vector.broadcast %22 : vector<1x32xf32> to vector<16x32xf32>
    %24 = tpu.concatenate %20, %23 in 0 : vector<16x32xf32>, vector<16x32xf32> -> vector<32x32xf32>
    %25 = vector.extract_strided_slice %17 {offsets = [0, 0], sizes = [1, 32], strides = [1, 1]} : vector<2x32xf32> to vector<1x32xf32>
    %26 = vector.shape_cast %25 : vector<1x32xf32> to vector<1x32xf32>
    %27 = vector.broadcast %26 : vector<1x32xf32> to vector<16x32xf32>
    %28 = vector.extract_strided_slice %17 {offsets = [1, 0], sizes = [1, 32], strides = [1, 1]} : vector<2x32xf32> to vector<1x32xf32>
    %29 = vector.shape_cast %28 : vector<1x32xf32> to vector<1x32xf32>
    %30 = vector.broadcast %29 : vector<1x32xf32> to vector<16x32xf32>
    %31 = tpu.concatenate %27, %30 in 0 : vector<16x32xf32>, vector<16x32xf32> -> vector<32x32xf32>
    %cst_7 = arith.constant dense<0.000000e+00> : vector<32x32xf32>
    %32 = tpu.matmul %1, %6, %cst_7 {dimension_numbers = #tpu.dot_dimension_numbers<[1], [0], [0], [1], [0, 0, 1, 1], [], []>} : vector<32x32xf32>, vector<32x32xf32>, vector<32x32xf32> -> vector<32x32xf32>
    %33 = vector.shape_cast %9 : vector<1x32xf32> to vector<1x32xf32>
    %34 = vector.broadcast %33 : vector<1x32xf32> to vector<32x32xf32>
    %cst_8 = arith.constant 0.000000e+00 : f32
    %35 = vector.broadcast %cst_8 : f32 to vector<32x32xf32>
    %c0_i32 = arith.constant 0 : i32
    %cst_9 = arith.constant dense<0.000000e+00> : vector<32x64xf32>
    %36 = tpu.matmul %35, %4, %cst_9 {dimension_numbers = #tpu.dot_dimension_numbers<[1], [0], [0], [1], [0, 0, 1, 1], [], []>} : vector<32x32xf32>, vector<32x64xf32>, vector<32x64xf32> -> vector<32x64xf32>
    %37 = vector.extract_strided_slice %36 {offsets = [0, 0], sizes = [32, 32], strides = [1, 1]} : vector<32x64xf32> to vector<32x32xf32>
    %38 = arith.mulf %37, %24 : vector<32x32xf32>
    %39 = arith.addf %38, %31 : vector<32x32xf32>
    %40 = arith.mulf %1, %39 : vector<32x32xf32>
    %cst_10 = arith.constant dense<0.000000e+00> : vector<32xf32>
    %41 = vector.multi_reduction <add>, %40, %cst_10 [1] : vector<32x32xf32> to vector<32xf32>
    %42 = vector.shape_cast %41 : vector<32xf32> to vector<32x1xf32>
    %43 = vector.extract_strided_slice %42 {offsets = [0, 0], sizes = [16, 1], strides = [1, 1]} : vector<32x1xf32> to vector<16x1xf32>
    %cst_11 = arith.constant dense<0xFF800000> : vector<1xf32>
    %44 = vector.multi_reduction <maximumf>, %43, %cst_11 [0] : vector<16x1xf32> to vector<1xf32>
    %45 = vector.shape_cast %44 : vector<1xf32> to vector<1x1xf32>
    %46 = vector.shape_cast %45 : vector<1x1xf32> to vector<1x1xf32>
    %47 = vector.broadcast %46 : vector<1x1xf32> to vector<16x1xf32>
    %48 = vector.extract_strided_slice %42 {offsets = [16, 0], sizes = [16, 1], strides = [1, 1]} : vector<32x1xf32> to vector<16x1xf32>
    %cst_12 = arith.constant dense<0xFF800000> : vector<1xf32>
    %49 = vector.multi_reduction <maximumf>, %48, %cst_12 [0] : vector<16x1xf32> to vector<1xf32>
    %50 = vector.shape_cast %49 : vector<1xf32> to vector<1x1xf32>
    %51 = vector.shape_cast %50 : vector<1x1xf32> to vector<1x1xf32>
    %52 = vector.broadcast %51 : vector<1x1xf32> to vector<16x1xf32>
    %53 = tpu.concatenate %47, %52 in 0 : vector<16x1xf32>, vector<16x1xf32> -> vector<32x1xf32>
    %54 = arith.subf %42, %53 : vector<32x1xf32>
    %55 = math.exp %54 : vector<32x1xf32>
    %56 = vector.broadcast %55 : vector<32x1xf32> to vector<32x32xf32>
    %57 = arith.mulf %56, %32 : vector<32x32xf32>
    %58 = vector.extract_strided_slice %57 {offsets = [0, 0], sizes = [16, 32], strides = [1, 1]} : vector<32x32xf32> to vector<16x32xf32>
    %cst_13 = arith.constant dense<0.000000e+00> : vector<32xf32>
    %59 = vector.multi_reduction <add>, %58, %cst_13 [0] : vector<16x32xf32> to vector<32xf32>
    %60 = vector.shape_cast %59 : vector<32xf32> to vector<1x32xf32>
    %61 = vector.extract_strided_slice %55 {offsets = [0, 0], sizes = [16, 1], strides = [1, 1]} : vector<32x1xf32> to vector<16x1xf32>
    %cst_14 = arith.constant dense<0.000000e+00> : vector<1xf32>
    %62 = vector.multi_reduction <add>, %61, %cst_14 [0] : vector<16x1xf32> to vector<1xf32>
    %63 = vector.shape_cast %62 : vector<1xf32> to vector<1x1xf32>
    %64 = tpu.reciprocal %63 : vector<1x1xf32> -> vector<1x1xf32>
    %65 = vector.broadcast %64 : vector<1x1xf32> to vector<1x32xf32>
    %66 = arith.mulf %60, %65 : vector<1x32xf32>
    %67 = vector.shape_cast %66 : vector<1x32xf32> to vector<1x32xf32>
    %68 = vector.broadcast %67 : vector<1x32xf32> to vector<16x32xf32>
    %69 = vector.extract_strided_slice %57 {offsets = [16, 0], sizes = [16, 32], strides = [1, 1]} : vector<32x32xf32> to vector<16x32xf32>
    %cst_15 = arith.constant dense<0.000000e+00> : vector<32xf32>
    %70 = vector.multi_reduction <add>, %69, %cst_15 [0] : vector<16x32xf32> to vector<32xf32>
    %71 = vector.shape_cast %70 : vector<32xf32> to vector<1x32xf32>
    %72 = vector.extract_strided_slice %55 {offsets = [16, 0], sizes = [16, 1], strides = [1, 1]} : vector<32x1xf32> to vector<16x1xf32>
    %cst_16 = arith.constant dense<0.000000e+00> : vector<1xf32>
    %73 = vector.multi_reduction <add>, %72, %cst_16 [0] : vector<16x1xf32> to vector<1xf32>
    %74 = vector.shape_cast %73 : vector<1xf32> to vector<1x1xf32>
    %75 = tpu.reciprocal %74 : vector<1x1xf32> -> vector<1x1xf32>
    %76 = vector.broadcast %75 : vector<1x1xf32> to vector<1x32xf32>
    %77 = arith.mulf %71, %76 : vector<1x32xf32>
    %78 = vector.shape_cast %77 : vector<1x32xf32> to vector<1x32xf32>
    %79 = vector.broadcast %78 : vector<1x32xf32> to vector<16x32xf32>
    %80 = tpu.concatenate %68, %79 in 0 : vector<16x32xf32>, vector<16x32xf32> -> vector<32x32xf32>
    %81 = vector.extract_strided_slice %36 {offsets = [0, 32], sizes = [32, 32], strides = [1, 1]} : vector<32x64xf32> to vector<32x32xf32>
    %82 = arith.addf %80, %81 : vector<32x32xf32>
    %83 = arith.addf %82, %34 : vector<32x32xf32>
    %c1_i32 = arith.constant 1 : i32
    %cst_17 = arith.constant dense<0.000000e+00> : vector<32x64xf32>
    %84 = tpu.matmul %83, %4, %cst_17 {dimension_numbers = #tpu.dot_dimension_numbers<[1], [0], [0], [1], [0, 0, 1, 1], [], []>} : vector<32x32xf32>, vector<32x64xf32>, vector<32x64xf32> -> vector<32x64xf32>
    %85 = vector.extract_strided_slice %84 {offsets = [0, 0], sizes = [32, 32], strides = [1, 1]} : vector<32x64xf32> to vector<32x32xf32>
    %86 = arith.mulf %85, %24 : vector<32x32xf32>
    %87 = arith.addf %86, %31 : vector<32x32xf32>
    %88 = arith.mulf %1, %87 : vector<32x32xf32>
    %cst_18 = arith.constant dense<0.000000e+00> : vector<32xf32>
    %89 = vector.multi_reduction <add>, %88, %cst_18 [1] : vector<32x32xf32> to vector<32xf32>
    %90 = vector.shape_cast %89 : vector<32xf32> to vector<32x1xf32>
    %91 = vector.extract_strided_slice %90 {offsets = [0, 0], sizes = [16, 1], strides = [1, 1]} : vector<32x1xf32> to vector<16x1xf32>
    %cst_19 = arith.constant dense<0xFF800000> : vector<1xf32>
    %92 = vector.multi_reduction <maximumf>, %91, %cst_19 [0] : vector<16x1xf32> to vector<1xf32>
    %93 = vector.shape_cast %92 : vector<1xf32> to vector<1x1xf32>
    %94 = vector.shape_cast %93 : vector<1x1xf32> to vector<1x1xf32>
    %95 = vector.broadcast %94 : vector<1x1xf32> to vector<16x1xf32>
    %96 = vector.extract_strided_slice %90 {offsets = [16, 0], sizes = [16, 1], strides = [1, 1]} : vector<32x1xf32> to vector<16x1xf32>
    %cst_20 = arith.constant dense<0xFF800000> : vector<1xf32>
    %97 = vector.multi_reduction <maximumf>, %96, %cst_20 [0] : vector<16x1xf32> to vector<1xf32>
    %98 = vector.shape_cast %97 : vector<1xf32> to vector<1x1xf32>
    %99 = vector.shape_cast %98 : vector<1x1xf32> to vector<1x1xf32>
    %100 = vector.broadcast %99 : vector<1x1xf32> to vector<16x1xf32>
    %101 = tpu.concatenate %95, %100 in 0 : vector<16x1xf32>, vector<16x1xf32> -> vector<32x1xf32>
    %102 = arith.subf %90, %101 : vector<32x1xf32>
    %103 = math.exp %102 : vector<32x1xf32>
    %104 = vector.broadcast %103 : vector<32x1xf32> to vector<32x32xf32>
    %105 = arith.mulf %104, %32 : vector<32x32xf32>
    %106 = vector.extract_strided_slice %105 {offsets = [0, 0], sizes = [16, 32], strides = [1, 1]} : vector<32x32xf32> to vector<16x32xf32>
    %cst_21 = arith.constant dense<0.000000e+00> : vector<32xf32>
    %107 = vector.multi_reduction <add>, %106, %cst_21 [0] : vector<16x32xf32> to vector<32xf32>
    %108 = vector.shape_cast %107 : vector<32xf32> to vector<1x32xf32>
    %109 = vector.extract_strided_slice %103 {offsets = [0, 0], sizes = [16, 1], strides = [1, 1]} : vector<32x1xf32> to vector<16x1xf32>
    %cst_22 = arith.constant dense<0.000000e+00> : vector<1xf32>
    %110 = vector.multi_reduction <add>, %109, %cst_22 [0] : vector<16x1xf32> to vector<1xf32>
    %111 = vector.shape_cast %110 : vector<1xf32> to vector<1x1xf32>
    %112 = tpu.reciprocal %111 : vector<1x1xf32> -> vector<1x1xf32>
    %113 = vector.broadcast %112 : vector<1x1xf32> to vector<1x32xf32>
    %114 = arith.mulf %108, %113 : vector<1x32xf32>
    %115 = vector.shape_cast %114 : vector<1x32xf32> to vector<1x32xf32>
    %116 = vector.broadcast %115 : vector<1x32xf32> to vector<16x32xf32>
    %117 = vector.extract_strided_slice %105 {offsets = [16, 0], sizes = [16, 32], strides = [1, 1]} : vector<32x32xf32> to vector<16x32xf32>
    %cst_23 = arith.constant dense<0.000000e+00> : vector<32xf32>
    %118 = vector.multi_reduction <add>, %117, %cst_23 [0] : vector<16x32xf32> to vector<32xf32>
    %119 = vector.shape_cast %118 : vector<32xf32> to vector<1x32xf32>
    %120 = vector.extract_strided_slice %103 {offsets = [16, 0], sizes = [16, 1], strides = [1, 1]} : vector<32x1xf32> to vector<16x1xf32>
    %cst_24 = arith.constant dense<0.000000e+00> : vector<1xf32>
    %121 = vector.multi_reduction <add>, %120, %cst_24 [0] : vector<16x1xf32> to vector<1xf32>
    %122 = vector.shape_cast %121 : vector<1xf32> to vector<1x1xf32>
    %123 = tpu.reciprocal %122 : vector<1x1xf32> -> vector<1x1xf32>
    %124 = vector.broadcast %123 : vector<1x1xf32> to vector<1x32xf32>
    %125 = arith.mulf %119, %124 : vector<1x32xf32>
    %126 = vector.shape_cast %125 : vector<1x32xf32> to vector<1x32xf32>
    %127 = vector.broadcast %126 : vector<1x32xf32> to vector<16x32xf32>
    %128 = tpu.concatenate %116, %127 in 0 : vector<16x32xf32>, vector<16x32xf32> -> vector<32x32xf32>
    %129 = vector.extract_strided_slice %84 {offsets = [0, 32], sizes = [32, 32], strides = [1, 1]} : vector<32x64xf32> to vector<32x32xf32>
    %130 = arith.addf %128, %129 : vector<32x32xf32>
    %131 = arith.addf %130, %34 : vector<32x32xf32>
    %c2_i32 = arith.constant 2 : i32
    %cst_25 = arith.constant dense<0.000000e+00> : vector<32x64xf32>
    %132 = tpu.matmul %131, %4, %cst_25 {dimension_numbers = #tpu.dot_dimension_numbers<[1], [0], [0], [1], [0, 0, 1, 1], [], []>} : vector<32x32xf32>, vector<32x64xf32>, vector<32x64xf32> -> vector<32x64xf32>
    %133 = vector.extract_strided_slice %132 {offsets = [0, 0], sizes = [32, 32], strides = [1, 1]} : vector<32x64xf32> to vector<32x32xf32>
    %134 = arith.mulf %133, %24 : vector<32x32xf32>
    %135 = arith.addf %134, %31 : vector<32x32xf32>
    %136 = arith.mulf %1, %135 : vector<32x32xf32>
    %cst_26 = arith.constant dense<0.000000e+00> : vector<32xf32>
    %137 = vector.multi_reduction <add>, %136, %cst_26 [1] : vector<32x32xf32> to vector<32xf32>
    %138 = vector.shape_cast %137 : vector<32xf32> to vector<32x1xf32>
    %139 = vector.extract_strided_slice %138 {offsets = [0, 0], sizes = [16, 1], strides = [1, 1]} : vector<32x1xf32> to vector<16x1xf32>
    %cst_27 = arith.constant dense<0xFF800000> : vector<1xf32>
    %140 = vector.multi_reduction <maximumf>, %139, %cst_27 [0] : vector<16x1xf32> to vector<1xf32>
    %141 = vector.shape_cast %140 : vector<1xf32> to vector<1x1xf32>
    %142 = vector.shape_cast %141 : vector<1x1xf32> to vector<1x1xf32>
    %143 = vector.broadcast %142 : vector<1x1xf32> to vector<16x1xf32>
    %144 = vector.extract_strided_slice %138 {offsets = [16, 0], sizes = [16, 1], strides = [1, 1]} : vector<32x1xf32> to vector<16x1xf32>
    %cst_28 = arith.constant dense<0xFF800000> : vector<1xf32>
    %145 = vector.multi_reduction <maximumf>, %144, %cst_28 [0] : vector<16x1xf32> to vector<1xf32>
    %146 = vector.shape_cast %145 : vector<1xf32> to vector<1x1xf32>
    %147 = vector.shape_cast %146 : vector<1x1xf32> to vector<1x1xf32>
    %148 = vector.broadcast %147 : vector<1x1xf32> to vector<16x1xf32>
    %149 = tpu.concatenate %143, %148 in 0 : vector<16x1xf32>, vector<16x1xf32> -> vector<32x1xf32>
    %150 = arith.subf %138, %149 : vector<32x1xf32>
    %151 = math.exp %150 : vector<32x1xf32>
    %152 = vector.broadcast %151 : vector<32x1xf32> to vector<32x32xf32>
    %153 = arith.mulf %152, %32 : vector<32x32xf32>
    %154 = vector.extract_strided_slice %153 {offsets = [0, 0], sizes = [16, 32], strides = [1, 1]} : vector<32x32xf32> to vector<16x32xf32>
    %cst_29 = arith.constant dense<0.000000e+00> : vector<32xf32>
    %155 = vector.multi_reduction <add>, %154, %cst_29 [0] : vector<16x32xf32> to vector<32xf32>
    %156 = vector.shape_cast %155 : vector<32xf32> to vector<1x32xf32>
    %157 = vector.extract_strided_slice %151 {offsets = [0, 0], sizes = [16, 1], strides = [1, 1]} : vector<32x1xf32> to vector<16x1xf32>
    %cst_30 = arith.constant dense<0.000000e+00> : vector<1xf32>
    %158 = vector.multi_reduction <add>, %157, %cst_30 [0] : vector<16x1xf32> to vector<1xf32>
    %159 = vector.shape_cast %158 : vector<1xf32> to vector<1x1xf32>
    %160 = tpu.reciprocal %159 : vector<1x1xf32> -> vector<1x1xf32>
    %161 = vector.broadcast %160 : vector<1x1xf32> to vector<1x32xf32>
    %162 = arith.mulf %156, %161 : vector<1x32xf32>
    %163 = vector.shape_cast %162 : vector<1x32xf32> to vector<1x32xf32>
    %164 = vector.broadcast %163 : vector<1x32xf32> to vector<16x32xf32>
    %165 = vector.extract_strided_slice %153 {offsets = [16, 0], sizes = [16, 32], strides = [1, 1]} : vector<32x32xf32> to vector<16x32xf32>
    %cst_31 = arith.constant dense<0.000000e+00> : vector<32xf32>
    %166 = vector.multi_reduction <add>, %165, %cst_31 [0] : vector<16x32xf32> to vector<32xf32>
    %167 = vector.shape_cast %166 : vector<32xf32> to vector<1x32xf32>
    %168 = vector.extract_strided_slice %151 {offsets = [16, 0], sizes = [16, 1], strides = [1, 1]} : vector<32x1xf32> to vector<16x1xf32>
    %cst_32 = arith.constant dense<0.000000e+00> : vector<1xf32>
    %169 = vector.multi_reduction <add>, %168, %cst_32 [0] : vector<16x1xf32> to vector<1xf32>
    %170 = vector.shape_cast %169 : vector<1xf32> to vector<1x1xf32>
    %171 = tpu.reciprocal %170 : vector<1x1xf32> -> vector<1x1xf32>
    %172 = vector.broadcast %171 : vector<1x1xf32> to vector<1x32xf32>
    %173 = arith.mulf %167, %172 : vector<1x32xf32>
    %174 = vector.shape_cast %173 : vector<1x32xf32> to vector<1x32xf32>
    %175 = vector.broadcast %174 : vector<1x32xf32> to vector<16x32xf32>
    %176 = tpu.concatenate %164, %175 in 0 : vector<16x32xf32>, vector<16x32xf32> -> vector<32x32xf32>
    %177 = vector.extract_strided_slice %132 {offsets = [0, 32], sizes = [32, 32], strides = [1, 1]} : vector<32x64xf32> to vector<32x32xf32>
    %178 = arith.addf %176, %177 : vector<32x32xf32>
    %179 = arith.addf %178, %34 : vector<32x32xf32>
    %c3_i32 = arith.constant 3 : i32
    %cst_33 = arith.constant dense<0.000000e+00> : vector<32x64xf32>
    %180 = tpu.matmul %179, %4, %cst_33 {dimension_numbers = #tpu.dot_dimension_numbers<[1], [0], [0], [1], [0, 0, 1, 1], [], []>} : vector<32x32xf32>, vector<32x64xf32>, vector<32x64xf32> -> vector<32x64xf32>
    %181 = vector.extract_strided_slice %180 {offsets = [0, 0], sizes = [32, 32], strides = [1, 1]} : vector<32x64xf32> to vector<32x32xf32>
    %182 = arith.mulf %181, %24 : vector<32x32xf32>
    %183 = arith.addf %182, %31 : vector<32x32xf32>
    %184 = arith.mulf %1, %183 : vector<32x32xf32>
    %cst_34 = arith.constant dense<0.000000e+00> : vector<32xf32>
    %185 = vector.multi_reduction <add>, %184, %cst_34 [1] : vector<32x32xf32> to vector<32xf32>
    %186 = vector.shape_cast %185 : vector<32xf32> to vector<32x1xf32>
    %187 = vector.extract_strided_slice %186 {offsets = [0, 0], sizes = [16, 1], strides = [1, 1]} : vector<32x1xf32> to vector<16x1xf32>
    %cst_35 = arith.constant dense<0xFF800000> : vector<1xf32>
    %188 = vector.multi_reduction <maximumf>, %187, %cst_35 [0] : vector<16x1xf32> to vector<1xf32>
    %189 = vector.shape_cast %188 : vector<1xf32> to vector<1x1xf32>
    %190 = vector.shape_cast %189 : vector<1x1xf32> to vector<1x1xf32>
    %191 = vector.broadcast %190 : vector<1x1xf32> to vector<16x1xf32>
    %192 = vector.extract_strided_slice %186 {offsets = [16, 0], sizes = [16, 1], strides = [1, 1]} : vector<32x1xf32> to vector<16x1xf32>
    %cst_36 = arith.constant dense<0xFF800000> : vector<1xf32>
    %193 = vector.multi_reduction <maximumf>, %192, %cst_36 [0] : vector<16x1xf32> to vector<1xf32>
    %194 = vector.shape_cast %193 : vector<1xf32> to vector<1x1xf32>
    %195 = vector.shape_cast %194 : vector<1x1xf32> to vector<1x1xf32>
    %196 = vector.broadcast %195 : vector<1x1xf32> to vector<16x1xf32>
    %197 = tpu.concatenate %191, %196 in 0 : vector<16x1xf32>, vector<16x1xf32> -> vector<32x1xf32>
    %198 = arith.subf %186, %197 : vector<32x1xf32>
    %199 = math.exp %198 : vector<32x1xf32>
    %200 = vector.broadcast %199 : vector<32x1xf32> to vector<32x32xf32>
    %201 = arith.mulf %200, %32 : vector<32x32xf32>
    %202 = vector.extract_strided_slice %201 {offsets = [0, 0], sizes = [16, 32], strides = [1, 1]} : vector<32x32xf32> to vector<16x32xf32>
    %cst_37 = arith.constant dense<0.000000e+00> : vector<32xf32>
    %203 = vector.multi_reduction <add>, %202, %cst_37 [0] : vector<16x32xf32> to vector<32xf32>
    %204 = vector.shape_cast %203 : vector<32xf32> to vector<1x32xf32>
    %205 = vector.extract_strided_slice %199 {offsets = [0, 0], sizes = [16, 1], strides = [1, 1]} : vector<32x1xf32> to vector<16x1xf32>
    %cst_38 = arith.constant dense<0.000000e+00> : vector<1xf32>
    %206 = vector.multi_reduction <add>, %205, %cst_38 [0] : vector<16x1xf32> to vector<1xf32>
    %207 = vector.shape_cast %206 : vector<1xf32> to vector<1x1xf32>
    %208 = tpu.reciprocal %207 : vector<1x1xf32> -> vector<1x1xf32>
    %209 = vector.broadcast %208 : vector<1x1xf32> to vector<1x32xf32>
    %210 = arith.mulf %204, %209 : vector<1x32xf32>
    %211 = vector.shape_cast %210 : vector<1x32xf32> to vector<1x32xf32>
    %212 = vector.broadcast %211 : vector<1x32xf32> to vector<16x32xf32>
    %213 = vector.extract_strided_slice %201 {offsets = [16, 0], sizes = [16, 32], strides = [1, 1]} : vector<32x32xf32> to vector<16x32xf32>
    %cst_39 = arith.constant dense<0.000000e+00> : vector<32xf32>
    %214 = vector.multi_reduction <add>, %213, %cst_39 [0] : vector<16x32xf32> to vector<32xf32>
    %215 = vector.shape_cast %214 : vector<32xf32> to vector<1x32xf32>
    %216 = vector.extract_strided_slice %199 {offsets = [16, 0], sizes = [16, 1], strides = [1, 1]} : vector<32x1xf32> to vector<16x1xf32>
    %cst_40 = arith.constant dense<0.000000e+00> : vector<1xf32>
    %217 = vector.multi_reduction <add>, %216, %cst_40 [0] : vector<16x1xf32> to vector<1xf32>
    %218 = vector.shape_cast %217 : vector<1xf32> to vector<1x1xf32>
    %219 = tpu.reciprocal %218 : vector<1x1xf32> -> vector<1x1xf32>
    %220 = vector.broadcast %219 : vector<1x1xf32> to vector<1x32xf32>
    %221 = arith.mulf %215, %220 : vector<1x32xf32>
    %222 = vector.shape_cast %221 : vector<1x32xf32> to vector<1x32xf32>
    %223 = vector.broadcast %222 : vector<1x32xf32> to vector<16x32xf32>
    %224 = tpu.concatenate %212, %223 in 0 : vector<16x32xf32>, vector<16x32xf32> -> vector<32x32xf32>
    %225 = vector.extract_strided_slice %180 {offsets = [0, 32], sizes = [32, 32], strides = [1, 1]} : vector<32x64xf32> to vector<32x32xf32>
    %226 = arith.addf %224, %225 : vector<32x32xf32>
    %227 = arith.addf %226, %34 : vector<32x32xf32>
    %c4_i32 = arith.constant 4 : i32
    %cst_41 = arith.constant dense<0.000000e+00> : vector<32x64xf32>
    %228 = tpu.matmul %227, %4, %cst_41 {dimension_numbers = #tpu.dot_dimension_numbers<[1], [0], [0], [1], [0, 0, 1, 1], [], []>} : vector<32x32xf32>, vector<32x64xf32>, vector<32x64xf32> -> vector<32x64xf32>
    %229 = vector.extract_strided_slice %228 {offsets = [0, 0], sizes = [32, 32], strides = [1, 1]} : vector<32x64xf32> to vector<32x32xf32>
    %230 = arith.mulf %229, %24 : vector<32x32xf32>
    %231 = arith.addf %230, %31 : vector<32x32xf32>
    %232 = arith.mulf %1, %231 : vector<32x32xf32>
    %cst_42 = arith.constant dense<0.000000e+00> : vector<32xf32>
    %233 = vector.multi_reduction <add>, %232, %cst_42 [1] : vector<32x32xf32> to vector<32xf32>
    %234 = vector.shape_cast %233 : vector<32xf32> to vector<32x1xf32>
    %235 = vector.extract_strided_slice %234 {offsets = [0, 0], sizes = [16, 1], strides = [1, 1]} : vector<32x1xf32> to vector<16x1xf32>
    %cst_43 = arith.constant dense<0xFF800000> : vector<1xf32>
    %236 = vector.multi_reduction <maximumf>, %235, %cst_43 [0] : vector<16x1xf32> to vector<1xf32>
    %237 = vector.shape_cast %236 : vector<1xf32> to vector<1x1xf32>
    %238 = vector.shape_cast %237 : vector<1x1xf32> to vector<1x1xf32>
    %239 = vector.broadcast %238 : vector<1x1xf32> to vector<16x1xf32>
    %240 = vector.extract_strided_slice %234 {offsets = [16, 0], sizes = [16, 1], strides = [1, 1]} : vector<32x1xf32> to vector<16x1xf32>
    %cst_44 = arith.constant dense<0xFF800000> : vector<1xf32>
    %241 = vector.multi_reduction <maximumf>, %240, %cst_44 [0] : vector<16x1xf32> to vector<1xf32>
    %242 = vector.shape_cast %241 : vector<1xf32> to vector<1x1xf32>
    %243 = vector.shape_cast %242 : vector<1x1xf32> to vector<1x1xf32>
    %244 = vector.broadcast %243 : vector<1x1xf32> to vector<16x1xf32>
    %245 = tpu.concatenate %239, %244 in 0 : vector<16x1xf32>, vector<16x1xf32> -> vector<32x1xf32>
    %246 = arith.subf %234, %245 : vector<32x1xf32>
    %247 = math.exp %246 : vector<32x1xf32>
    %248 = vector.broadcast %247 : vector<32x1xf32> to vector<32x32xf32>
    %249 = arith.mulf %248, %32 : vector<32x32xf32>
    %250 = vector.extract_strided_slice %249 {offsets = [0, 0], sizes = [16, 32], strides = [1, 1]} : vector<32x32xf32> to vector<16x32xf32>
    %cst_45 = arith.constant dense<0.000000e+00> : vector<32xf32>
    %251 = vector.multi_reduction <add>, %250, %cst_45 [0] : vector<16x32xf32> to vector<32xf32>
    %252 = vector.shape_cast %251 : vector<32xf32> to vector<1x32xf32>
    %253 = vector.extract_strided_slice %247 {offsets = [0, 0], sizes = [16, 1], strides = [1, 1]} : vector<32x1xf32> to vector<16x1xf32>
    %cst_46 = arith.constant dense<0.000000e+00> : vector<1xf32>
    %254 = vector.multi_reduction <add>, %253, %cst_46 [0] : vector<16x1xf32> to vector<1xf32>
    %255 = vector.shape_cast %254 : vector<1xf32> to vector<1x1xf32>
    %256 = tpu.reciprocal %255 : vector<1x1xf32> -> vector<1x1xf32>
    %257 = vector.broadcast %256 : vector<1x1xf32> to vector<1x32xf32>
    %258 = arith.mulf %252, %257 : vector<1x32xf32>
    %259 = vector.shape_cast %258 : vector<1x32xf32> to vector<1x32xf32>
    %260 = vector.broadcast %259 : vector<1x32xf32> to vector<16x32xf32>
    %261 = vector.extract_strided_slice %249 {offsets = [16, 0], sizes = [16, 32], strides = [1, 1]} : vector<32x32xf32> to vector<16x32xf32>
    %cst_47 = arith.constant dense<0.000000e+00> : vector<32xf32>
    %262 = vector.multi_reduction <add>, %261, %cst_47 [0] : vector<16x32xf32> to vector<32xf32>
    %263 = vector.shape_cast %262 : vector<32xf32> to vector<1x32xf32>
    %264 = vector.extract_strided_slice %247 {offsets = [16, 0], sizes = [16, 1], strides = [1, 1]} : vector<32x1xf32> to vector<16x1xf32>
    %cst_48 = arith.constant dense<0.000000e+00> : vector<1xf32>
    %265 = vector.multi_reduction <add>, %264, %cst_48 [0] : vector<16x1xf32> to vector<1xf32>
    %266 = vector.shape_cast %265 : vector<1xf32> to vector<1x1xf32>
    %267 = tpu.reciprocal %266 : vector<1x1xf32> -> vector<1x1xf32>
    %268 = vector.broadcast %267 : vector<1x1xf32> to vector<1x32xf32>
    %269 = arith.mulf %263, %268 : vector<1x32xf32>
    %270 = vector.shape_cast %269 : vector<1x32xf32> to vector<1x32xf32>
    %271 = vector.broadcast %270 : vector<1x32xf32> to vector<16x32xf32>
    %272 = tpu.concatenate %260, %271 in 0 : vector<16x32xf32>, vector<16x32xf32> -> vector<32x32xf32>
    %273 = vector.extract_strided_slice %228 {offsets = [0, 32], sizes = [32, 32], strides = [1, 1]} : vector<32x64xf32> to vector<32x32xf32>
    %274 = arith.addf %272, %273 : vector<32x32xf32>
    %275 = arith.addf %274, %34 : vector<32x32xf32>
    %c5_i32 = arith.constant 5 : i32
    %cst_49 = arith.constant dense<0.000000e+00> : vector<32x64xf32>
    %276 = tpu.matmul %275, %4, %cst_49 {dimension_numbers = #tpu.dot_dimension_numbers<[1], [0], [0], [1], [0, 0, 1, 1], [], []>} : vector<32x32xf32>, vector<32x64xf32>, vector<32x64xf32> -> vector<32x64xf32>
    %277 = vector.extract_strided_slice %276 {offsets = [0, 0], sizes = [32, 32], strides = [1, 1]} : vector<32x64xf32> to vector<32x32xf32>
    %278 = arith.mulf %277, %24 : vector<32x32xf32>
    %279 = arith.addf %278, %31 : vector<32x32xf32>
    %280 = arith.mulf %1, %279 : vector<32x32xf32>
    %cst_50 = arith.constant dense<0.000000e+00> : vector<32xf32>
    %281 = vector.multi_reduction <add>, %280, %cst_50 [1] : vector<32x32xf32> to vector<32xf32>
    %282 = vector.shape_cast %281 : vector<32xf32> to vector<32x1xf32>
    %283 = vector.extract_strided_slice %282 {offsets = [0, 0], sizes = [16, 1], strides = [1, 1]} : vector<32x1xf32> to vector<16x1xf32>
    %cst_51 = arith.constant dense<0xFF800000> : vector<1xf32>
    %284 = vector.multi_reduction <maximumf>, %283, %cst_51 [0] : vector<16x1xf32> to vector<1xf32>
    %285 = vector.shape_cast %284 : vector<1xf32> to vector<1x1xf32>
    %286 = vector.shape_cast %285 : vector<1x1xf32> to vector<1x1xf32>
    %287 = vector.broadcast %286 : vector<1x1xf32> to vector<16x1xf32>
    %288 = vector.extract_strided_slice %282 {offsets = [16, 0], sizes = [16, 1], strides = [1, 1]} : vector<32x1xf32> to vector<16x1xf32>
    %cst_52 = arith.constant dense<0xFF800000> : vector<1xf32>
    %289 = vector.multi_reduction <maximumf>, %288, %cst_52 [0] : vector<16x1xf32> to vector<1xf32>
    %290 = vector.shape_cast %289 : vector<1xf32> to vector<1x1xf32>
    %291 = vector.shape_cast %290 : vector<1x1xf32> to vector<1x1xf32>
    %292 = vector.broadcast %291 : vector<1x1xf32> to vector<16x1xf32>
    %293 = tpu.concatenate %287, %292 in 0 : vector<16x1xf32>, vector<16x1xf32> -> vector<32x1xf32>
    %294 = arith.subf %282, %293 : vector<32x1xf32>
    %295 = math.exp %294 : vector<32x1xf32>
    %296 = vector.broadcast %295 : vector<32x1xf32> to vector<32x32xf32>
    %297 = arith.mulf %296, %32 : vector<32x32xf32>
    %298 = vector.extract_strided_slice %297 {offsets = [0, 0], sizes = [16, 32], strides = [1, 1]} : vector<32x32xf32> to vector<16x32xf32>
    %cst_53 = arith.constant dense<0.000000e+00> : vector<32xf32>
    %299 = vector.multi_reduction <add>, %298, %cst_53 [0] : vector<16x32xf32> to vector<32xf32>
    %300 = vector.shape_cast %299 : vector<32xf32> to vector<1x32xf32>
    %301 = vector.extract_strided_slice %295 {offsets = [0, 0], sizes = [16, 1], strides = [1, 1]} : vector<32x1xf32> to vector<16x1xf32>
    %cst_54 = arith.constant dense<0.000000e+00> : vector<1xf32>
    %302 = vector.multi_reduction <add>, %301, %cst_54 [0] : vector<16x1xf32> to vector<1xf32>
    %303 = vector.shape_cast %302 : vector<1xf32> to vector<1x1xf32>
    %304 = tpu.reciprocal %303 : vector<1x1xf32> -> vector<1x1xf32>
    %305 = vector.broadcast %304 : vector<1x1xf32> to vector<1x32xf32>
    %306 = arith.mulf %300, %305 : vector<1x32xf32>
    %307 = vector.shape_cast %306 : vector<1x32xf32> to vector<1x32xf32>
    %308 = vector.broadcast %307 : vector<1x32xf32> to vector<16x32xf32>
    %309 = vector.extract_strided_slice %297 {offsets = [16, 0], sizes = [16, 32], strides = [1, 1]} : vector<32x32xf32> to vector<16x32xf32>
    %cst_55 = arith.constant dense<0.000000e+00> : vector<32xf32>
    %310 = vector.multi_reduction <add>, %309, %cst_55 [0] : vector<16x32xf32> to vector<32xf32>
    %311 = vector.shape_cast %310 : vector<32xf32> to vector<1x32xf32>
    %312 = vector.extract_strided_slice %295 {offsets = [16, 0], sizes = [16, 1], strides = [1, 1]} : vector<32x1xf32> to vector<16x1xf32>
    %cst_56 = arith.constant dense<0.000000e+00> : vector<1xf32>
    %313 = vector.multi_reduction <add>, %312, %cst_56 [0] : vector<16x1xf32> to vector<1xf32>
    %314 = vector.shape_cast %313 : vector<1xf32> to vector<1x1xf32>
    %315 = tpu.reciprocal %314 : vector<1x1xf32> -> vector<1x1xf32>
    %316 = vector.broadcast %315 : vector<1x1xf32> to vector<1x32xf32>
    %317 = arith.mulf %311, %316 : vector<1x32xf32>
    %318 = vector.shape_cast %317 : vector<1x32xf32> to vector<1x32xf32>
    %319 = vector.broadcast %318 : vector<1x32xf32> to vector<16x32xf32>
    %320 = tpu.concatenate %308, %319 in 0 : vector<16x32xf32>, vector<16x32xf32> -> vector<32x32xf32>
    %321 = vector.extract_strided_slice %276 {offsets = [0, 32], sizes = [32, 32], strides = [1, 1]} : vector<32x64xf32> to vector<32x32xf32>
    %322 = arith.addf %320, %321 : vector<32x32xf32>
    %323 = arith.addf %322, %34 : vector<32x32xf32>
    %c6_i32 = arith.constant 6 : i32
    %cst_57 = arith.constant dense<0.000000e+00> : vector<32x64xf32>
    %324 = tpu.matmul %323, %4, %cst_57 {dimension_numbers = #tpu.dot_dimension_numbers<[1], [0], [0], [1], [0, 0, 1, 1], [], []>} : vector<32x32xf32>, vector<32x64xf32>, vector<32x64xf32> -> vector<32x64xf32>
    %325 = vector.extract_strided_slice %324 {offsets = [0, 0], sizes = [32, 32], strides = [1, 1]} : vector<32x64xf32> to vector<32x32xf32>
    %326 = arith.mulf %325, %24 : vector<32x32xf32>
    %327 = arith.addf %326, %31 : vector<32x32xf32>
    %328 = arith.mulf %1, %327 : vector<32x32xf32>
    %cst_58 = arith.constant dense<0.000000e+00> : vector<32xf32>
    %329 = vector.multi_reduction <add>, %328, %cst_58 [1] : vector<32x32xf32> to vector<32xf32>
    %330 = vector.shape_cast %329 : vector<32xf32> to vector<32x1xf32>
    %331 = vector.extract_strided_slice %330 {offsets = [0, 0], sizes = [16, 1], strides = [1, 1]} : vector<32x1xf32> to vector<16x1xf32>
    %cst_59 = arith.constant dense<0xFF800000> : vector<1xf32>
    %332 = vector.multi_reduction <maximumf>, %331, %cst_59 [0] : vector<16x1xf32> to vector<1xf32>
    %333 = vector.shape_cast %332 : vector<1xf32> to vector<1x1xf32>
    %334 = vector.shape_cast %333 : vector<1x1xf32> to vector<1x1xf32>
    %335 = vector.broadcast %334 : vector<1x1xf32> to vector<16x1xf32>
    %336 = vector.extract_strided_slice %330 {offsets = [16, 0], sizes = [16, 1], strides = [1, 1]} : vector<32x1xf32> to vector<16x1xf32>
    %cst_60 = arith.constant dense<0xFF800000> : vector<1xf32>
    %337 = vector.multi_reduction <maximumf>, %336, %cst_60 [0] : vector<16x1xf32> to vector<1xf32>
    %338 = vector.shape_cast %337 : vector<1xf32> to vector<1x1xf32>
    %339 = vector.shape_cast %338 : vector<1x1xf32> to vector<1x1xf32>
    %340 = vector.broadcast %339 : vector<1x1xf32> to vector<16x1xf32>
    %341 = tpu.concatenate %335, %340 in 0 : vector<16x1xf32>, vector<16x1xf32> -> vector<32x1xf32>
    %342 = arith.subf %330, %341 : vector<32x1xf32>
    %343 = math.exp %342 : vector<32x1xf32>
    %344 = vector.broadcast %343 : vector<32x1xf32> to vector<32x32xf32>
    %345 = arith.mulf %344, %32 : vector<32x32xf32>
    %346 = vector.extract_strided_slice %345 {offsets = [0, 0], sizes = [16, 32], strides = [1, 1]} : vector<32x32xf32> to vector<16x32xf32>
    %cst_61 = arith.constant dense<0.000000e+00> : vector<32xf32>
    %347 = vector.multi_reduction <add>, %346, %cst_61 [0] : vector<16x32xf32> to vector<32xf32>
    %348 = vector.shape_cast %347 : vector<32xf32> to vector<1x32xf32>
    %349 = vector.extract_strided_slice %343 {offsets = [0, 0], sizes = [16, 1], strides = [1, 1]} : vector<32x1xf32> to vector<16x1xf32>
    %cst_62 = arith.constant dense<0.000000e+00> : vector<1xf32>
    %350 = vector.multi_reduction <add>, %349, %cst_62 [0] : vector<16x1xf32> to vector<1xf32>
    %351 = vector.shape_cast %350 : vector<1xf32> to vector<1x1xf32>
    %352 = tpu.reciprocal %351 : vector<1x1xf32> -> vector<1x1xf32>
    %353 = vector.broadcast %352 : vector<1x1xf32> to vector<1x32xf32>
    %354 = arith.mulf %348, %353 : vector<1x32xf32>
    %355 = vector.shape_cast %354 : vector<1x32xf32> to vector<1x32xf32>
    %356 = vector.broadcast %355 : vector<1x32xf32> to vector<16x32xf32>
    %357 = vector.extract_strided_slice %345 {offsets = [16, 0], sizes = [16, 32], strides = [1, 1]} : vector<32x32xf32> to vector<16x32xf32>
    %cst_63 = arith.constant dense<0.000000e+00> : vector<32xf32>
    %358 = vector.multi_reduction <add>, %357, %cst_63 [0] : vector<16x32xf32> to vector<32xf32>
    %359 = vector.shape_cast %358 : vector<32xf32> to vector<1x32xf32>
    %360 = vector.extract_strided_slice %343 {offsets = [16, 0], sizes = [16, 1], strides = [1, 1]} : vector<32x1xf32> to vector<16x1xf32>
    %cst_64 = arith.constant dense<0.000000e+00> : vector<1xf32>
    %361 = vector.multi_reduction <add>, %360, %cst_64 [0] : vector<16x1xf32> to vector<1xf32>
    %362 = vector.shape_cast %361 : vector<1xf32> to vector<1x1xf32>
    %363 = tpu.reciprocal %362 : vector<1x1xf32> -> vector<1x1xf32>
    %364 = vector.broadcast %363 : vector<1x1xf32> to vector<1x32xf32>
    %365 = arith.mulf %359, %364 : vector<1x32xf32>
    %366 = vector.shape_cast %365 : vector<1x32xf32> to vector<1x32xf32>
    %367 = vector.broadcast %366 : vector<1x32xf32> to vector<16x32xf32>
    %368 = tpu.concatenate %356, %367 in 0 : vector<16x32xf32>, vector<16x32xf32> -> vector<32x32xf32>
    %369 = vector.extract_strided_slice %324 {offsets = [0, 32], sizes = [32, 32], strides = [1, 1]} : vector<32x64xf32> to vector<32x32xf32>
    %370 = arith.addf %368, %369 : vector<32x32xf32>
    %371 = arith.addf %370, %34 : vector<32x32xf32>
    %c7_i32 = arith.constant 7 : i32
    %cst_65 = arith.constant dense<0.000000e+00> : vector<32x64xf32>
    %372 = tpu.matmul %371, %4, %cst_65 {dimension_numbers = #tpu.dot_dimension_numbers<[1], [0], [0], [1], [0, 0, 1, 1], [], []>} : vector<32x32xf32>, vector<32x64xf32>, vector<32x64xf32> -> vector<32x64xf32>
    %373 = vector.extract_strided_slice %372 {offsets = [0, 0], sizes = [32, 32], strides = [1, 1]} : vector<32x64xf32> to vector<32x32xf32>
    %374 = arith.mulf %373, %24 : vector<32x32xf32>
    %375 = arith.addf %374, %31 : vector<32x32xf32>
    %376 = arith.mulf %1, %375 : vector<32x32xf32>
    %cst_66 = arith.constant dense<0.000000e+00> : vector<32xf32>
    %377 = vector.multi_reduction <add>, %376, %cst_66 [1] : vector<32x32xf32> to vector<32xf32>
    %378 = vector.shape_cast %377 : vector<32xf32> to vector<32x1xf32>
    %379 = vector.extract_strided_slice %378 {offsets = [0, 0], sizes = [16, 1], strides = [1, 1]} : vector<32x1xf32> to vector<16x1xf32>
    %cst_67 = arith.constant dense<0xFF800000> : vector<1xf32>
    %380 = vector.multi_reduction <maximumf>, %379, %cst_67 [0] : vector<16x1xf32> to vector<1xf32>
    %381 = vector.shape_cast %380 : vector<1xf32> to vector<1x1xf32>
    %382 = vector.shape_cast %381 : vector<1x1xf32> to vector<1x1xf32>
    %383 = vector.broadcast %382 : vector<1x1xf32> to vector<16x1xf32>
    %384 = vector.extract_strided_slice %378 {offsets = [16, 0], sizes = [16, 1], strides = [1, 1]} : vector<32x1xf32> to vector<16x1xf32>
    %cst_68 = arith.constant dense<0xFF800000> : vector<1xf32>
    %385 = vector.multi_reduction <maximumf>, %384, %cst_68 [0] : vector<16x1xf32> to vector<1xf32>
    %386 = vector.shape_cast %385 : vector<1xf32> to vector<1x1xf32>
    %387 = vector.shape_cast %386 : vector<1x1xf32> to vector<1x1xf32>
    %388 = vector.broadcast %387 : vector<1x1xf32> to vector<16x1xf32>
    %389 = tpu.concatenate %383, %388 in 0 : vector<16x1xf32>, vector<16x1xf32> -> vector<32x1xf32>
    %390 = arith.subf %378, %389 : vector<32x1xf32>
    %391 = math.exp %390 : vector<32x1xf32>
    %392 = vector.broadcast %391 : vector<32x1xf32> to vector<32x32xf32>
    %393 = arith.mulf %392, %32 : vector<32x32xf32>
    %394 = vector.extract_strided_slice %393 {offsets = [0, 0], sizes = [16, 32], strides = [1, 1]} : vector<32x32xf32> to vector<16x32xf32>
    %cst_69 = arith.constant dense<0.000000e+00> : vector<32xf32>
    %395 = vector.multi_reduction <add>, %394, %cst_69 [0] : vector<16x32xf32> to vector<32xf32>
    %396 = vector.shape_cast %395 : vector<32xf32> to vector<1x32xf32>
    %397 = vector.extract_strided_slice %391 {offsets = [0, 0], sizes = [16, 1], strides = [1, 1]} : vector<32x1xf32> to vector<16x1xf32>
    %cst_70 = arith.constant dense<0.000000e+00> : vector<1xf32>
    %398 = vector.multi_reduction <add>, %397, %cst_70 [0] : vector<16x1xf32> to vector<1xf32>
    %399 = vector.shape_cast %398 : vector<1xf32> to vector<1x1xf32>
    %400 = tpu.reciprocal %399 : vector<1x1xf32> -> vector<1x1xf32>
    %401 = vector.broadcast %400 : vector<1x1xf32> to vector<1x32xf32>
    %402 = arith.mulf %396, %401 : vector<1x32xf32>
    %403 = vector.shape_cast %402 : vector<1x32xf32> to vector<1x32xf32>
    %404 = vector.broadcast %403 : vector<1x32xf32> to vector<16x32xf32>
    %405 = vector.extract_strided_slice %393 {offsets = [16, 0], sizes = [16, 32], strides = [1, 1]} : vector<32x32xf32> to vector<16x32xf32>
    %cst_71 = arith.constant dense<0.000000e+00> : vector<32xf32>
    %406 = vector.multi_reduction <add>, %405, %cst_71 [0] : vector<16x32xf32> to vector<32xf32>
    %407 = vector.shape_cast %406 : vector<32xf32> to vector<1x32xf32>
    %408 = vector.extract_strided_slice %391 {offsets = [16, 0], sizes = [16, 1], strides = [1, 1]} : vector<32x1xf32> to vector<16x1xf32>
    %cst_72 = arith.constant dense<0.000000e+00> : vector<1xf32>
    %409 = vector.multi_reduction <add>, %408, %cst_72 [0] : vector<16x1xf32> to vector<1xf32>
    %410 = vector.shape_cast %409 : vector<1xf32> to vector<1x1xf32>
    %411 = tpu.reciprocal %410 : vector<1x1xf32> -> vector<1x1xf32>
    %412 = vector.broadcast %411 : vector<1x1xf32> to vector<1x32xf32>
    %413 = arith.mulf %407, %412 : vector<1x32xf32>
    %414 = vector.shape_cast %413 : vector<1x32xf32> to vector<1x32xf32>
    %415 = vector.broadcast %414 : vector<1x32xf32> to vector<16x32xf32>
    %416 = tpu.concatenate %404, %415 in 0 : vector<16x32xf32>, vector<16x32xf32> -> vector<32x32xf32>
    %417 = vector.extract_strided_slice %372 {offsets = [0, 32], sizes = [32, 32], strides = [1, 1]} : vector<32x64xf32> to vector<32x32xf32>
    %418 = arith.addf %416, %417 : vector<32x32xf32>
    %419 = arith.addf %418, %34 : vector<32x32xf32>
    %c8_i32 = arith.constant 8 : i32
    %cst_73 = arith.constant dense<0.000000e+00> : vector<32x64xf32>
    %420 = tpu.matmul %419, %4, %cst_73 {dimension_numbers = #tpu.dot_dimension_numbers<[1], [0], [0], [1], [0, 0, 1, 1], [], []>} : vector<32x32xf32>, vector<32x64xf32>, vector<32x64xf32> -> vector<32x64xf32>
    %421 = vector.extract_strided_slice %420 {offsets = [0, 0], sizes = [32, 32], strides = [1, 1]} : vector<32x64xf32> to vector<32x32xf32>
    %422 = arith.mulf %421, %24 : vector<32x32xf32>
    %423 = arith.addf %422, %31 : vector<32x32xf32>
    %424 = arith.mulf %1, %423 : vector<32x32xf32>
    %cst_74 = arith.constant dense<0.000000e+00> : vector<32xf32>
    %425 = vector.multi_reduction <add>, %424, %cst_74 [1] : vector<32x32xf32> to vector<32xf32>
    %426 = vector.shape_cast %425 : vector<32xf32> to vector<32x1xf32>
    %427 = vector.extract_strided_slice %426 {offsets = [0, 0], sizes = [16, 1], strides = [1, 1]} : vector<32x1xf32> to vector<16x1xf32>
    %cst_75 = arith.constant dense<0xFF800000> : vector<1xf32>
    %428 = vector.multi_reduction <maximumf>, %427, %cst_75 [0] : vector<16x1xf32> to vector<1xf32>
    %429 = vector.shape_cast %428 : vector<1xf32> to vector<1x1xf32>
    %430 = vector.shape_cast %429 : vector<1x1xf32> to vector<1x1xf32>
    %431 = vector.broadcast %430 : vector<1x1xf32> to vector<16x1xf32>
    %432 = vector.extract_strided_slice %426 {offsets = [16, 0], sizes = [16, 1], strides = [1, 1]} : vector<32x1xf32> to vector<16x1xf32>
    %cst_76 = arith.constant dense<0xFF800000> : vector<1xf32>
    %433 = vector.multi_reduction <maximumf>, %432, %cst_76 [0] : vector<16x1xf32> to vector<1xf32>
    %434 = vector.shape_cast %433 : vector<1xf32> to vector<1x1xf32>
    %435 = vector.shape_cast %434 : vector<1x1xf32> to vector<1x1xf32>
    %436 = vector.broadcast %435 : vector<1x1xf32> to vector<16x1xf32>
    %437 = tpu.concatenate %431, %436 in 0 : vector<16x1xf32>, vector<16x1xf32> -> vector<32x1xf32>
    %438 = arith.subf %426, %437 : vector<32x1xf32>
    %439 = math.exp %438 : vector<32x1xf32>
    %440 = vector.broadcast %439 : vector<32x1xf32> to vector<32x32xf32>
    %441 = arith.mulf %440, %32 : vector<32x32xf32>
    %442 = vector.extract_strided_slice %441 {offsets = [0, 0], sizes = [16, 32], strides = [1, 1]} : vector<32x32xf32> to vector<16x32xf32>
    %cst_77 = arith.constant dense<0.000000e+00> : vector<32xf32>
    %443 = vector.multi_reduction <add>, %442, %cst_77 [0] : vector<16x32xf32> to vector<32xf32>
    %444 = vector.shape_cast %443 : vector<32xf32> to vector<1x32xf32>
    %445 = vector.extract_strided_slice %439 {offsets = [0, 0], sizes = [16, 1], strides = [1, 1]} : vector<32x1xf32> to vector<16x1xf32>
    %cst_78 = arith.constant dense<0.000000e+00> : vector<1xf32>
    %446 = vector.multi_reduction <add>, %445, %cst_78 [0] : vector<16x1xf32> to vector<1xf32>
    %447 = vector.shape_cast %446 : vector<1xf32> to vector<1x1xf32>
    %448 = tpu.reciprocal %447 : vector<1x1xf32> -> vector<1x1xf32>
    %449 = vector.broadcast %448 : vector<1x1xf32> to vector<1x32xf32>
    %450 = arith.mulf %444, %449 : vector<1x32xf32>
    %451 = vector.shape_cast %450 : vector<1x32xf32> to vector<1x32xf32>
    %452 = vector.broadcast %451 : vector<1x32xf32> to vector<16x32xf32>
    %453 = vector.extract_strided_slice %441 {offsets = [16, 0], sizes = [16, 32], strides = [1, 1]} : vector<32x32xf32> to vector<16x32xf32>
    %cst_79 = arith.constant dense<0.000000e+00> : vector<32xf32>
    %454 = vector.multi_reduction <add>, %453, %cst_79 [0] : vector<16x32xf32> to vector<32xf32>
    %455 = vector.shape_cast %454 : vector<32xf32> to vector<1x32xf32>
    %456 = vector.extract_strided_slice %439 {offsets = [16, 0], sizes = [16, 1], strides = [1, 1]} : vector<32x1xf32> to vector<16x1xf32>
    %cst_80 = arith.constant dense<0.000000e+00> : vector<1xf32>
    %457 = vector.multi_reduction <add>, %456, %cst_80 [0] : vector<16x1xf32> to vector<1xf32>
    %458 = vector.shape_cast %457 : vector<1xf32> to vector<1x1xf32>
    %459 = tpu.reciprocal %458 : vector<1x1xf32> -> vector<1x1xf32>
    %460 = vector.broadcast %459 : vector<1x1xf32> to vector<1x32xf32>
    %461 = arith.mulf %455, %460 : vector<1x32xf32>
    %462 = vector.shape_cast %461 : vector<1x32xf32> to vector<1x32xf32>
    %463 = vector.broadcast %462 : vector<1x32xf32> to vector<16x32xf32>
    %464 = tpu.concatenate %452, %463 in 0 : vector<16x32xf32>, vector<16x32xf32> -> vector<32x32xf32>
    %465 = vector.extract_strided_slice %420 {offsets = [0, 32], sizes = [32, 32], strides = [1, 1]} : vector<32x64xf32> to vector<32x32xf32>
    %466 = arith.addf %464, %465 : vector<32x32xf32>
    %467 = arith.addf %466, %34 : vector<32x32xf32>
    %c9_i32 = arith.constant 9 : i32
    %cst_81 = arith.constant dense<0.000000e+00> : vector<32x64xf32>
    %468 = tpu.matmul %467, %4, %cst_81 {dimension_numbers = #tpu.dot_dimension_numbers<[1], [0], [0], [1], [0, 0, 1, 1], [], []>} : vector<32x32xf32>, vector<32x64xf32>, vector<32x64xf32> -> vector<32x64xf32>
    %469 = vector.extract_strided_slice %468 {offsets = [0, 0], sizes = [32, 32], strides = [1, 1]} : vector<32x64xf32> to vector<32x32xf32>
    %470 = arith.mulf %469, %24 : vector<32x32xf32>
    %471 = arith.addf %470, %31 : vector<32x32xf32>
    %472 = arith.mulf %1, %471 : vector<32x32xf32>
    %cst_82 = arith.constant dense<0.000000e+00> : vector<32xf32>
    %473 = vector.multi_reduction <add>, %472, %cst_82 [1] : vector<32x32xf32> to vector<32xf32>
    %474 = vector.shape_cast %473 : vector<32xf32> to vector<32x1xf32>
    %475 = vector.extract_strided_slice %474 {offsets = [0, 0], sizes = [16, 1], strides = [1, 1]} : vector<32x1xf32> to vector<16x1xf32>
    %cst_83 = arith.constant dense<0xFF800000> : vector<1xf32>
    %476 = vector.multi_reduction <maximumf>, %475, %cst_83 [0] : vector<16x1xf32> to vector<1xf32>
    %477 = vector.shape_cast %476 : vector<1xf32> to vector<1x1xf32>
    %478 = vector.shape_cast %477 : vector<1x1xf32> to vector<1x1xf32>
    %479 = vector.broadcast %478 : vector<1x1xf32> to vector<16x1xf32>
    %480 = vector.extract_strided_slice %474 {offsets = [16, 0], sizes = [16, 1], strides = [1, 1]} : vector<32x1xf32> to vector<16x1xf32>
    %cst_84 = arith.constant dense<0xFF800000> : vector<1xf32>
    %481 = vector.multi_reduction <maximumf>, %480, %cst_84 [0] : vector<16x1xf32> to vector<1xf32>
    %482 = vector.shape_cast %481 : vector<1xf32> to vector<1x1xf32>
    %483 = vector.shape_cast %482 : vector<1x1xf32> to vector<1x1xf32>
    %484 = vector.broadcast %483 : vector<1x1xf32> to vector<16x1xf32>
    %485 = tpu.concatenate %479, %484 in 0 : vector<16x1xf32>, vector<16x1xf32> -> vector<32x1xf32>
    %486 = arith.subf %474, %485 : vector<32x1xf32>
    %487 = math.exp %486 : vector<32x1xf32>
    %488 = vector.broadcast %487 : vector<32x1xf32> to vector<32x32xf32>
    %489 = arith.mulf %488, %32 : vector<32x32xf32>
    %490 = vector.extract_strided_slice %489 {offsets = [0, 0], sizes = [16, 32], strides = [1, 1]} : vector<32x32xf32> to vector<16x32xf32>
    %cst_85 = arith.constant dense<0.000000e+00> : vector<32xf32>
    %491 = vector.multi_reduction <add>, %490, %cst_85 [0] : vector<16x32xf32> to vector<32xf32>
    %492 = vector.shape_cast %491 : vector<32xf32> to vector<1x32xf32>
    %493 = vector.extract_strided_slice %487 {offsets = [0, 0], sizes = [16, 1], strides = [1, 1]} : vector<32x1xf32> to vector<16x1xf32>
    %cst_86 = arith.constant dense<0.000000e+00> : vector<1xf32>
    %494 = vector.multi_reduction <add>, %493, %cst_86 [0] : vector<16x1xf32> to vector<1xf32>
    %495 = vector.shape_cast %494 : vector<1xf32> to vector<1x1xf32>
    %496 = tpu.reciprocal %495 : vector<1x1xf32> -> vector<1x1xf32>
    %497 = vector.broadcast %496 : vector<1x1xf32> to vector<1x32xf32>
    %498 = arith.mulf %492, %497 : vector<1x32xf32>
    %499 = vector.shape_cast %498 : vector<1x32xf32> to vector<1x32xf32>
    %500 = vector.broadcast %499 : vector<1x32xf32> to vector<16x32xf32>
    %501 = vector.extract_strided_slice %489 {offsets = [16, 0], sizes = [16, 32], strides = [1, 1]} : vector<32x32xf32> to vector<16x32xf32>
    %cst_87 = arith.constant dense<0.000000e+00> : vector<32xf32>
    %502 = vector.multi_reduction <add>, %501, %cst_87 [0] : vector<16x32xf32> to vector<32xf32>
    %503 = vector.shape_cast %502 : vector<32xf32> to vector<1x32xf32>
    %504 = vector.extract_strided_slice %487 {offsets = [16, 0], sizes = [16, 1], strides = [1, 1]} : vector<32x1xf32> to vector<16x1xf32>
    %cst_88 = arith.constant dense<0.000000e+00> : vector<1xf32>
    %505 = vector.multi_reduction <add>, %504, %cst_88 [0] : vector<16x1xf32> to vector<1xf32>
    %506 = vector.shape_cast %505 : vector<1xf32> to vector<1x1xf32>
    %507 = tpu.reciprocal %506 : vector<1x1xf32> -> vector<1x1xf32>
    %508 = vector.broadcast %507 : vector<1x1xf32> to vector<1x32xf32>
    %509 = arith.mulf %503, %508 : vector<1x32xf32>
    %510 = vector.shape_cast %509 : vector<1x32xf32> to vector<1x32xf32>
    %511 = vector.broadcast %510 : vector<1x32xf32> to vector<16x32xf32>
    %512 = tpu.concatenate %500, %511 in 0 : vector<16x32xf32>, vector<16x32xf32> -> vector<32x32xf32>
    %513 = vector.extract_strided_slice %468 {offsets = [0, 32], sizes = [32, 32], strides = [1, 1]} : vector<32x64xf32> to vector<32x32xf32>
    %514 = arith.addf %512, %513 : vector<32x32xf32>
    %515 = arith.addf %514, %34 : vector<32x32xf32>
    %c10_i32 = arith.constant 10 : i32
    %cst_89 = arith.constant dense<0.000000e+00> : vector<32x64xf32>
    %516 = tpu.matmul %515, %4, %cst_89 {dimension_numbers = #tpu.dot_dimension_numbers<[1], [0], [0], [1], [0, 0, 1, 1], [], []>} : vector<32x32xf32>, vector<32x64xf32>, vector<32x64xf32> -> vector<32x64xf32>
    %517 = vector.extract_strided_slice %516 {offsets = [0, 0], sizes = [32, 32], strides = [1, 1]} : vector<32x64xf32> to vector<32x32xf32>
    %518 = arith.mulf %517, %24 : vector<32x32xf32>
    %519 = arith.addf %518, %31 : vector<32x32xf32>
    %520 = arith.mulf %1, %519 : vector<32x32xf32>
    %cst_90 = arith.constant dense<0.000000e+00> : vector<32xf32>
    %521 = vector.multi_reduction <add>, %520, %cst_90 [1] : vector<32x32xf32> to vector<32xf32>
    %522 = vector.shape_cast %521 : vector<32xf32> to vector<32x1xf32>
    %523 = vector.extract_strided_slice %522 {offsets = [0, 0], sizes = [16, 1], strides = [1, 1]} : vector<32x1xf32> to vector<16x1xf32>
    %cst_91 = arith.constant dense<0xFF800000> : vector<1xf32>
    %524 = vector.multi_reduction <maximumf>, %523, %cst_91 [0] : vector<16x1xf32> to vector<1xf32>
    %525 = vector.shape_cast %524 : vector<1xf32> to vector<1x1xf32>
    %526 = vector.shape_cast %525 : vector<1x1xf32> to vector<1x1xf32>
    %527 = vector.broadcast %526 : vector<1x1xf32> to vector<16x1xf32>
    %528 = vector.extract_strided_slice %522 {offsets = [16, 0], sizes = [16, 1], strides = [1, 1]} : vector<32x1xf32> to vector<16x1xf32>
    %cst_92 = arith.constant dense<0xFF800000> : vector<1xf32>
    %529 = vector.multi_reduction <maximumf>, %528, %cst_92 [0] : vector<16x1xf32> to vector<1xf32>
    %530 = vector.shape_cast %529 : vector<1xf32> to vector<1x1xf32>
    %531 = vector.shape_cast %530 : vector<1x1xf32> to vector<1x1xf32>
    %532 = vector.broadcast %531 : vector<1x1xf32> to vector<16x1xf32>
    %533 = tpu.concatenate %527, %532 in 0 : vector<16x1xf32>, vector<16x1xf32> -> vector<32x1xf32>
    %534 = arith.subf %522, %533 : vector<32x1xf32>
    %535 = math.exp %534 : vector<32x1xf32>
    %536 = vector.broadcast %535 : vector<32x1xf32> to vector<32x32xf32>
    %537 = arith.mulf %536, %32 : vector<32x32xf32>
    %538 = vector.extract_strided_slice %537 {offsets = [0, 0], sizes = [16, 32], strides = [1, 1]} : vector<32x32xf32> to vector<16x32xf32>
    %cst_93 = arith.constant dense<0.000000e+00> : vector<32xf32>
    %539 = vector.multi_reduction <add>, %538, %cst_93 [0] : vector<16x32xf32> to vector<32xf32>
    %540 = vector.shape_cast %539 : vector<32xf32> to vector<1x32xf32>
    %541 = vector.extract_strided_slice %535 {offsets = [0, 0], sizes = [16, 1], strides = [1, 1]} : vector<32x1xf32> to vector<16x1xf32>
    %cst_94 = arith.constant dense<0.000000e+00> : vector<1xf32>
    %542 = vector.multi_reduction <add>, %541, %cst_94 [0] : vector<16x1xf32> to vector<1xf32>
    %543 = vector.shape_cast %542 : vector<1xf32> to vector<1x1xf32>
    %544 = tpu.reciprocal %543 : vector<1x1xf32> -> vector<1x1xf32>
    %545 = vector.broadcast %544 : vector<1x1xf32> to vector<1x32xf32>
    %546 = arith.mulf %540, %545 : vector<1x32xf32>
    %547 = vector.shape_cast %546 : vector<1x32xf32> to vector<1x32xf32>
    %548 = vector.broadcast %547 : vector<1x32xf32> to vector<16x32xf32>
    %549 = vector.extract_strided_slice %537 {offsets = [16, 0], sizes = [16, 32], strides = [1, 1]} : vector<32x32xf32> to vector<16x32xf32>
    %cst_95 = arith.constant dense<0.000000e+00> : vector<32xf32>
    %550 = vector.multi_reduction <add>, %549, %cst_95 [0] : vector<16x32xf32> to vector<32xf32>
    %551 = vector.shape_cast %550 : vector<32xf32> to vector<1x32xf32>
    %552 = vector.extract_strided_slice %535 {offsets = [16, 0], sizes = [16, 1], strides = [1, 1]} : vector<32x1xf32> to vector<16x1xf32>
    %cst_96 = arith.constant dense<0.000000e+00> : vector<1xf32>
    %553 = vector.multi_reduction <add>, %552, %cst_96 [0] : vector<16x1xf32> to vector<1xf32>
    %554 = vector.shape_cast %553 : vector<1xf32> to vector<1x1xf32>
    %555 = tpu.reciprocal %554 : vector<1x1xf32> -> vector<1x1xf32>
    %556 = vector.broadcast %555 : vector<1x1xf32> to vector<1x32xf32>
    %557 = arith.mulf %551, %556 : vector<1x32xf32>
    %558 = vector.shape_cast %557 : vector<1x32xf32> to vector<1x32xf32>
    %559 = vector.broadcast %558 : vector<1x32xf32> to vector<16x32xf32>
    %560 = tpu.concatenate %548, %559 in 0 : vector<16x32xf32>, vector<16x32xf32> -> vector<32x32xf32>
    %561 = vector.extract_strided_slice %516 {offsets = [0, 32], sizes = [32, 32], strides = [1, 1]} : vector<32x64xf32> to vector<32x32xf32>
    %562 = arith.addf %560, %561 : vector<32x32xf32>
    %563 = arith.addf %562, %34 : vector<32x32xf32>
    %c11_i32 = arith.constant 11 : i32
    %cst_97 = arith.constant dense<0.000000e+00> : vector<32x64xf32>
    %564 = tpu.matmul %563, %4, %cst_97 {dimension_numbers = #tpu.dot_dimension_numbers<[1], [0], [0], [1], [0, 0, 1, 1], [], []>} : vector<32x32xf32>, vector<32x64xf32>, vector<32x64xf32> -> vector<32x64xf32>
    %565 = vector.extract_strided_slice %564 {offsets = [0, 0], sizes = [32, 32], strides = [1, 1]} : vector<32x64xf32> to vector<32x32xf32>
    %566 = arith.mulf %565, %24 : vector<32x32xf32>
    %567 = arith.addf %566, %31 : vector<32x32xf32>
    %568 = arith.mulf %1, %567 : vector<32x32xf32>
    %cst_98 = arith.constant dense<0.000000e+00> : vector<32xf32>
    %569 = vector.multi_reduction <add>, %568, %cst_98 [1] : vector<32x32xf32> to vector<32xf32>
    %570 = vector.shape_cast %569 : vector<32xf32> to vector<32x1xf32>
    %571 = vector.extract_strided_slice %570 {offsets = [0, 0], sizes = [16, 1], strides = [1, 1]} : vector<32x1xf32> to vector<16x1xf32>
    %cst_99 = arith.constant dense<0xFF800000> : vector<1xf32>
    %572 = vector.multi_reduction <maximumf>, %571, %cst_99 [0] : vector<16x1xf32> to vector<1xf32>
    %573 = vector.shape_cast %572 : vector<1xf32> to vector<1x1xf32>
    %574 = vector.shape_cast %573 : vector<1x1xf32> to vector<1x1xf32>
    %575 = vector.broadcast %574 : vector<1x1xf32> to vector<16x1xf32>
    %576 = vector.extract_strided_slice %570 {offsets = [16, 0], sizes = [16, 1], strides = [1, 1]} : vector<32x1xf32> to vector<16x1xf32>
    %cst_100 = arith.constant dense<0xFF800000> : vector<1xf32>
    %577 = vector.multi_reduction <maximumf>, %576, %cst_100 [0] : vector<16x1xf32> to vector<1xf32>
    %578 = vector.shape_cast %577 : vector<1xf32> to vector<1x1xf32>
    %579 = vector.shape_cast %578 : vector<1x1xf32> to vector<1x1xf32>
    %580 = vector.broadcast %579 : vector<1x1xf32> to vector<16x1xf32>
    %581 = tpu.concatenate %575, %580 in 0 : vector<16x1xf32>, vector<16x1xf32> -> vector<32x1xf32>
    %582 = arith.subf %570, %581 : vector<32x1xf32>
    %583 = math.exp %582 : vector<32x1xf32>
    %584 = vector.broadcast %583 : vector<32x1xf32> to vector<32x32xf32>
    %585 = arith.mulf %584, %32 : vector<32x32xf32>
    %586 = vector.extract_strided_slice %585 {offsets = [0, 0], sizes = [16, 32], strides = [1, 1]} : vector<32x32xf32> to vector<16x32xf32>
    %cst_101 = arith.constant dense<0.000000e+00> : vector<32xf32>
    %587 = vector.multi_reduction <add>, %586, %cst_101 [0] : vector<16x32xf32> to vector<32xf32>
    %588 = vector.shape_cast %587 : vector<32xf32> to vector<1x32xf32>
    %589 = vector.extract_strided_slice %583 {offsets = [0, 0], sizes = [16, 1], strides = [1, 1]} : vector<32x1xf32> to vector<16x1xf32>
    %cst_102 = arith.constant dense<0.000000e+00> : vector<1xf32>
    %590 = vector.multi_reduction <add>, %589, %cst_102 [0] : vector<16x1xf32> to vector<1xf32>
    %591 = vector.shape_cast %590 : vector<1xf32> to vector<1x1xf32>
    %592 = tpu.reciprocal %591 : vector<1x1xf32> -> vector<1x1xf32>
    %593 = vector.broadcast %592 : vector<1x1xf32> to vector<1x32xf32>
    %594 = arith.mulf %588, %593 : vector<1x32xf32>
    %595 = vector.shape_cast %594 : vector<1x32xf32> to vector<1x32xf32>
    %596 = vector.broadcast %595 : vector<1x32xf32> to vector<16x32xf32>
    %597 = vector.extract_strided_slice %585 {offsets = [16, 0], sizes = [16, 32], strides = [1, 1]} : vector<32x32xf32> to vector<16x32xf32>
    %cst_103 = arith.constant dense<0.000000e+00> : vector<32xf32>
    %598 = vector.multi_reduction <add>, %597, %cst_103 [0] : vector<16x32xf32> to vector<32xf32>
    %599 = vector.shape_cast %598 : vector<32xf32> to vector<1x32xf32>
    %600 = vector.extract_strided_slice %583 {offsets = [16, 0], sizes = [16, 1], strides = [1, 1]} : vector<32x1xf32> to vector<16x1xf32>
    %cst_104 = arith.constant dense<0.000000e+00> : vector<1xf32>
    %601 = vector.multi_reduction <add>, %600, %cst_104 [0] : vector<16x1xf32> to vector<1xf32>
    %602 = vector.shape_cast %601 : vector<1xf32> to vector<1x1xf32>
    %603 = tpu.reciprocal %602 : vector<1x1xf32> -> vector<1x1xf32>
    %604 = vector.broadcast %603 : vector<1x1xf32> to vector<1x32xf32>
    %605 = arith.mulf %599, %604 : vector<1x32xf32>
    %606 = vector.shape_cast %605 : vector<1x32xf32> to vector<1x32xf32>
    %607 = vector.broadcast %606 : vector<1x32xf32> to vector<16x32xf32>
    %608 = tpu.concatenate %596, %607 in 0 : vector<16x32xf32>, vector<16x32xf32> -> vector<32x32xf32>
    %609 = vector.extract_strided_slice %564 {offsets = [0, 32], sizes = [32, 32], strides = [1, 1]} : vector<32x64xf32> to vector<32x32xf32>
    %610 = arith.addf %608, %609 : vector<32x32xf32>
    %611 = arith.addf %610, %34 : vector<32x32xf32>
    %612 = vector.extract_strided_slice %611 {offsets = [0, 0], sizes = [1, 32], strides = [1, 1]} : vector<32x32xf32> to vector<1x32xf32>
    %613 = vector.extract_strided_slice %611 {offsets = [16, 0], sizes = [1, 32], strides = [1, 1]} : vector<32x32xf32> to vector<1x32xf32>
    %614 = tpu.concatenate %612, %613 in 0 : vector<1x32xf32>, vector<1x32xf32> -> vector<2x32xf32>
    %c0_105 = arith.constant 0 : index
    %c0_106 = arith.constant 0 : index
    %615 = vector.load %arg4[%c0_105, %c0_106] : memref<2x32xf32, #tpu.memory_space<vmem>>, vector<2x32xf32>
    tpu.vector_store %arg4[%c0_105, %c0_106], %614 {strides = array<i32>} : memref<2x32xf32, #tpu.memory_space<vmem>>, vector<2x32xf32>,
    return
  }
}

</mosaic_0001>

<bundles_post_ra>
// kernel: mac_unit_pallas.1
= control target key start
LH: loop header
LB: loop body
LE: loop exit
PB: predicated region body
PF: predicated region fallthrough
CT: control target
= control target key end

     0   :  { %9 = vsyncpa [#allocation3], 0  ;;  %s4790_s0 = inlined_call_operand.vmem [shape: f32[2,32], index: 0, kind: input, shape index: {}]   ;;  %s4791_s1 = inlined_call_operand.hbm [shape: f32[32,32], index: 1, kind: input, shape index: {}]   ;;  %s4792_s2 = inlined_call_operand.hbm [shape: f32[32,160], index: 2, kind: input, shape index: {}]   ;;  %s4793_s3 = inlined_call_operand.vmem [shape: f32[3,32], index: 3, kind: input, shape index: {}]   ;;  %s4794_s4 = inlined_call_operand.hbm [shape: f32[2,32], index: 4, kind: output, shape index: {}]  }
   0x1   :  { %10 = vsyncpa [#allocation6], 0 }
   0x2   :  { %11 = vsyncpa [#allocation4], 0  ;;  %s3935_s15 = smov [#allocation2]   ;;  %s3863_s19 = scalar_lea.hbm %s4791_s1, 512 }
   0x3   :  { %s19_s16 = sshll.u32 %s3935_s15, 4  ;;  %p3864_p0 = scmp.ne.s32.totalorder %s4791_s1, %s3863_s19  ;;  %s20_s16 = int_to_ptr.vmem [resolvable:$true] %s19_s16 }
   0x4   :  { %p3867_p1 = scmp.lt.u32.totalorder %s3863_s19, %s4791_s1 }
   0x6   :  { %p3869_p2 = pnand %p3867_p1, %p3864_p0 }
   0x8   :  { %3872 = shalt.err (!%p3869_p2)
}
   0x9   :  { %s3873_s24 = scalar_lea.vmem %s20_s16, 512  ;;  %p3878_p4 = scmp.lt.s32.totalorder %s20_s16, %s20_s16 }
   0xa   :  { %p3874_p3 = scmp.ne.s32.totalorder %s20_s16, %s3873_s24  ;;  %p3879_p5 = scmp.lt.s32.totalorder %s3873_s24, %s3873_s24 }
   0xc   :  { %p3880_p6 = por %p3879_p5, %p3878_p4 }
   0xe   :  { %p3881_p7 = pnand %p3880_p6, %p3874_p3 }
  0x10   :  { %3884 = shalt.err (!%p3881_p7)
}
  0x11   :  { %s3936_s25 = smov 128   ;;  %s3937_s26 = smov 8  }
  0x12   :  { %25 = dma.hbm_to_vmem [thread:$0]  %s4791_s1, 512, %s20_s16, [#allocation3], %s3936_s25, %s3936_s25, %s3937_s26  }
  0x13   :  { %s3938_s29 = smov [#allocation5]   ;;  %s3885_s7 = scalar_lea.hbm %s4792_s2, 1024 }
  0x14   :  { %s31_s30 = sshll.u32 %s3938_s29, 4  ;;  %p3886_p8 = scmp.ne.s32.totalorder %s4792_s2, %s3885_s7  ;;  %s32_s30 = int_to_ptr.vmem [resolvable:$true] %s31_s30 }
  0x15   :  { %p3889_p9 = scmp.lt.u32.totalorder %s3885_s7, %s4792_s2 }
  0x17   :  { %p3891_p10 = pnand %p3889_p9, %p3886_p8 }
  0x19   :  { %3894 = shalt.err (!%p3891_p10)
}
  0x1a   :  { %s3895_s12 = scalar_lea.vmem %s32_s30, 1024  ;;  %p3900_p12 = scmp.lt.s32.totalorder %s32_s30, %s32_s30 }
  0x1b   :  { %p3896_p11 = scmp.ne.s32.totalorder %s32_s30, %s3895_s12  ;;  %p3901_p13 = scmp.lt.s32.totalorder %s3895_s12, %s3895_s12 }
  0x1d   :  { %p3902_p0 = por %p3901_p13, %p3900_p12 }
  0x1f   :  { %p3903_p1 = pnand %p3902_p0, %p3896_p11 }
  0x21   :  { %3906 = shalt.err (!%p3903_p1)
}
  0x22   :  { %s3939_s1 = smov 256   ;;  %s3940_s13 = smov 16  }
  0x23   :  { %37 = dma.hbm_to_vmem [thread:$0]  %s4792_s2, 1024, %s32_s30, [#allocation6], %s3939_s1, %s3939_s1, %s3940_s13  }
  0x24   :  { %3929 = dma.done.wait [#allocation3], 512  }
  0x25   :  { %3930 = vsyncadd [#allocation3], 4294966784 }
  0x26   :  { %3931 = dma.done.wait [#allocation6], 1024  }
  0x27   :  { %3932 = vsyncadd [#allocation6], 4294966272  ;;  %v3941_v0 = vmov 0.0|0.0   ;;  %vm3942_vm0 = vmmov 0   ;;  %v3943_v1 = vmov 0.0   ;;  %v51_v2 = vld [vmem:[#allocation5] sm:$0xff]  ;;  %v60_v10 = vlaneseq }
  0x28   :  { %3576 = vmatprep.subr.bf16.mxu0 %v3941_v0  ;;  %3391 = vmatprep.mubr.msk.f32.mxu0 %vm3942_vm0, %v3943_v1  ;;  %v53_v3 = vld [vmem:[#allocation5 + $0x10] sm:$0xff]  ;;  %v55_v4 = vld [vmem:[#allocation5 + $0x20] sm:$0xff]  ;;  %s3944_s16 = smov 64   ;;  %vm81_vm1 = vcmask 261120   ;;  %v52_v28 = vld [vmem:[#allocation5 + $0x8] sm:$0xff]  ;;  %vm453_vm2 = vcmask 7168  }
  0x29   :  { %v3699_v5 = vpack.i.bf16 %v53_v3, %v51_v2  ;;  %v3997_v6 = vpack.c.bf16 %v53_v3, %v51_v2  ;;  %v57_v7 = vld [vmem:[#allocation5 + $0x30] sm:$0xff]  ;;  %v4001_v11 = vshrl.u32 %v60_v10, 7  ;;  %v4009_v16 = vld [vmem:[%s4793_s3] sm:$0x7]  ;;  %v54_v29 = vld [vmem:[#allocation5 + $0x18] sm:$0xff]  ;;  %v3946_v2 = vmov 0  }
  0x2a   :  { %v3999_v8 = vpack.c.bf16 %v57_v7, %v55_v4  ;;  %v3704_v9 = vpack.i.bf16 %v57_v7, %v55_v4  ;;  %v46_v22 = vld [vmem:[%s4790_s0] sm:$0x3]  ;;  %s3945_s0 = smov 96   ;;  %v56_v30 = vld [vmem:[#allocation5 + $0x28] sm:$0xff]  ;;  %v3582_v31 = vpack.c.bf16 %v54_v29, %v52_v28  ;;  %v58_v32 = vld [vmem:[#allocation5 + $0x38] sm:$0xff]  ;;  %3710 = vset.pattern.permute.xlu1 %v3946_v2  ;;  %3709 = vset.pattern.permute.xlu0 %v3946_v2  ;;  %s3947_s3 = smov [#allocation7]  }
  0x2b   :  { %3700 = vrot.lane.b32.xlu0 %v3699_v5, %s3944_s16  ;;  %v4004_v13 = vsub.s32 1, %v4001_v11  ;;  %v4026_v25 = vld [vmem:[#allocation2] sm:$0xff]  ;;  %v3586_v33 = vpack.c.bf16 %v58_v32, %v56_v30  ;;  %v4036_v36 = vld [vmem:[#allocation2 + $0x8] sm:$0xff]  ;;  %v4040_v38 = vld [vmem:[#allocation2 + $0x10] sm:$0xff]  ;;  %v157_v41 = vsub.s32 0, %v4001_v11  ;;  %s3215_s20 = sshll.u32 %s3947_s3, 4  ;;  %s3216_s20 = int_to_ptr.vmem [resolvable:$true] %s3215_s20 }
  0x2c   :  { %3402 = vmatprep.mubr.msk.f32.mxu1 %vm81_vm1, %v4026_v25  ;;  %3583 = vmatprep.subr.bf16.mxu1 %v3582_v31  ;;  %v4050_v40 = vld [vmem:[#allocation2 + $0x18] sm:$0xff]  ;;  %vm3205_vm3 = vcmask 1040384   ;;  %vm3207_vm4 = vcmask 254976   ;;  %s3907_s21 = scalar_lea.vmem %s3216_s20, 32  ;;  %p3912_p3 = scmp.lt.s32.totalorder %s3216_s20, %s3216_s20 }
  0x2d   :  { %v63_v19 = vrot.slane %v4009_v16, %v4004_v13  ;;  %3585 = vmatpush3.bf16.msra.mxu1 %v3582_v31  ;;  %v158_v42 = vrot.slane %v4009_v16, %v157_v41  ;;  %p3908_p2 = scmp.ne.s32.totalorder %s3216_s20, %s3907_s21  ;;  %p3913_p4 = scmp.lt.s32.totalorder %s3907_s21, %s3907_s21 }
  0x2e   :  { %3587 = vmatprep.subr.bf16.mxu1 %v3586_v33 }
  0x2f   :  { %3705 = vrot.lane.b32.xlu0 %v3704_v9, %s3944_s16  ;;  %v64_v24 = vmul.f32 %v63_v19, %v46_v22  ;;  %p3914_p5 = por %p3913_p4, %p3912_p3 }
  0x31   :  { %3589 = vmatpush3.bf16.msra.mxu1 %v3586_v33  ;;  %p3915_p6 = pnand %p3914_p5, %p3908_p2 }
  0x32   :  { %3599 = vmatprep.subr.bf16.mxu1 %v3997_v6 }
  0x34   :  { %3403 = vmatmul.mubr.msk.f32.vlgmr.msra.gmra.mrb[0].mxu1 %vm81_vm1, %v4036_v36 }
  0x35   :  { %3405 = vmatprep.mubr.msk.f32.mxu1 %vm81_vm1, %v4040_v38  ;;  %3601 = vmatpush3.bf16.msra.mxu1 %v3997_v6 }
  0x36   :  { %3603 = vmatprep.subr.bf16.mxu1 %v3999_v8 }
  0x38   :  { %3406 = vmatmul.mubr.msk.f32.gmra.mrb[2].mxu1 %vm81_vm1, %v4050_v40 }
  0x39   :  { %3605 = vmatpush3.bf16.msra.mxu1 %v3999_v8 }
  0x3a   :  { %3615 = vmatprep.subr.bf16.mxu1 %v3997_v6 }
  0x9d   :  { %v3701_v12 = vpop.permute.xlu0 %3700 }
  0x9e   :  { %v3703_v14 = vunpack.i.h.bf16 %v3701_v12  ;;  %v3702_v15 = vunpack.i.l.bf16 %v3701_v12 }
  0xa0   :  { %v3577_v17 = vpack.c.bf16 %v3703_v14, %v3702_v15 }
  0xa1   :  { %v3706_v18 = vpop.permute.xlu0 %3705 }
  0xa2   :  { %v3708_v20 = vunpack.i.h.bf16 %v3706_v18  ;;  %v3707_v21 = vunpack.i.l.bf16 %v3706_v18  ;;  %3578 = vmatpush3.bf16.msra.mxu0 %v3577_v17 }
  0xa3   :  { %3579 = vmatprep.subr.bf16.mxu0 %v3941_v0 }
  0xa4   :  { %v3580_v23 = vpack.c.bf16 %v3708_v20, %v3707_v21 }
  0xa6   :  { %3581 = vmatpush3.bf16.msra.mxu0 %v3580_v23 }
  0xa7   :  { %3591 = vmatprep.subr.bf16.mxu0 %v3997_v6 }
  0xa9   :  { %3392 = vmatmul.mubr.msk.f32.vlgmr.msra.gmra.mrb[0].mxu0 %vm81_vm1, %v64_v24 }
  0xaa   :  { %3593 = vmatpush3.bf16.msra.mxu0 %v3997_v6  ;;  %3416 = vmatprep.mubr.f32.mxu0 %v3943_v1 }
  0xab   :  { %3595 = vmatprep.subr.bf16.mxu0 %v3999_v8 }
  0xae   :  { %3597 = vmatpush3.bf16.msra.mxu0 %v3999_v8 }
  0xaf   :  { %3607 = vmatprep.subr.bf16.mxu0 %v3997_v6 }
  0xb1   :  { %3417 = vmatmul.mubr.f32.vlgmr.msra.gmra.mrb[2].mxu0 %v3943_v1 }
  0xb2   :  { %3419 = vmatprep.mubr.f32.mxu0 %v3943_v1  ;;  %3609 = vmatpush3.bf16.msra.mxu0 %v3997_v6 }
  0xb3   :  { %3611 = vmatprep.subr.bf16.mxu0 %v3999_v8 }
  0xb5   :  { %3420 = vmatmul.mubr.f32.gmra.mrb[4].mxu0 %v3943_v1 }
  0xb6   :  { %3613 = vmatpush3.bf16.msra.mxu0 %v3999_v8 }
  0xb7   :  { %3623 = vmatprep.subr.bf16.mxu0 %v3997_v6 }
 0x107   :  { %v4088_v3 = vpop.f32.mrb[0].mxu1 }
 0x108   :  { %v4090_v4 = vpop.f32.mrb[1].mxu1 }
 0x17c   :  { %v151_v26 = vpop.f32.mrb[0].mxu0 }
 0x17d   :  { %161 = vrot.lane.b32.xlu1 %v151_v26, %s3945_s0  ;;  %v3393_v27 = vpop.f32.mrb[1].mxu0  ;;  %v159_v43 = vmul.f32 %v158_v42, %v151_v26  ;;  %v4058_v44 = vrot.slane %v151_v26, %v157_v41  ;;  %v4061_v46 = vrot.slane %v151_v26, %v4004_v13 }
 0x184   :  { %v4031_v34 = vpop.f32.mrb[2].mxu0 }
 0x185   :  { %v4033_v35 = vpop.f32.mrb[3].mxu0  ;;  %v371_v48 = vmul.f32 %v4031_v34, %v4058_v44 }
 0x186   :  { %v370_v49 = vmul.f32 %v4033_v35, %v4058_v44 }
 0x188   :  { %v4038_v37 = vpop.f32.mrb[4].mxu0 }
 0x189   :  { %v4044_v39 = vpop.f32.mrb[5].mxu0  ;;  %v373_v50 = vmul.f32 %v4038_v37, %v4061_v46 }
 0x18a   :  { %v372_v51 = vmul.f32 %v4044_v39, %v4061_v46 }
 0x1ef   :  { %v162_v45 = vpop.permute.xlu1 %161 }
 0x1f0   :  { %v164_v47 = vadd.f32 %v162_v45, %v159_v43 }
 0x1f2   :  { %v4071_v52 = vrot.slane %v164_v47, %v157_v41  ;;  %v4074_v53 = vrot.slane %v164_v47, %v4004_v13 }
 0x1f4   :  { %v375_v54 = vadd.f32 %v371_v48, %v4071_v52  ;;  %v374_v55 = vadd.f32 %v370_v49, %v4071_v52  ;;  %v377_v56 = vadd.f32 %v373_v50, %v4074_v53  ;;  %v376_v57 = vadd.f32 %v372_v51, %v4074_v53  ;;  %v4094_v51 = vpop.f32.mrb[2].mxu1 }
 0x1f6   :  { %v379_v58 = vmul.f32 %v375_v54, %v4036_v36  ;;  %v378_v59 = vmul.f32 %v374_v55, %v4026_v25  ;;  %v381_v62 = vmul.f32 %v377_v56, %v4050_v40  ;;  %v380_v63 = vmul.f32 %v376_v57, %v4040_v38  ;;  %v4099_v57 = vpop.f32.mrb[3].mxu1 }
 0x1f8   :  { %v385_v60 = vsel %vm81_vm1, %v379_v58, 0.0  ;;  %v382_v61 = vsel %vm81_vm1, %v378_v59, 0.0  ;;  %v391_v0 = vsel %vm81_vm1, %v381_v62, 0.0  ;;  %v388_v1 = vsel %vm81_vm1, %v380_v63, 0.0 }
 0x1f9   :  { %386 = vadd.xlane.f32.xlu0 %v385_v60  ;;  %383 = vadd.xlane.f32.xlu1 %v382_v61 }
 0x1fd   :  { %392 = vadd.xlane.f32.xlu1 %v391_v0  ;;  %389 = vadd.xlane.f32.xlu0 %v388_v1 }
 0x286   :  { %v387_v5 = vpop.xlane.xlu0 %386  ;;  %v384_v7 = vpop.xlane.xlu1 %383 }
 0x287   :  { %v394_v9 = vmax.f32 %v384_v7, %v387_v5 }
 0x289   :  { %v395_v10 = vrot.slane %v394_v9, 4 }
 0x28a   :  { %v393_v12 = vpop.xlane.xlu1 %392  ;;  %v390_v13 = vpop.xlane.xlu0 %389 }
 0x28b   :  { %v396_v14 = vmax.f32 %v394_v9, %v395_v10  ;;  %v401_v15 = vmax.f32 %v390_v13, %v393_v12 }
 0x28d   :  { %v397_v17 = vrot.slane %v396_v14, 2  ;;  %v402_v18 = vrot.slane %v401_v15, 4 }
 0x28f   :  { %v398_v19 = vmax.f32 %v396_v14, %v397_v17  ;;  %v403_v20 = vmax.f32 %v401_v15, %v402_v18 }
 0x291   :  { %v399_v21 = vrot.slane %v398_v19, 1  ;;  %v404_v22 = vrot.slane %v403_v20, 2 }
 0x293   :  { %v400_v23 = vmax.f32 %v398_v19, %v399_v21  ;;  %v405_v24 = vmax.f32 %v403_v20, %v404_v22 }
 0x295   :  { %v408_v26 = vsub.f32 %v384_v7, %v400_v23  ;;  %v409_v27 = vsub.f32 %v387_v5, %v400_v23  ;;  %v406_v28 = vrot.slane %v405_v24, 1 }
 0x297   :  { %v412_v29 = vmul.f32 1.442695, %v408_v26  ;;  %v414_v30 = vmul.f32 1.442695, %v409_v27  ;;  %v407_v31 = vmax.f32 %v405_v24, %v406_v28 }
 0x299   :  { %3711 = vpow2.f32 %v412_v29  ;;  %v410_v32 = vsub.f32 %v390_v13, %v407_v31  ;;  %v411_v33 = vsub.f32 %v393_v12, %v407_v31 }
 0x29a   :  { %3713 = vpow2.f32 %v414_v30 }
 0x29b   :  { %v416_v41 = vmul.f32 1.442695, %v410_v32  ;;  %v418_v42 = vmul.f32 1.442695, %v411_v33 }
 0x29d   :  { %3715 = vpow2.f32 %v416_v41 }
 0x29e   :  { %3717 = vpow2.f32 %v418_v42 }
 0x2a3   :  { %v3712_v43 = vpop.eup %3711 }
 0x2a4   :  { %v3714_v45 = vpop.eup %3713  ;;  %v454_v47 = vsel %vm453_vm2, %v3712_v43, 0.0  ;;  %422 = vperm.xlu0 %3709, %v3712_v43  }
 0x2a5   :  { %v455_v48 = vsel %vm453_vm2, %v3714_v45, 0.0  ;;  %427 = vperm.xlu1 %3710, %v3714_v45   ;;  %v280_v45 = vsub.s32 2, %v4001_v11 }
 0x2a6   :  { %v456_v49 = vadd.f32 %v455_v48, %v454_v47 }
 0x2a7   :  { %v3716_v50 = vpop.eup %3715 }
 0x2a8   :  { %v3718_v54 = vpop.eup %3717  ;;  %v457_v55 = vrot.slane %v456_v49, 4  ;;  %v479_v56 = vsel %vm453_vm2, %v3716_v50, 0.0  ;;  %505 = vrot.lane.b32.xlu0 %v4038_v37, %s3945_s0 }
 0x2a9   :  { %v480_v58 = vsel %vm453_vm2, %v3718_v54, 0.0  ;;  %432 = vperm.xlu1 %3710, %v3716_v50  }
 0x2aa   :  { %v458_v59 = vadd.f32 %v457_v55, %v456_v49  ;;  %v481_v60 = vadd.f32 %v480_v58, %v479_v56 }
 0x2ac   :  { %v459_v61 = vrot.slane %v458_v59, 2  ;;  %v482_v62 = vrot.slane %v481_v60, 4 }
 0x2ad   :  { %437 = vperm.xlu1 %3710, %v3718_v54   ;;  %v4118_v54 = vrot.slane %v4009_v16, %v280_v45 }
 0x2ae   :  { %v460_v63 = vadd.f32 %v459_v61, %v458_v59  ;;  %v483_v0 = vadd.f32 %v482_v62, %v481_v60 }
 0x2b0   :  { %v461_v1 = vrot.slane %v460_v63, 1  ;;  %v484_v2 = vrot.slane %v483_v0, 2 }
 0x2b2   :  { %v462_v5 = vadd.f32 %v461_v1, %v460_v63  ;;  %v485_v7 = vadd.f32 %v484_v2, %v483_v0 }
 0x2b4   :  { %3719 = vrcp.f32 %v462_v5  ;;  %v486_v9 = vrot.slane %v485_v7, 1 }
 0x2b6   :  { %v487_v10 = vadd.f32 %v486_v9, %v485_v7 }
 0x2b8   :  { %3721 = vrcp.f32 %v487_v10 }
 0x2be   :  { %v3720_v37 = vpop.eup %3719 }
 0x2bf   :  { %466 = vperm.xlu1 %3710, %v3720_v37  }
 0x2c2   :  { %v3722_v12 = vpop.eup %3721 }
 0x2c3   :  { %491 = vperm.xlu1 %3710, %v3722_v12  }
 0x2c7   :  { %499 = vrot.lane.b32.xlu1 %v4033_v35, %s3945_s0 }
 0x2cb   :  { %501 = vrot.lane.b32.xlu1 %v4031_v34, %s3945_s0 }
 0x2cf   :  { %503 = vrot.lane.b32.xlu1 %v4044_v39, %s3945_s0 }
 0x323   :  { %v423_v13 = vpop.permute.xlu0 %422 }
 0x324   :  { %v428_v14 = vpop.permute.xlu1 %427  ;;  %v440_v15 = vmul.f32 %v423_v13, %v4090_v4 }
 0x325   :  { %v441_v17 = vmul.f32 %v4088_v3, %v428_v14 }
 0x326   :  { %v444_v18 = vsel %vm81_vm1, %v440_v15, 0.0 }
 0x327   :  { %v445_v19 = vsel %vm81_vm1, %v441_v17, 0.0  ;;  %v506_v62 = vpop.permute.xlu0 %505 }
 0x328   :  { %v446_v20 = vadd.f32 %v445_v19, %v444_v18  ;;  %v433_v21 = vpop.permute.xlu1 %432 }
 0x329   :  { %v442_v35 = vmul.f32 %v433_v21, %v4099_v57 }
 0x32a   :  { %v447_v23 = vrot.slane %v446_v20, 4 }
 0x32b   :  { %v470_v39 = vsel %vm81_vm1, %v442_v35, 0.0 }
 0x32c   :  { %v438_v22 = vpop.permute.xlu1 %437  ;;  %v448_v27 = vadd.f32 %v447_v23, %v446_v20 }
 0x32d   :  { %v443_v34 = vmul.f32 %v4094_v51, %v438_v22 }
 0x32e   :  { %v449_v29 = vrot.slane %v448_v27, 2 }
 0x32f   :  { %v471_v24 = vsel %vm81_vm1, %v443_v34, 0.0 }
 0x330   :  { %v472_v26 = vadd.f32 %v471_v24, %v470_v39  ;;  %v450_v31 = vadd.f32 %v449_v29, %v448_v27 }
 0x332   :  { %v473_v28 = vrot.slane %v472_v26, 4  ;;  %v451_v41 = vrot.slane %v450_v31, 1 }
 0x334   :  { %v474_v30 = vadd.f32 %v473_v28, %v472_v26  ;;  %v452_v47 = vadd.f32 %v451_v41, %v450_v31 }
 0x336   :  { %v475_v32 = vrot.slane %v474_v30, 2 }
 0x338   :  { %v476_v42 = vadd.f32 %v475_v32, %v474_v30 }
 0x33a   :  { %v477_v48 = vrot.slane %v476_v42, 1 }
 0x33c   :  { %v478_v56 = vadd.f32 %v477_v48, %v476_v42 }
 0x33e   :  { %v467_v33 = vpop.permute.xlu1 %466 }
 0x33f   :  { %v469_v49 = vmul.f32 %v467_v33, %v452_v47 }
 0x342   :  { %v492_v43 = vpop.permute.xlu1 %491 }
 0x343   :  { %v494_v59 = vmul.f32 %v492_v43, %v478_v56 }
 0x345   :  { %v514_v11 = vadd.f32 %v506_v62, %v494_v59 }
 0x346   :  { %v500_v50 = vpop.permute.xlu1 %499 }
 0x347   :  { %v511_v55 = vadd.f32 %v500_v50, %v469_v49  ;;  %v518_v2 = vadd.f32 %v514_v11, %v4118_v54 }
 0x349   :  { %v515_v58 = vadd.f32 %v511_v55, %v4118_v54 }
 0x34a   :  { %v502_v60 = vpop.permute.xlu1 %501 }
 0x34b   :  { %v512_v61 = vadd.f32 %v502_v60, %v469_v49  ;;  %3430 = vmatprep.mubr.msk.f32.mxu1 %vm81_vm1, %v515_v58 }
 0x34d   :  { %v516_v63 = vadd.f32 %v512_v61, %v4118_v54 }
 0x34e   :  { %v504_v0 = vpop.permute.xlu1 %503 }
 0x34f   :  { %v513_v1 = vadd.f32 %v504_v0, %v494_v59  ;;  %3431 = vmatmul.mubr.msk.f32.vlgmr.msra.gmra.mrb[4].mxu1 %vm81_vm1, %v516_v63 }
 0x350   :  { %3617 = vmatpush3.bf16.msra.mxu1 %v3997_v6 }
 0x351   :  { %v517_v16 = vadd.f32 %v513_v1, %v4118_v54  ;;  %3619 = vmatprep.subr.bf16.mxu1 %v3999_v8 }
 0x353   :  { %3433 = vmatprep.mubr.msk.f32.mxu1 %vm81_vm1, %v517_v16 }
 0x354   :  { %3434 = vmatmul.mubr.msk.f32.gmra.mrb[6].mxu1 %vm81_vm1, %v518_v2 }
 0x355   :  { %3621 = vmatpush3.bf16.msra.mxu1 %v3999_v8 }
 0x356   :  { %3631 = vmatprep.subr.bf16.mxu1 %v3997_v6 }
 0x422   :  { %v4132_v5 = vpop.f32.mrb[4].mxu1 }
 0x423   :  { %v617_v7 = vmul.f32 %v4132_v5, %v4058_v44  ;;  %v4136_v9 = vpop.f32.mrb[5].mxu1 }
 0x424   :  { %v616_v10 = vmul.f32 %v4136_v9, %v4058_v44 }
 0x425   :  { %v621_v37 = vadd.f32 %v617_v7, %v4071_v52 }
 0x426   :  { %v620_v12 = vadd.f32 %v616_v10, %v4071_v52 }
 0x427   :  { %v4142_v13 = vpop.f32.mrb[6].mxu1  ;;  %v625_v14 = vmul.f32 %v621_v37, %v4036_v36 }
 0x428   :  { %v619_v15 = vmul.f32 %v4142_v13, %v4061_v46  ;;  %v4147_v17 = vpop.f32.mrb[7].mxu1  ;;  %v624_v18 = vmul.f32 %v620_v12, %v4026_v25 }
 0x429   :  { %v618_v19 = vmul.f32 %v4147_v17, %v4061_v46  ;;  %v631_v20 = vsel %vm81_vm1, %v625_v14, 0.0 }
 0x42a   :  { %v623_v21 = vadd.f32 %v619_v15, %v4074_v53  ;;  %632 = vadd.xlane.f32.xlu0 %v631_v20  ;;  %v628_v35 = vsel %vm81_vm1, %v624_v18, 0.0 }
 0x42b   :  { %v622_v22 = vadd.f32 %v618_v19, %v4074_v53  ;;  %629 = vadd.xlane.f32.xlu1 %v628_v35 }
 0x42c   :  { %v627_v34 = vmul.f32 %v623_v21, %v4050_v40 }
 0x42d   :  { %v626_v23 = vmul.f32 %v622_v22, %v4040_v38 }
 0x42e   :  { %v637_v39 = vsel %vm81_vm1, %v627_v34, 0.0 }
 0x42f   :  { %638 = vadd.xlane.f32.xlu1 %v637_v39  ;;  %v634_v24 = vsel %vm81_vm1, %v626_v23, 0.0 }
 0x430   :  { %635 = vadd.xlane.f32.xlu0 %v634_v24 }
 0x4b7   :  { %v633_v26 = vpop.xlane.xlu0 %632 }
 0x4b8   :  { %v630_v27 = vpop.xlane.xlu1 %629 }
 0x4b9   :  { %v640_v28 = vmax.f32 %v630_v27, %v633_v26 }
 0x4bb   :  { %v641_v29 = vrot.slane %v640_v28, 4 }
 0x4bc   :  { %v639_v30 = vpop.xlane.xlu1 %638 }
 0x4bd   :  { %v642_v31 = vmax.f32 %v640_v28, %v641_v29  ;;  %v636_v32 = vpop.xlane.xlu0 %635 }
 0x4be   :  { %v647_v33 = vmax.f32 %v636_v32, %v639_v30 }
 0x4bf   :  { %v643_v41 = vrot.slane %v642_v31, 2 }
 0x4c0   :  { %v648_v42 = vrot.slane %v647_v33, 4 }
 0x4c1   :  { %v644_v43 = vmax.f32 %v642_v31, %v643_v41 }
 0x4c2   :  { %v649_v45 = vmax.f32 %v647_v33, %v648_v42 }
 0x4c3   :  { %v645_v47 = vrot.slane %v644_v43, 1 }
 0x4c4   :  { %v650_v48 = vrot.slane %v649_v45, 2 }
 0x4c5   :  { %v646_v49 = vmax.f32 %v644_v43, %v645_v47 }
 0x4c6   :  { %v651_v50 = vmax.f32 %v649_v45, %v650_v48 }
 0x4c7   :  { %v654_v55 = vsub.f32 %v630_v27, %v646_v49  ;;  %v655_v56 = vsub.f32 %v633_v26, %v646_v49 }
 0x4c8   :  { %v652_v58 = vrot.slane %v651_v50, 1 }
 0x4c9   :  { %v658_v59 = vmul.f32 1.442695, %v654_v55  ;;  %v660_v60 = vmul.f32 1.442695, %v655_v56 }
 0x4ca   :  { %v653_v61 = vmax.f32 %v651_v50, %v652_v58 }
 0x4cb   :  { %3723 = vpow2.f32 %v658_v59 }
 0x4cc   :  { %3725 = vpow2.f32 %v660_v60  ;;  %v656_v62 = vsub.f32 %v636_v32, %v653_v61  ;;  %v657_v63 = vsub.f32 %v639_v30, %v653_v61 }
 0x4ce   :  { %v662_v11 = vmul.f32 1.442695, %v656_v62  ;;  %v664_v0 = vmul.f32 1.442695, %v657_v63 }
 0x4d0   :  { %3727 = vpow2.f32 %v662_v11 }
 0x4d1   :  { %3729 = vpow2.f32 %v664_v0 }
 0x4d5   :  { %v3724_v1 = vpop.eup %3723 }
 0x4d6   :  { %v3726_v16 = vpop.eup %3725  ;;  %v699_v2 = vsel %vm453_vm2, %v3724_v1, 0.0  ;;  %668 = vperm.xlu0 %3709, %v3724_v1  }
 0x4d7   :  { %v700_v7 = vsel %vm453_vm2, %v3726_v16, 0.0  ;;  %673 = vperm.xlu1 %3710, %v3726_v16  }
 0x4d8   :  { %v701_v10 = vadd.f32 %v700_v7, %v699_v2 }
 0x4da   :  { %v3728_v37 = vpop.eup %3727  ;;  %v702_v12 = vrot.slane %v701_v10, 4 }
 0x4db   :  { %v3730_v14 = vpop.eup %3729  ;;  %v724_v15 = vsel %vm453_vm2, %v3728_v37, 0.0  ;;  %678 = vperm.xlu1 %3710, %v3728_v37  }
 0x4dc   :  { %v703_v18 = vadd.f32 %v702_v12, %v701_v10  ;;  %v725_v19 = vsel %vm453_vm2, %v3730_v14, 0.0  ;;  %683 = vperm.xlu0 %3709, %v3730_v14  }
 0x4dd   :  { %v726_v20 = vadd.f32 %v725_v19, %v724_v15 }
 0x4de   :  { %v704_v21 = vrot.slane %v703_v18, 2 }
 0x4df   :  { %v727_v35 = vrot.slane %v726_v20, 4 }
 0x4e0   :  { %v705_v22 = vadd.f32 %v704_v21, %v703_v18 }
 0x4e1   :  { %v728_v34 = vadd.f32 %v727_v35, %v726_v20 }
 0x4e2   :  { %v706_v23 = vrot.slane %v705_v22, 1 }
 0x4e3   :  { %v729_v39 = vrot.slane %v728_v34, 2 }
 0x4e4   :  { %v707_v24 = vadd.f32 %v706_v23, %v705_v22 }
 0x4e5   :  { %v730_v26 = vadd.f32 %v729_v39, %v728_v34 }
 0x4e6   :  { %3731 = vrcp.f32 %v707_v24 }
 0x4e7   :  { %v731_v27 = vrot.slane %v730_v26, 1 }
 0x4e9   :  { %v732_v28 = vadd.f32 %v731_v27, %v730_v26 }
 0x4eb   :  { %3733 = vrcp.f32 %v732_v28 }
 0x4f0   :  { %v3732_v29 = vpop.eup %3731 }
 0x4f1   :  { %711 = vperm.xlu1 %3710, %v3732_v29  }
 0x4f5   :  { %v3734_v30 = vpop.eup %3733  ;;  %744 = vrot.lane.b32.xlu1 %v4136_v9, %s3945_s0 }
 0x4f6   :  { %736 = vperm.xlu0 %3709, %v3734_v30  }
 0x4f9   :  { %748 = vrot.lane.b32.xlu1 %v4147_v17, %s3945_s0 }
 0x4fa   :  { %746 = vrot.lane.b32.xlu0 %v4132_v5, %s3945_s0 }
 0x4fe   :  { %750 = vrot.lane.b32.xlu0 %v4142_v13, %s3945_s0 }
 0x555   :  { %v669_v31 = vpop.permute.xlu0 %668 }
 0x556   :  { %v674_v32 = vpop.permute.xlu1 %673  ;;  %v686_v33 = vmul.f32 %v669_v31, %v4090_v4 }
 0x557   :  { %v687_v41 = vmul.f32 %v4088_v3, %v674_v32 }
 0x558   :  { %v690_v42 = vsel %vm81_vm1, %v686_v33, 0.0 }
 0x559   :  { %v691_v9 = vsel %vm81_vm1, %v687_v41, 0.0 }
 0x55a   :  { %v692_v43 = vadd.f32 %v691_v9, %v690_v42  ;;  %v679_v45 = vpop.permute.xlu1 %678 }
 0x55b   :  { %v688_v17 = vmul.f32 %v679_v45, %v4099_v57  ;;  %v684_v47 = vpop.permute.xlu0 %683 }
 0x55c   :  { %v689_v5 = vmul.f32 %v4094_v51, %v684_v47  ;;  %v693_v48 = vrot.slane %v692_v43, 4 }
 0x55d   :  { %v715_v13 = vsel %vm81_vm1, %v688_v17, 0.0 }
 0x55e   :  { %v716_v49 = vsel %vm81_vm1, %v689_v5, 0.0  ;;  %v694_v55 = vadd.f32 %v693_v48, %v692_v43 }
 0x55f   :  { %v717_v50 = vadd.f32 %v716_v49, %v715_v13 }
 0x560   :  { %v695_v59 = vrot.slane %v694_v55, 2 }
 0x561   :  { %v718_v56 = vrot.slane %v717_v50, 4 }
 0x562   :  { %v696_v61 = vadd.f32 %v695_v59, %v694_v55 }
 0x563   :  { %v719_v58 = vadd.f32 %v718_v56, %v717_v50 }
 0x564   :  { %v697_v63 = vrot.slane %v696_v61, 1 }
 0x565   :  { %v720_v60 = vrot.slane %v719_v58, 2 }
 0x566   :  { %v698_v1 = vadd.f32 %v697_v63, %v696_v61 }
 0x567   :  { %v721_v62 = vadd.f32 %v720_v60, %v719_v58 }
 0x569   :  { %v722_v0 = vrot.slane %v721_v62, 1 }
 0x56b   :  { %v723_v7 = vadd.f32 %v722_v0, %v721_v62 }
 0x570   :  { %v712_v11 = vpop.permute.xlu1 %711 }
 0x571   :  { %v714_v16 = vmul.f32 %v712_v11, %v698_v1 }
 0x574   :  { %v745_v2 = vpop.permute.xlu1 %744 }
 0x575   :  { %v756_v10 = vadd.f32 %v745_v2, %v714_v16  ;;  %v737_v37 = vpop.permute.xlu0 %736 }
 0x576   :  { %v739_v12 = vmul.f32 %v737_v37, %v723_v7 }
 0x577   :  { %v760_v14 = vadd.f32 %v756_v10, %v4118_v54 }
 0x578   :  { %v749_v15 = vpop.permute.xlu1 %748 }
 0x579   :  { %v758_v18 = vadd.f32 %v749_v15, %v739_v12  ;;  %3444 = vmatprep.mubr.msk.f32.mxu0 %vm81_vm1, %v760_v14  ;;  %v747_v19 = vpop.permute.xlu0 %746 }
 0x57a   :  { %v757_v20 = vadd.f32 %v747_v19, %v714_v16 }
 0x57b   :  { %v762_v35 = vadd.f32 %v758_v18, %v4118_v54 }
 0x57c   :  { %v761_v21 = vadd.f32 %v757_v20, %v4118_v54 }
 0x57d   :  { %v751_v22 = vpop.permute.xlu0 %750 }
 0x57e   :  { %v759_v34 = vadd.f32 %v751_v22, %v739_v12  ;;  %3445 = vmatmul.mubr.msk.f32.vlgmr.msra.gmra.mrb[6].mxu0 %vm81_vm1, %v761_v21 }
 0x57f   :  { %3447 = vmatprep.mubr.msk.f32.mxu0 %vm81_vm1, %v762_v35  ;;  %3625 = vmatpush3.bf16.msra.mxu0 %v3997_v6 }
 0x580   :  { %v763_v23 = vadd.f32 %v759_v34, %v4118_v54  ;;  %3627 = vmatprep.subr.bf16.mxu0 %v3999_v8 }
 0x582   :  { %3448 = vmatmul.mubr.msk.f32.gmra.mrb[8].mxu0 %vm81_vm1, %v763_v23 }
 0x583   :  { %3629 = vmatpush3.bf16.msra.mxu0 %v3999_v8 }
 0x584   :  { %3639 = vmatprep.subr.bf16.mxu0 %v3997_v6 }
 0x651   :  { %v4192_v39 = vpop.f32.mrb[6].mxu0 }
 0x652   :  { %v862_v24 = vmul.f32 %v4192_v39, %v4058_v44  ;;  %v4196_v26 = vpop.f32.mrb[7].mxu0 }
 0x653   :  { %v861_v27 = vmul.f32 %v4196_v26, %v4058_v44 }
 0x654   :  { %v866_v28 = vadd.f32 %v862_v24, %v4071_v52 }
 0x655   :  { %v865_v29 = vadd.f32 %v861_v27, %v4071_v52  ;;  %v4202_v30 = vpop.f32.mrb[8].mxu0 }
 0x656   :  { %v864_v31 = vmul.f32 %v4202_v30, %v4061_v46  ;;  %v4206_v32 = vpop.f32.mrb[9].mxu0  ;;  %v870_v33 = vmul.f32 %v866_v28, %v4036_v36 }
 0x657   :  { %v863_v41 = vmul.f32 %v4206_v32, %v4061_v46  ;;  %v869_v42 = vmul.f32 %v865_v29, %v4026_v25 }
 0x658   :  { %v868_v9 = vadd.f32 %v864_v31, %v4074_v53  ;;  %v876_v43 = vsel %vm81_vm1, %v870_v33, 0.0 }
 0x659   :  { %v867_v45 = vadd.f32 %v863_v41, %v4074_v53  ;;  %877 = vadd.xlane.f32.xlu0 %v876_v43  ;;  %v873_v17 = vsel %vm81_vm1, %v869_v42, 0.0 }
 0x65a   :  { %874 = vadd.xlane.f32.xlu1 %v873_v17  ;;  %v872_v47 = vmul.f32 %v868_v9, %v4050_v40 }
 0x65b   :  { %v871_v5 = vmul.f32 %v867_v45, %v4040_v38 }
 0x65c   :  { %v882_v48 = vsel %vm81_vm1, %v872_v47, 0.0 }
 0x65d   :  { %v879_v13 = vsel %vm81_vm1, %v871_v5, 0.0 }
 0x65e   :  { %883 = vadd.xlane.f32.xlu1 %v882_v48  ;;  %880 = vadd.xlane.f32.xlu0 %v879_v13 }
 0x6e6   :  { %v878_v49 = vpop.xlane.xlu0 %877 }
 0x6e7   :  { %v875_v50 = vpop.xlane.xlu1 %874 }
 0x6e8   :  { %v885_v55 = vmax.f32 %v875_v50, %v878_v49 }
 0x6ea   :  { %v886_v56 = vrot.slane %v885_v55, 4 }
 0x6eb   :  { %v884_v58 = vpop.xlane.xlu1 %883  ;;  %v881_v59 = vpop.xlane.xlu0 %880 }
 0x6ec   :  { %v887_v60 = vmax.f32 %v885_v55, %v886_v56  ;;  %v892_v61 = vmax.f32 %v881_v59, %v884_v58 }
 0x6ee   :  { %v888_v62 = vrot.slane %v887_v60, 2  ;;  %v893_v63 = vrot.slane %v892_v61, 4 }
 0x6f0   :  { %v889_v11 = vmax.f32 %v887_v60, %v888_v62  ;;  %v894_v0 = vmax.f32 %v892_v61, %v893_v63 }
 0x6f2   :  { %v890_v1 = vrot.slane %v889_v11, 1  ;;  %v895_v16 = vrot.slane %v894_v0, 2 }
 0x6f4   :  { %v891_v2 = vmax.f32 %v889_v11, %v890_v1  ;;  %v896_v7 = vmax.f32 %v894_v0, %v895_v16 }
 0x6f6   :  { %v899_v10 = vsub.f32 %v875_v50, %v891_v2  ;;  %v900_v37 = vsub.f32 %v878_v49, %v891_v2  ;;  %v897_v12 = vrot.slane %v896_v7, 1 }
 0x6f8   :  { %v903_v14 = vmul.f32 1.442695, %v899_v10  ;;  %v905_v15 = vmul.f32 1.442695, %v900_v37  ;;  %v898_v18 = vmax.f32 %v896_v7, %v897_v12 }
 0x6fa   :  { %3735 = vpow2.f32 %v903_v14  ;;  %v901_v19 = vsub.f32 %v881_v59, %v898_v18  ;;  %v902_v20 = vsub.f32 %v884_v58, %v898_v18 }
 0x6fb   :  { %3737 = vpow2.f32 %v905_v15 }
 0x6fc   :  { %v907_v21 = vmul.f32 1.442695, %v901_v19  ;;  %v909_v35 = vmul.f32 1.442695, %v902_v20 }
 0x6fe   :  { %3739 = vpow2.f32 %v907_v21 }
 0x6ff   :  { %3741 = vpow2.f32 %v909_v35 }
 0x704   :  { %v3736_v22 = vpop.eup %3735 }
 0x705   :  { %v3738_v34 = vpop.eup %3737  ;;  %v944_v23 = vsel %vm453_vm2, %v3736_v22, 0.0  ;;  %913 = vperm.xlu0 %3709, %v3736_v22  }
 0x706   :  { %v945_v24 = vsel %vm453_vm2, %v3738_v34, 0.0  ;;  %918 = vperm.xlu1 %3710, %v3738_v34  }
 0x707   :  { %v946_v27 = vadd.f32 %v945_v24, %v944_v23 }
 0x708   :  { %v3740_v28 = vpop.eup %3739 }
 0x709   :  { %v3742_v29 = vpop.eup %3741  ;;  %v947_v31 = vrot.slane %v946_v27, 4  ;;  %v969_v33 = vsel %vm453_vm2, %v3740_v28, 0.0 }
 0x70a   :  { %v970_v41 = vsel %vm453_vm2, %v3742_v29, 0.0  ;;  %928 = vperm.xlu0 %3709, %v3742_v29   ;;  %923 = vperm.xlu1 %3710, %v3740_v28  }
 0x70b   :  { %v948_v42 = vadd.f32 %v947_v31, %v946_v27  ;;  %v971_v9 = vadd.f32 %v970_v41, %v969_v33 }
 0x70d   :  { %v949_v43 = vrot.slane %v948_v42, 2  ;;  %v972_v45 = vrot.slane %v971_v9, 4 }
 0x70f   :  { %v950_v17 = vadd.f32 %v949_v43, %v948_v42  ;;  %v973_v47 = vadd.f32 %v972_v45, %v971_v9 }
 0x711   :  { %v951_v5 = vrot.slane %v950_v17, 1  ;;  %v974_v48 = vrot.slane %v973_v47, 2 }
 0x713   :  { %v952_v13 = vadd.f32 %v951_v5, %v950_v17  ;;  %v975_v49 = vadd.f32 %v974_v48, %v973_v47 }
 0x715   :  { %3743 = vrcp.f32 %v952_v13  ;;  %v976_v50 = vrot.slane %v975_v49, 1 }
 0x717   :  { %v977_v55 = vadd.f32 %v976_v50, %v975_v49 }
 0x719   :  { %3745 = vrcp.f32 %v977_v55 }
 0x71f   :  { %v3744_v56 = vpop.eup %3743 }
 0x720   :  { %956 = vperm.xlu1 %3710, %v3744_v56  }
 0x723   :  { %v3746_v58 = vpop.eup %3745 }
 0x724   :  { %989 = vrot.lane.b32.xlu1 %v4196_v26, %s3945_s0  ;;  %981 = vperm.xlu0 %3709, %v3746_v58  }
 0x728   :  { %993 = vrot.lane.b32.xlu1 %v4206_v32, %s3945_s0  ;;  %991 = vrot.lane.b32.xlu0 %v4192_v39, %s3945_s0 }
 0x72c   :  { %995 = vrot.lane.b32.xlu0 %v4202_v30, %s3945_s0 }
 0x784   :  { %v914_v59 = vpop.permute.xlu0 %913 }
 0x785   :  { %v919_v60 = vpop.permute.xlu1 %918  ;;  %v931_v61 = vmul.f32 %v914_v59, %v4090_v4 }
 0x786   :  { %v932_v62 = vmul.f32 %v4088_v3, %v919_v60 }
 0x787   :  { %v935_v63 = vsel %vm81_vm1, %v931_v61, 0.0 }
 0x788   :  { %v936_v26 = vsel %vm81_vm1, %v932_v62, 0.0 }
 0x789   :  { %v937_v11 = vadd.f32 %v936_v26, %v935_v63  ;;  %v924_v0 = vpop.permute.xlu1 %923  ;;  %v929_v1 = vpop.permute.xlu0 %928 }
 0x78a   :  { %v933_v32 = vmul.f32 %v924_v0, %v4099_v57  ;;  %v934_v39 = vmul.f32 %v4094_v51, %v929_v1 }
 0x78b   :  { %v938_v16 = vrot.slane %v937_v11, 4 }
 0x78c   :  { %v960_v30 = vsel %vm81_vm1, %v933_v32, 0.0  ;;  %v961_v2 = vsel %vm81_vm1, %v934_v39, 0.0 }
 0x78d   :  { %v962_v7 = vadd.f32 %v961_v2, %v960_v30  ;;  %v939_v10 = vadd.f32 %v938_v16, %v937_v11 }
 0x78f   :  { %v963_v37 = vrot.slane %v962_v7, 4  ;;  %v940_v14 = vrot.slane %v939_v10, 2 }
 0x791   :  { %v964_v12 = vadd.f32 %v963_v37, %v962_v7  ;;  %v941_v15 = vadd.f32 %v940_v14, %v939_v10 }
 0x793   :  { %v965_v18 = vrot.slane %v964_v12, 2  ;;  %v942_v19 = vrot.slane %v941_v15, 1 }
 0x795   :  { %v966_v20 = vadd.f32 %v965_v18, %v964_v12  ;;  %v943_v35 = vadd.f32 %v942_v19, %v941_v15 }
 0x797   :  { %v967_v22 = vrot.slane %v966_v20, 1 }
 0x799   :  { %v968_v28 = vadd.f32 %v967_v22, %v966_v20 }
 0x79f   :  { %v957_v21 = vpop.permute.xlu1 %956 }
 0x7a0   :  { %v959_v34 = vmul.f32 %v957_v21, %v943_v35 }
 0x7a3   :  { %v990_v23 = vpop.permute.xlu1 %989  ;;  %v982_v24 = vpop.permute.xlu0 %981 }
 0x7a4   :  { %v1001_v27 = vadd.f32 %v990_v23, %v959_v34  ;;  %v984_v31 = vmul.f32 %v982_v24, %v968_v28 }
 0x7a6   :  { %v1005_v29 = vadd.f32 %v1001_v27, %v4118_v54 }
 0x7a7   :  { %v994_v33 = vpop.permute.xlu1 %993  ;;  %v992_v41 = vpop.permute.xlu0 %991 }
 0x7a8   :  { %v1003_v42 = vadd.f32 %v994_v33, %v984_v31  ;;  %v1002_v9 = vadd.f32 %v992_v41, %v959_v34  ;;  %3458 = vmatprep.mubr.msk.f32.mxu1 %vm81_vm1, %v1005_v29 }
 0x7aa   :  { %v1007_v43 = vadd.f32 %v1003_v42, %v4118_v54  ;;  %v1006_v45 = vadd.f32 %v1002_v9, %v4118_v54 }
 0x7ab   :  { %v996_v17 = vpop.permute.xlu0 %995 }
 0x7ac   :  { %v1004_v47 = vadd.f32 %v996_v17, %v984_v31  ;;  %3459 = vmatmul.mubr.msk.f32.vlgmr.msra.gmra.mrb[8].mxu1 %vm81_vm1, %v1006_v45 }
 0x7ad   :  { %3461 = vmatprep.mubr.msk.f32.mxu1 %vm81_vm1, %v1007_v43  ;;  %3633 = vmatpush3.bf16.msra.mxu1 %v3997_v6 }
 0x7ae   :  { %v1008_v5 = vadd.f32 %v1004_v47, %v4118_v54  ;;  %3635 = vmatprep.subr.bf16.mxu1 %v3999_v8 }
 0x7b0   :  { %3462 = vmatmul.mubr.msk.f32.gmra.mrb[10].mxu1 %vm81_vm1, %v1008_v5 }
 0x7b1   :  { %3637 = vmatpush3.bf16.msra.mxu1 %v3999_v8 }
 0x7b2   :  { %3647 = vmatprep.subr.bf16.mxu1 %v3997_v6 }
 0x87f   :  { %v4252_v48 = vpop.f32.mrb[8].mxu1 }
 0x880   :  { %v1107_v13 = vmul.f32 %v4252_v48, %v4058_v44  ;;  %v4256_v49 = vpop.f32.mrb[9].mxu1 }
 0x881   :  { %v1106_v50 = vmul.f32 %v4256_v49, %v4058_v44 }
 0x882   :  { %v1111_v55 = vadd.f32 %v1107_v13, %v4071_v52 }
 0x883   :  { %v1110_v56 = vadd.f32 %v1106_v50, %v4071_v52  ;;  %v4262_v58 = vpop.f32.mrb[10].mxu1 }
 0x884   :  { %v1109_v59 = vmul.f32 %v4262_v58, %v4061_v46  ;;  %v4266_v60 = vpop.f32.mrb[11].mxu1  ;;  %v1115_v61 = vmul.f32 %v1111_v55, %v4036_v36 }
 0x885   :  { %v1108_v62 = vmul.f32 %v4266_v60, %v4061_v46  ;;  %v1114_v63 = vmul.f32 %v1110_v56, %v4026_v25 }
 0x886   :  { %v1113_v26 = vadd.f32 %v1109_v59, %v4074_v53  ;;  %v1121_v11 = vsel %vm81_vm1, %v1115_v61, 0.0 }
 0x887   :  { %v1112_v0 = vadd.f32 %v1108_v62, %v4074_v53  ;;  %1122 = vadd.xlane.f32.xlu0 %v1121_v11  ;;  %v1118_v1 = vsel %vm81_vm1, %v1114_v63, 0.0 }
 0x888   :  { %1119 = vadd.xlane.f32.xlu1 %v1118_v1  ;;  %v1117_v32 = vmul.f32 %v1113_v26, %v4050_v40 }
 0x889   :  { %v1116_v39 = vmul.f32 %v1112_v0, %v4040_v38 }
 0x88a   :  { %v1127_v36 = vsel %vm81_vm1, %v1117_v32, 0.0 }
 0x88b   :  { %v1124_v16 = vsel %vm81_vm1, %v1116_v39, 0.0 }
 0x88c   :  { %1128 = vadd.xlane.f32.xlu1 %v1127_v36  ;;  %1125 = vadd.xlane.f32.xlu0 %v1124_v16 }
 0x914   :  { %v1123_v25 = vpop.xlane.xlu0 %1122 }
 0x915   :  { %v1120_v30 = vpop.xlane.xlu1 %1119 }
 0x916   :  { %v1130_v2 = vmax.f32 %v1120_v30, %v1123_v25 }
 0x918   :  { %v1131_v7 = vrot.slane %v1130_v2, 4 }
 0x919   :  { %v1129_v10 = vpop.xlane.xlu1 %1128  ;;  %v1126_v37 = vpop.xlane.xlu0 %1125 }
 0x91a   :  { %v1132_v12 = vmax.f32 %v1130_v2, %v1131_v7  ;;  %v1137_v14 = vmax.f32 %v1126_v37, %v1129_v10 }
 0x91c   :  { %v1133_v15 = vrot.slane %v1132_v12, 2  ;;  %v1138_v18 = vrot.slane %v1137_v14, 4 }
 0x91e   :  { %v1134_v19 = vmax.f32 %v1132_v12, %v1133_v15  ;;  %v1139_v40 = vmax.f32 %v1137_v14, %v1138_v18 }
 0x920   :  { %v1135_v20 = vrot.slane %v1134_v19, 1  ;;  %v1140_v38 = vrot.slane %v1139_v40, 2 }
 0x922   :  { %v1136_v21 = vmax.f32 %v1134_v19, %v1135_v20  ;;  %v1141_v35 = vmax.f32 %v1139_v40, %v1140_v38 }
 0x924   :  { %v1144_v22 = vsub.f32 %v1120_v30, %v1136_v21  ;;  %v1145_v34 = vsub.f32 %v1123_v25, %v1136_v21  ;;  %v1142_v23 = vrot.slane %v1141_v35, 1 }
 0x926   :  { %v1148_v24 = vmul.f32 1.442695, %v1144_v22  ;;  %v1150_v27 = vmul.f32 1.442695, %v1145_v34  ;;  %v1143_v28 = vmax.f32 %v1141_v35, %v1142_v23 }
 0x928   :  { %3747 = vpow2.f32 %v1148_v24  ;;  %v1146_v29 = vsub.f32 %v1126_v37, %v1143_v28  ;;  %v1147_v31 = vsub.f32 %v1129_v10, %v1143_v28 }
 0x929   :  { %3749 = vpow2.f32 %v1150_v27 }
 0x92a   :  { %v1152_v33 = vmul.f32 1.442695, %v1146_v29  ;;  %v1154_v41 = vmul.f32 1.442695, %v1147_v31 }
 0x92c   :  { %3751 = vpow2.f32 %v1152_v33 }
 0x92d   :  { %3753 = vpow2.f32 %v1154_v41 }
 0x932   :  { %v3748_v42 = vpop.eup %3747 }
 0x933   :  { %v3750_v9 = vpop.eup %3749  ;;  %v1189_v43 = vsel %vm453_vm2, %v3748_v42, 0.0  ;;  %1158 = vperm.xlu0 %3709, %v3748_v42  }
 0x934   :  { %v1190_v45 = vsel %vm453_vm2, %v3750_v9, 0.0  ;;  %1163 = vperm.xlu1 %3710, %v3750_v9  }
 0x935   :  { %v1191_v17 = vadd.f32 %v1190_v45, %v1189_v43 }
 0x936   :  { %v3752_v47 = vpop.eup %3751 }
 0x937   :  { %v3754_v5 = vpop.eup %3753  ;;  %v1192_v13 = vrot.slane %v1191_v17, 4  ;;  %v1214_v50 = vsel %vm453_vm2, %v3752_v47, 0.0 }
 0x938   :  { %v1215_v55 = vsel %vm453_vm2, %v3754_v5, 0.0  ;;  %1173 = vperm.xlu0 %3709, %v3754_v5   ;;  %1168 = vperm.xlu1 %3710, %v3752_v47  }
 0x939   :  { %v1193_v56 = vadd.f32 %v1192_v13, %v1191_v17  ;;  %v1216_v59 = vadd.f32 %v1215_v55, %v1214_v50 }
 0x93b   :  { %v1194_v61 = vrot.slane %v1193_v56, 2  ;;  %v1217_v62 = vrot.slane %v1216_v59, 4 }
 0x93d   :  { %v1195_v63 = vadd.f32 %v1194_v61, %v1193_v56  ;;  %v1218_v26 = vadd.f32 %v1217_v62, %v1216_v59 }
 0x93f   :  { %v1196_v11 = vrot.slane %v1195_v63, 1  ;;  %v1219_v0 = vrot.slane %v1218_v26, 2 }
 0x941   :  { %v1197_v1 = vadd.f32 %v1196_v11, %v1195_v63  ;;  %v1220_v32 = vadd.f32 %v1219_v0, %v1218_v26 }
 0x943   :  { %3755 = vrcp.f32 %v1197_v1  ;;  %v1221_v39 = vrot.slane %v1220_v32, 1 }
 0x945   :  { %v1222_v36 = vadd.f32 %v1221_v39, %v1220_v32 }
 0x947   :  { %3757 = vrcp.f32 %v1222_v36 }
 0x94d   :  { %v3756_v16 = vpop.eup %3755 }
 0x94e   :  { %1201 = vperm.xlu1 %3710, %v3756_v16   ;;  %v4328_v16 = vld [vmem:[#allocation2 + $0x8] sm:$0xff] }
 0x951   :  { %v3758_v25 = vpop.eup %3757 }
 0x952   :  { %1234 = vrot.lane.b32.xlu1 %v4256_v49, %s3945_s0  ;;  %1226 = vperm.xlu0 %3709, %v3758_v25  }
 0x956   :  { %1238 = vrot.lane.b32.xlu1 %v4266_v60, %s3945_s0  ;;  %1236 = vrot.lane.b32.xlu0 %v4252_v48, %s3945_s0 }
 0x95a   :  { %1240 = vrot.lane.b32.xlu0 %v4262_v58, %s3945_s0 }
 0x9b2   :  { %v1159_v30 = vpop.permute.xlu0 %1158 }
 0x9b3   :  { %v1164_v2 = vpop.permute.xlu1 %1163  ;;  %v1176_v7 = vmul.f32 %v1159_v30, %v4090_v4 }
 0x9b4   :  { %v1177_v10 = vmul.f32 %v4088_v3, %v1164_v2  ;;  %v4333_v2 = vld [vmem:[#allocation2] sm:$0xff] }
 0x9b5   :  { %v1180_v37 = vsel %vm81_vm1, %v1176_v7, 0.0 }
 0x9b6   :  { %v1181_v49 = vsel %vm81_vm1, %v1177_v10, 0.0 }
 0x9b7   :  { %v1182_v12 = vadd.f32 %v1181_v49, %v1180_v37  ;;  %v1169_v14 = vpop.permute.xlu1 %1168  ;;  %v1174_v15 = vpop.permute.xlu0 %1173 }
 0x9b8   :  { %v1178_v60 = vmul.f32 %v1169_v14, %v4099_v57  ;;  %v1179_v48 = vmul.f32 %v4094_v51, %v1174_v15  ;;  %v4340_v14 = vld [vmem:[#allocation2 + $0x18] sm:$0xff] }
 0x9b9   :  { %v1183_v18 = vrot.slane %v1182_v12, 4 }
 0x9ba   :  { %v1205_v58 = vsel %vm81_vm1, %v1178_v60, 0.0  ;;  %v1206_v19 = vsel %vm81_vm1, %v1179_v48, 0.0  ;;  %v4343_v60 = vld [vmem:[#allocation2 + $0x10] sm:$0xff] }
 0x9bb   :  { %v1207_v40 = vadd.f32 %v1206_v19, %v1205_v58  ;;  %v1184_v20 = vadd.f32 %v1183_v18, %v1182_v12 }
 0x9bd   :  { %v1208_v38 = vrot.slane %v1207_v40, 4  ;;  %v1185_v35 = vrot.slane %v1184_v20, 2 }
 0x9bf   :  { %v1209_v21 = vadd.f32 %v1208_v38, %v1207_v40  ;;  %v1186_v22 = vadd.f32 %v1185_v35, %v1184_v20 }
 0x9c1   :  { %v1210_v34 = vrot.slane %v1209_v21, 2  ;;  %v1187_v23 = vrot.slane %v1186_v22, 1 }
 0x9c3   :  { %v1211_v24 = vadd.f32 %v1210_v34, %v1209_v21  ;;  %v1188_v28 = vadd.f32 %v1187_v23, %v1186_v22 }
 0x9c5   :  { %v1212_v29 = vrot.slane %v1211_v24, 1 }
 0x9c7   :  { %v1213_v9 = vadd.f32 %v1212_v29, %v1211_v24 }
 0x9cd   :  { %v1202_v27 = vpop.permute.xlu1 %1201 }
 0x9ce   :  { %v1204_v31 = vmul.f32 %v1202_v27, %v1188_v28 }
 0x9d1   :  { %v1235_v33 = vpop.permute.xlu1 %1234  ;;  %v1227_v41 = vpop.permute.xlu0 %1226 }
 0x9d2   :  { %v1246_v42 = vadd.f32 %v1235_v33, %v1204_v31  ;;  %v1229_v45 = vmul.f32 %v1227_v41, %v1213_v9 }
 0x9d4   :  { %v1250_v43 = vadd.f32 %v1246_v42, %v4118_v54 }
 0x9d5   :  { %v1239_v17 = vpop.permute.xlu1 %1238  ;;  %v1237_v47 = vpop.permute.xlu0 %1236 }
 0x9d6   :  { %v1248_v5 = vadd.f32 %v1239_v17, %v1229_v45  ;;  %v1247_v13 = vadd.f32 %v1237_v47, %v1204_v31  ;;  %3472 = vmatprep.mubr.msk.f32.mxu0 %vm81_vm1, %v1250_v43 }
 0x9d8   :  { %v1252_v50 = vadd.f32 %v1248_v5, %v4118_v54  ;;  %v1251_v55 = vadd.f32 %v1247_v13, %v4118_v54 }
 0x9d9   :  { %v1241_v56 = vpop.permute.xlu0 %1240 }
 0x9da   :  { %v1249_v59 = vadd.f32 %v1241_v56, %v1229_v45  ;;  %3473 = vmatmul.mubr.msk.f32.vlgmr.msra.gmra.mrb[10].mxu0 %vm81_vm1, %v1251_v55 }
 0x9db   :  { %3475 = vmatprep.mubr.msk.f32.mxu0 %vm81_vm1, %v1252_v50  ;;  %3641 = vmatpush3.bf16.msra.mxu0 %v3997_v6 }
 0x9dc   :  { %v1253_v61 = vadd.f32 %v1249_v59, %v4118_v54  ;;  %3643 = vmatprep.subr.bf16.mxu0 %v3999_v8 }
 0x9de   :  { %3476 = vmatmul.mubr.msk.f32.gmra.mrb[12].mxu0 %vm81_vm1, %v1253_v61 }
 0x9df   :  { %3645 = vmatpush3.bf16.msra.mxu0 %v3999_v8 }
 0x9e0   :  { %3655 = vmatprep.subr.bf16.mxu0 %v3997_v6 }
 0xaad   :  { %v4312_v62 = vpop.f32.mrb[10].mxu0 }
 0xaae   :  { %v1352_v63 = vmul.f32 %v4312_v62, %v4058_v44  ;;  %v4316_v26 = vpop.f32.mrb[11].mxu0 }
 0xaaf   :  { %v1351_v11 = vmul.f32 %v4316_v26, %v4058_v44 }
 0xab0   :  { %v1356_v0 = vadd.f32 %v1352_v63, %v4071_v52 }
 0xab1   :  { %v1355_v1 = vadd.f32 %v1351_v11, %v4071_v52  ;;  %v4322_v32 = vpop.f32.mrb[12].mxu0 }
 0xab2   :  { %v1354_v39 = vmul.f32 %v4322_v32, %v4061_v46  ;;  %v4326_v36 = vpop.f32.mrb[13].mxu0  ;;  %v1360_v25 = vmul.f32 %v4328_v16, %v1356_v0 }
 0xab3   :  { %v1353_v30 = vmul.f32 %v4326_v36, %v4061_v46  ;;  %v1359_v7 = vmul.f32 %v4333_v2, %v1355_v1 }
 0xab4   :  { %v1358_v10 = vadd.f32 %v1354_v39, %v4074_v53  ;;  %v1366_v37 = vsel %vm81_vm1, %v1360_v25, 0.0 }
 0xab5   :  { %v1357_v49 = vadd.f32 %v1353_v30, %v4074_v53  ;;  %1367 = vadd.xlane.f32.xlu0 %v1366_v37  ;;  %v1363_v12 = vsel %vm81_vm1, %v1359_v7, 0.0 }
 0xab6   :  { %1364 = vadd.xlane.f32.xlu1 %v1363_v12  ;;  %v1362_v15 = vmul.f32 %v4340_v14, %v1358_v10 }
 0xab7   :  { %v1361_v48 = vmul.f32 %v4343_v60, %v1357_v49 }
 0xab8   :  { %v1372_v18 = vsel %vm81_vm1, %v1362_v15, 0.0 }
 0xab9   :  { %v1369_v58 = vsel %vm81_vm1, %v1361_v48, 0.0 }
 0xaba   :  { %1373 = vadd.xlane.f32.xlu1 %v1372_v18  ;;  %1370 = vadd.xlane.f32.xlu0 %v1369_v58 }
 0xb42   :  { %v1368_v19 = vpop.xlane.xlu0 %1367 }
 0xb43   :  { %v1365_v40 = vpop.xlane.xlu1 %1364 }
 0xb44   :  { %v1375_v20 = vmax.f32 %v1365_v40, %v1368_v19 }
 0xb46   :  { %v1376_v38 = vrot.slane %v1375_v20, 4 }
 0xb47   :  { %v1374_v21 = vpop.xlane.xlu1 %1373  ;;  %v1371_v35 = vpop.xlane.xlu0 %1370 }
 0xb48   :  { %v1377_v22 = vmax.f32 %v1375_v20, %v1376_v38  ;;  %v1382_v34 = vmax.f32 %v1371_v35, %v1374_v21 }
 0xb4a   :  { %v1378_v23 = vrot.slane %v1377_v22, 2  ;;  %v1383_v24 = vrot.slane %v1382_v34, 4 }
 0xb4c   :  { %v1379_v27 = vmax.f32 %v1377_v22, %v1378_v23  ;;  %v1384_v28 = vmax.f32 %v1382_v34, %v1383_v24 }
 0xb4e   :  { %v1380_v29 = vrot.slane %v1379_v27, 1  ;;  %v1385_v31 = vrot.slane %v1384_v28, 2 }
 0xb50   :  { %v1381_v33 = vmax.f32 %v1379_v27, %v1380_v29  ;;  %v1386_v41 = vmax.f32 %v1384_v28, %v1385_v31 }
 0xb52   :  { %v1389_v42 = vsub.f32 %v1365_v40, %v1381_v33  ;;  %v1390_v9 = vsub.f32 %v1368_v19, %v1381_v33  ;;  %v1387_v43 = vrot.slane %v1386_v41, 1 }
 0xb54   :  { %v1393_v45 = vmul.f32 1.442695, %v1389_v42  ;;  %v1395_v17 = vmul.f32 1.442695, %v1390_v9  ;;  %v1388_v47 = vmax.f32 %v1386_v41, %v1387_v43 }
 0xb56   :  { %3759 = vpow2.f32 %v1393_v45  ;;  %v1391_v5 = vsub.f32 %v1371_v35, %v1388_v47  ;;  %v1392_v13 = vsub.f32 %v1374_v21, %v1388_v47 }
 0xb57   :  { %3761 = vpow2.f32 %v1395_v17 }
 0xb58   :  { %v1397_v50 = vmul.f32 1.442695, %v1391_v5  ;;  %v1399_v55 = vmul.f32 1.442695, %v1392_v13 }
 0xb5a   :  { %3763 = vpow2.f32 %v1397_v50 }
 0xb5b   :  { %3765 = vpow2.f32 %v1399_v55 }
 0xb60   :  { %v3760_v56 = vpop.eup %3759 }
 0xb61   :  { %v3762_v59 = vpop.eup %3761  ;;  %v1434_v61 = vsel %vm453_vm2, %v3760_v56, 0.0  ;;  %1403 = vperm.xlu0 %3709, %v3760_v56  }
 0xb62   :  { %v1435_v63 = vsel %vm453_vm2, %v3762_v59, 0.0  ;;  %1408 = vperm.xlu1 %3710, %v3762_v59  }
 0xb63   :  { %v1436_v11 = vadd.f32 %v1435_v63, %v1434_v61 }
 0xb64   :  { %v3764_v0 = vpop.eup %3763 }
 0xb65   :  { %v3766_v1 = vpop.eup %3765  ;;  %v1437_v39 = vrot.slane %v1436_v11, 4  ;;  %v1459_v25 = vsel %vm453_vm2, %v3764_v0, 0.0 }
 0xb66   :  { %v1460_v30 = vsel %vm453_vm2, %v3766_v1, 0.0  ;;  %1418 = vperm.xlu0 %3709, %v3766_v1   ;;  %1413 = vperm.xlu1 %3710, %v3764_v0  }
 0xb67   :  { %v1438_v7 = vadd.f32 %v1437_v39, %v1436_v11  ;;  %v1461_v10 = vadd.f32 %v1460_v30, %v1459_v25 }
 0xb69   :  { %v1439_v37 = vrot.slane %v1438_v7, 2  ;;  %v1462_v49 = vrot.slane %v1461_v10, 4 }
 0xb6b   :  { %v1440_v12 = vadd.f32 %v1439_v37, %v1438_v7  ;;  %v1463_v15 = vadd.f32 %v1462_v49, %v1461_v10 }
 0xb6d   :  { %v1441_v48 = vrot.slane %v1440_v12, 1  ;;  %v1464_v18 = vrot.slane %v1463_v15, 2 }
 0xb6f   :  { %v1442_v58 = vadd.f32 %v1441_v48, %v1440_v12  ;;  %v1465_v19 = vadd.f32 %v1464_v18, %v1463_v15 }
 0xb71   :  { %3767 = vrcp.f32 %v1442_v58  ;;  %v1466_v40 = vrot.slane %v1465_v19, 1 }
 0xb73   :  { %v1467_v20 = vadd.f32 %v1466_v40, %v1465_v19 }
 0xb75   :  { %3769 = vrcp.f32 %v1467_v20 }
 0xb7b   :  { %v3768_v38 = vpop.eup %3767 }
 0xb7c   :  { %1446 = vperm.xlu1 %3710, %v3768_v38  }
 0xb7f   :  { %v3770_v21 = vpop.eup %3769 }
 0xb80   :  { %1479 = vrot.lane.b32.xlu1 %v4316_v26, %s3945_s0  ;;  %1471 = vperm.xlu0 %3709, %v3770_v21  }
 0xb84   :  { %1483 = vrot.lane.b32.xlu1 %v4326_v36, %s3945_s0  ;;  %1481 = vrot.lane.b32.xlu0 %v4312_v62, %s3945_s0 }
 0xb88   :  { %1485 = vrot.lane.b32.xlu0 %v4322_v32, %s3945_s0 }
 0xbe0   :  { %v1404_v35 = vpop.permute.xlu0 %1403 }
 0xbe1   :  { %v1409_v22 = vpop.permute.xlu1 %1408  ;;  %v1421_v34 = vmul.f32 %v1404_v35, %v4090_v4 }
 0xbe2   :  { %v1422_v23 = vmul.f32 %v4088_v3, %v1409_v22 }
 0xbe3   :  { %v1425_v24 = vsel %vm81_vm1, %v1421_v34, 0.0 }
 0xbe4   :  { %v1426_v26 = vsel %vm81_vm1, %v1422_v23, 0.0 }
 0xbe5   :  { %v1427_v27 = vadd.f32 %v1426_v26, %v1425_v24  ;;  %v1414_v28 = vpop.permute.xlu1 %1413  ;;  %v1419_v29 = vpop.permute.xlu0 %1418 }
 0xbe6   :  { %v1423_v36 = vmul.f32 %v1414_v28, %v4099_v57  ;;  %v1424_v62 = vmul.f32 %v4094_v51, %v1419_v29 }
 0xbe7   :  { %v1428_v31 = vrot.slane %v1427_v27, 4 }
 0xbe8   :  { %v1450_v32 = vsel %vm81_vm1, %v1423_v36, 0.0  ;;  %v1451_v33 = vsel %vm81_vm1, %v1424_v62, 0.0 }
 0xbe9   :  { %v1452_v41 = vadd.f32 %v1451_v33, %v1450_v32  ;;  %v1429_v42 = vadd.f32 %v1428_v31, %v1427_v27 }
 0xbeb   :  { %v1453_v9 = vrot.slane %v1452_v41, 4  ;;  %v1430_v45 = vrot.slane %v1429_v42, 2 }
 0xbed   :  { %v1454_v43 = vadd.f32 %v1453_v9, %v1452_v41  ;;  %v1431_v17 = vadd.f32 %v1430_v45, %v1429_v42 }
 0xbef   :  { %v1455_v47 = vrot.slane %v1454_v43, 2  ;;  %v1432_v5 = vrot.slane %v1431_v17, 1 }
 0xbf1   :  { %v1456_v13 = vadd.f32 %v1455_v47, %v1454_v43  ;;  %v1433_v55 = vadd.f32 %v1432_v5, %v1431_v17 }
 0xbf3   :  { %v1457_v56 = vrot.slane %v1456_v13, 1 }
 0xbf5   :  { %v1458_v0 = vadd.f32 %v1457_v56, %v1456_v13 }
 0xbfb   :  { %v1447_v50 = vpop.permute.xlu1 %1446 }
 0xbfc   :  { %v1449_v59 = vmul.f32 %v1447_v50, %v1433_v55 }
 0xbff   :  { %v1480_v61 = vpop.permute.xlu1 %1479  ;;  %v1472_v63 = vpop.permute.xlu0 %1471 }
 0xc00   :  { %v1491_v11 = vadd.f32 %v1480_v61, %v1449_v59  ;;  %v1474_v39 = vmul.f32 %v1472_v63, %v1458_v0 }
 0xc02   :  { %v1495_v1 = vadd.f32 %v1491_v11, %v4118_v54 }
 0xc03   :  { %v1484_v25 = vpop.permute.xlu1 %1483  ;;  %v1482_v30 = vpop.permute.xlu0 %1481 }
 0xc04   :  { %v1493_v7 = vadd.f32 %v1484_v25, %v1474_v39  ;;  %v1492_v10 = vadd.f32 %v1482_v30, %v1449_v59  ;;  %3486 = vmatprep.mubr.msk.f32.mxu1 %vm81_vm1, %v1495_v1 }
 0xc06   :  { %v1497_v37 = vadd.f32 %v1493_v7, %v4118_v54  ;;  %v1496_v49 = vadd.f32 %v1492_v10, %v4118_v54 }
 0xc07   :  { %v1486_v12 = vpop.permute.xlu0 %1485 }
 0xc08   :  { %v1494_v15 = vadd.f32 %v1486_v12, %v1474_v39  ;;  %3487 = vmatmul.mubr.msk.f32.vlgmr.msra.gmra.mrb[12].mxu1 %vm81_vm1, %v1496_v49 }
 0xc09   :  { %3489 = vmatprep.mubr.msk.f32.mxu1 %vm81_vm1, %v1497_v37  ;;  %3649 = vmatpush3.bf16.msra.mxu1 %v3997_v6 }
 0xc0a   :  { %v1498_v48 = vadd.f32 %v1494_v15, %v4118_v54  ;;  %3651 = vmatprep.subr.bf16.mxu1 %v3999_v8 }
 0xc0c   :  { %3490 = vmatmul.mubr.msk.f32.gmra.mrb[14].mxu1 %vm81_vm1, %v1498_v48 }
 0xc0d   :  { %3653 = vmatpush3.bf16.msra.mxu1 %v3999_v8 }
 0xc0e   :  { %3663 = vmatprep.subr.bf16.mxu1 %v3997_v6 }
 0xcdb   :  { %v4380_v18 = vpop.f32.mrb[12].mxu1 }
 0xcdc   :  { %v1597_v58 = vmul.f32 %v4380_v18, %v4058_v44  ;;  %v4384_v19 = vpop.f32.mrb[13].mxu1 }
 0xcdd   :  { %v1596_v40 = vmul.f32 %v4384_v19, %v4058_v44 }
 0xcde   :  { %v1601_v20 = vadd.f32 %v1597_v58, %v4071_v52 }
 0xcdf   :  { %v1600_v38 = vadd.f32 %v1596_v40, %v4071_v52  ;;  %v4390_v21 = vpop.f32.mrb[14].mxu1 }
 0xce0   :  { %v1599_v35 = vmul.f32 %v4390_v21, %v4061_v46  ;;  %v4394_v22 = vpop.f32.mrb[15].mxu1  ;;  %v1605_v34 = vmul.f32 %v4328_v16, %v1601_v20 }
 0xce1   :  { %v1598_v23 = vmul.f32 %v4394_v22, %v4061_v46  ;;  %v1604_v24 = vmul.f32 %v4333_v2, %v1600_v38 }
 0xce2   :  { %v1603_v26 = vadd.f32 %v1599_v35, %v4074_v53  ;;  %v1611_v27 = vsel %vm81_vm1, %v1605_v34, 0.0 }
 0xce3   :  { %v1602_v28 = vadd.f32 %v1598_v23, %v4074_v53  ;;  %1612 = vadd.xlane.f32.xlu0 %v1611_v27  ;;  %v1608_v29 = vsel %vm81_vm1, %v1604_v24, 0.0 }
 0xce4   :  { %1609 = vadd.xlane.f32.xlu1 %v1608_v29  ;;  %v1607_v36 = vmul.f32 %v4340_v14, %v1603_v26 }
 0xce5   :  { %v1606_v62 = vmul.f32 %v4343_v60, %v1602_v28 }
 0xce6   :  { %v1617_v31 = vsel %vm81_vm1, %v1607_v36, 0.0 }
 0xce7   :  { %v1614_v32 = vsel %vm81_vm1, %v1606_v62, 0.0 }
 0xce8   :  { %1618 = vadd.xlane.f32.xlu1 %v1617_v31  ;;  %1615 = vadd.xlane.f32.xlu0 %v1614_v32 }
 0xd70   :  { %v1613_v33 = vpop.xlane.xlu0 %1612 }
 0xd71   :  { %v1610_v41 = vpop.xlane.xlu1 %1609 }
 0xd72   :  { %v1620_v42 = vmax.f32 %v1610_v41, %v1613_v33 }
 0xd74   :  { %v1621_v9 = vrot.slane %v1620_v42, 4 }
 0xd75   :  { %v1619_v43 = vpop.xlane.xlu1 %1618  ;;  %v1616_v45 = vpop.xlane.xlu0 %1615 }
 0xd76   :  { %v1622_v17 = vmax.f32 %v1620_v42, %v1621_v9  ;;  %v1627_v47 = vmax.f32 %v1616_v45, %v1619_v43 }
 0xd78   :  { %v1623_v5 = vrot.slane %v1622_v17, 2  ;;  %v1628_v13 = vrot.slane %v1627_v47, 4 }
 0xd7a   :  { %v1624_v50 = vmax.f32 %v1622_v17, %v1623_v5  ;;  %v1629_v55 = vmax.f32 %v1627_v47, %v1628_v13 }
 0xd7c   :  { %v1625_v56 = vrot.slane %v1624_v50, 1  ;;  %v1630_v59 = vrot.slane %v1629_v55, 2 }
 0xd7e   :  { %v1626_v61 = vmax.f32 %v1624_v50, %v1625_v56  ;;  %v1631_v63 = vmax.f32 %v1629_v55, %v1630_v59 }
 0xd80   :  { %v1634_v11 = vsub.f32 %v1610_v41, %v1626_v61  ;;  %v1635_v0 = vsub.f32 %v1613_v33, %v1626_v61  ;;  %v1632_v1 = vrot.slane %v1631_v63, 1 }
 0xd82   :  { %v1638_v39 = vmul.f32 1.442695, %v1634_v11  ;;  %v1640_v25 = vmul.f32 1.442695, %v1635_v0  ;;  %v1633_v30 = vmax.f32 %v1631_v63, %v1632_v1 }
 0xd84   :  { %3771 = vpow2.f32 %v1638_v39  ;;  %v1636_v7 = vsub.f32 %v1616_v45, %v1633_v30  ;;  %v1637_v10 = vsub.f32 %v1619_v43, %v1633_v30 }
 0xd85   :  { %3773 = vpow2.f32 %v1640_v25 }
 0xd86   :  { %v1642_v37 = vmul.f32 1.442695, %v1636_v7  ;;  %v1644_v49 = vmul.f32 1.442695, %v1637_v10 }
 0xd88   :  { %3775 = vpow2.f32 %v1642_v37 }
 0xd89   :  { %3777 = vpow2.f32 %v1644_v49 }
 0xd8e   :  { %v3772_v12 = vpop.eup %3771 }
 0xd8f   :  { %v3774_v15 = vpop.eup %3773  ;;  %v1679_v48 = vsel %vm453_vm2, %v3772_v12, 0.0  ;;  %1648 = vperm.xlu0 %3709, %v3772_v12  }
 0xd90   :  { %v1680_v58 = vsel %vm453_vm2, %v3774_v15, 0.0  ;;  %1653 = vperm.xlu1 %3710, %v3774_v15  }
 0xd91   :  { %v1681_v40 = vadd.f32 %v1680_v58, %v1679_v48 }
 0xd92   :  { %v3776_v20 = vpop.eup %3775 }
 0xd93   :  { %v3778_v38 = vpop.eup %3777  ;;  %v1682_v35 = vrot.slane %v1681_v40, 4  ;;  %v1704_v34 = vsel %vm453_vm2, %v3776_v20, 0.0 }
 0xd94   :  { %v1705_v23 = vsel %vm453_vm2, %v3778_v38, 0.0  ;;  %1663 = vperm.xlu0 %3709, %v3778_v38   ;;  %1658 = vperm.xlu1 %3710, %v3776_v20  }
 0xd95   :  { %v1683_v24 = vadd.f32 %v1682_v35, %v1681_v40  ;;  %v1706_v26 = vadd.f32 %v1705_v23, %v1704_v34 }
 0xd97   :  { %v1684_v27 = vrot.slane %v1683_v24, 2  ;;  %v1707_v28 = vrot.slane %v1706_v26, 4 }
 0xd99   :  { %v1685_v29 = vadd.f32 %v1684_v27, %v1683_v24  ;;  %v1708_v36 = vadd.f32 %v1707_v28, %v1706_v26 }
 0xd9b   :  { %v1686_v62 = vrot.slane %v1685_v29, 1  ;;  %v1709_v31 = vrot.slane %v1708_v36, 2 }
 0xd9d   :  { %v1687_v32 = vadd.f32 %v1686_v62, %v1685_v29  ;;  %v1710_v33 = vadd.f32 %v1709_v31, %v1708_v36 }
 0xd9f   :  { %3779 = vrcp.f32 %v1687_v32  ;;  %v1711_v41 = vrot.slane %v1710_v33, 1 }
 0xda1   :  { %v1712_v42 = vadd.f32 %v1711_v41, %v1710_v33 }
 0xda3   :  { %3781 = vrcp.f32 %v1712_v42 }
 0xda9   :  { %v3780_v9 = vpop.eup %3779 }
 0xdaa   :  { %1691 = vperm.xlu1 %3710, %v3780_v9  }
 0xdad   :  { %v3782_v43 = vpop.eup %3781 }
 0xdae   :  { %1724 = vrot.lane.b32.xlu1 %v4384_v19, %s3945_s0  ;;  %1716 = vperm.xlu0 %3709, %v3782_v43  }
 0xdb2   :  { %1728 = vrot.lane.b32.xlu1 %v4394_v22, %s3945_s0  ;;  %1726 = vrot.lane.b32.xlu0 %v4380_v18, %s3945_s0 }
 0xdb6   :  { %1730 = vrot.lane.b32.xlu0 %v4390_v21, %s3945_s0 }
 0xe0e   :  { %v1649_v45 = vpop.permute.xlu0 %1648 }
 0xe0f   :  { %v1654_v17 = vpop.permute.xlu1 %1653  ;;  %v1666_v47 = vmul.f32 %v1649_v45, %v4090_v4 }
 0xe10   :  { %v1667_v5 = vmul.f32 %v4088_v3, %v1654_v17 }
 0xe11   :  { %v1670_v13 = vsel %vm81_vm1, %v1666_v47, 0.0 }
 0xe12   :  { %v1671_v19 = vsel %vm81_vm1, %v1667_v5, 0.0 }
 0xe13   :  { %v1672_v50 = vadd.f32 %v1671_v19, %v1670_v13  ;;  %v1659_v55 = vpop.permute.xlu1 %1658  ;;  %v1664_v56 = vpop.permute.xlu0 %1663 }
 0xe14   :  { %v1668_v22 = vmul.f32 %v1659_v55, %v4099_v57  ;;  %v1669_v18 = vmul.f32 %v4094_v51, %v1664_v56 }
 0xe15   :  { %v1673_v59 = vrot.slane %v1672_v50, 4 }
 0xe16   :  { %v1695_v21 = vsel %vm81_vm1, %v1668_v22, 0.0  ;;  %v1696_v61 = vsel %vm81_vm1, %v1669_v18, 0.0 }
 0xe17   :  { %v1697_v63 = vadd.f32 %v1696_v61, %v1695_v21  ;;  %v1674_v11 = vadd.f32 %v1673_v59, %v1672_v50 }
 0xe19   :  { %v1698_v0 = vrot.slane %v1697_v63, 4  ;;  %v1675_v39 = vrot.slane %v1674_v11, 2 }
 0xe1b   :  { %v1699_v1 = vadd.f32 %v1698_v0, %v1697_v63  ;;  %v1676_v25 = vadd.f32 %v1675_v39, %v1674_v11 }
 0xe1d   :  { %v1700_v30 = vrot.slane %v1699_v1, 2  ;;  %v1677_v7 = vrot.slane %v1676_v25, 1 }
 0xe1f   :  { %v1701_v10 = vadd.f32 %v1700_v30, %v1699_v1  ;;  %v1678_v49 = vadd.f32 %v1677_v7, %v1676_v25 }
 0xe21   :  { %v1702_v12 = vrot.slane %v1701_v10, 1 }
 0xe23   :  { %v1703_v20 = vadd.f32 %v1702_v12, %v1701_v10 }
 0xe29   :  { %v1692_v37 = vpop.permute.xlu1 %1691 }
 0xe2a   :  { %v1694_v15 = vmul.f32 %v1692_v37, %v1678_v49 }
 0xe2d   :  { %v1725_v48 = vpop.permute.xlu1 %1724  ;;  %v1717_v58 = vpop.permute.xlu0 %1716 }
 0xe2e   :  { %v1736_v40 = vadd.f32 %v1725_v48, %v1694_v15  ;;  %v1719_v35 = vmul.f32 %v1717_v58, %v1703_v20 }
 0xe30   :  { %v1740_v38 = vadd.f32 %v1736_v40, %v4118_v54 }
 0xe31   :  { %v1729_v34 = vpop.permute.xlu1 %1728  ;;  %v1727_v23 = vpop.permute.xlu0 %1726 }
 0xe32   :  { %v1738_v24 = vadd.f32 %v1729_v34, %v1719_v35  ;;  %v1737_v26 = vadd.f32 %v1727_v23, %v1694_v15  ;;  %3500 = vmatprep.mubr.msk.f32.mxu0 %vm81_vm1, %v1740_v38 }
 0xe34   :  { %v1742_v27 = vadd.f32 %v1738_v24, %v4118_v54  ;;  %v1741_v28 = vadd.f32 %v1737_v26, %v4118_v54 }
 0xe35   :  { %v1731_v29 = vpop.permute.xlu0 %1730 }
 0xe36   :  { %v1739_v36 = vadd.f32 %v1731_v29, %v1719_v35  ;;  %3501 = vmatmul.mubr.msk.f32.vlgmr.msra.gmra.mrb[14].mxu0 %vm81_vm1, %v1741_v28 }
 0xe37   :  { %3503 = vmatprep.mubr.msk.f32.mxu0 %vm81_vm1, %v1742_v27  ;;  %3657 = vmatpush3.bf16.msra.mxu0 %v3997_v6 }
 0xe38   :  { %v1743_v62 = vadd.f32 %v1739_v36, %v4118_v54  ;;  %3659 = vmatprep.subr.bf16.mxu0 %v3999_v8 }
 0xe3a   :  { %3504 = vmatmul.mubr.msk.f32.gmra.mrb[16].mxu0 %vm81_vm1, %v1743_v62 }
 0xe3b   :  { %3661 = vmatpush3.bf16.msra.mxu0 %v3999_v8 }
 0xe3c   :  { %3671 = vmatprep.subr.bf16.mxu0 %v3997_v6 }
 0xf09   :  { %v4440_v31 = vpop.f32.mrb[14].mxu0 }
 0xf0a   :  { %v1842_v32 = vmul.f32 %v4440_v31, %v4058_v44  ;;  %v4444_v33 = vpop.f32.mrb[15].mxu0 }
 0xf0b   :  { %v1841_v41 = vmul.f32 %v4444_v33, %v4058_v44 }
 0xf0c   :  { %v1846_v42 = vadd.f32 %v1842_v32, %v4071_v52 }
 0xf0d   :  { %v1845_v9 = vadd.f32 %v1841_v41, %v4071_v52  ;;  %v4450_v43 = vpop.f32.mrb[16].mxu0 }
 0xf0e   :  { %v1844_v45 = vmul.f32 %v4450_v43, %v4061_v46  ;;  %v4454_v17 = vpop.f32.mrb[17].mxu0  ;;  %v1850_v47 = vmul.f32 %v4328_v16, %v1846_v42 }
 0xf0f   :  { %v1843_v5 = vmul.f32 %v4454_v17, %v4061_v46  ;;  %v1849_v13 = vmul.f32 %v4333_v2, %v1845_v9 }
 0xf10   :  { %v1848_v19 = vadd.f32 %v1844_v45, %v4074_v53  ;;  %v1856_v50 = vsel %vm81_vm1, %v1850_v47, 0.0 }
 0xf11   :  { %v1847_v55 = vadd.f32 %v1843_v5, %v4074_v53  ;;  %1857 = vadd.xlane.f32.xlu0 %v1856_v50  ;;  %v1853_v56 = vsel %vm81_vm1, %v1849_v13, 0.0 }
 0xf12   :  { %1854 = vadd.xlane.f32.xlu1 %v1853_v56  ;;  %v1852_v22 = vmul.f32 %v4340_v14, %v1848_v19 }
 0xf13   :  { %v1851_v18 = vmul.f32 %v4343_v60, %v1847_v55 }
 0xf14   :  { %v1862_v59 = vsel %vm81_vm1, %v1852_v22, 0.0 }
 0xf15   :  { %v1859_v21 = vsel %vm81_vm1, %v1851_v18, 0.0 }
 0xf16   :  { %1863 = vadd.xlane.f32.xlu1 %v1862_v59  ;;  %1860 = vadd.xlane.f32.xlu0 %v1859_v21 }
 0xf9e   :  { %v1858_v61 = vpop.xlane.xlu0 %1857 }
 0xf9f   :  { %v1855_v63 = vpop.xlane.xlu1 %1854 }
 0xfa0   :  { %v1865_v11 = vmax.f32 %v1855_v63, %v1858_v61 }
 0xfa2   :  { %v1866_v0 = vrot.slane %v1865_v11, 4 }
 0xfa3   :  { %v1864_v1 = vpop.xlane.xlu1 %1863  ;;  %v1861_v39 = vpop.xlane.xlu0 %1860 }
 0xfa4   :  { %v1867_v25 = vmax.f32 %v1865_v11, %v1866_v0  ;;  %v1872_v30 = vmax.f32 %v1861_v39, %v1864_v1 }
 0xfa6   :  { %v1868_v7 = vrot.slane %v1867_v25, 2  ;;  %v1873_v10 = vrot.slane %v1872_v30, 4 }
 0xfa8   :  { %v1869_v37 = vmax.f32 %v1867_v25, %v1868_v7  ;;  %v1874_v49 = vmax.f32 %v1872_v30, %v1873_v10 }
 0xfaa   :  { %v1870_v12 = vrot.slane %v1869_v37, 1  ;;  %v1875_v15 = vrot.slane %v1874_v49, 2 }
 0xfac   :  { %v1871_v48 = vmax.f32 %v1869_v37, %v1870_v12  ;;  %v1876_v58 = vmax.f32 %v1874_v49, %v1875_v15 }
 0xfae   :  { %v1879_v40 = vsub.f32 %v1855_v63, %v1871_v48  ;;  %v1880_v20 = vsub.f32 %v1858_v61, %v1871_v48  ;;  %v1877_v38 = vrot.slane %v1876_v58, 1 }
 0xfb0   :  { %v1883_v35 = vmul.f32 1.442695, %v1879_v40  ;;  %v1885_v34 = vmul.f32 1.442695, %v1880_v20  ;;  %v1878_v23 = vmax.f32 %v1876_v58, %v1877_v38 }
 0xfb2   :  { %3783 = vpow2.f32 %v1883_v35  ;;  %v1881_v24 = vsub.f32 %v1861_v39, %v1878_v23  ;;  %v1882_v26 = vsub.f32 %v1864_v1, %v1878_v23 }
 0xfb3   :  { %3785 = vpow2.f32 %v1885_v34 }
 0xfb4   :  { %v1887_v27 = vmul.f32 1.442695, %v1881_v24  ;;  %v1889_v28 = vmul.f32 1.442695, %v1882_v26 }
 0xfb6   :  { %3787 = vpow2.f32 %v1887_v27 }
 0xfb7   :  { %3789 = vpow2.f32 %v1889_v28 }
 0xfbc   :  { %v3784_v29 = vpop.eup %3783 }
 0xfbd   :  { %v3786_v36 = vpop.eup %3785  ;;  %v1924_v62 = vsel %vm453_vm2, %v3784_v29, 0.0  ;;  %1893 = vperm.xlu0 %3709, %v3784_v29  }
 0xfbe   :  { %v1925_v32 = vsel %vm453_vm2, %v3786_v36, 0.0  ;;  %1898 = vperm.xlu1 %3710, %v3786_v36  }
 0xfbf   :  { %v1926_v41 = vadd.f32 %v1925_v32, %v1924_v62 }
 0xfc0   :  { %v3788_v42 = vpop.eup %3787 }
 0xfc1   :  { %v3790_v9 = vpop.eup %3789  ;;  %v1927_v45 = vrot.slane %v1926_v41, 4  ;;  %v1949_v47 = vsel %vm453_vm2, %v3788_v42, 0.0 }
 0xfc2   :  { %v1950_v5 = vsel %vm453_vm2, %v3790_v9, 0.0  ;;  %1908 = vperm.xlu0 %3709, %v3790_v9   ;;  %1903 = vperm.xlu1 %3710, %v3788_v42  }
 0xfc3   :  { %v1928_v13 = vadd.f32 %v1927_v45, %v1926_v41  ;;  %v1951_v19 = vadd.f32 %v1950_v5, %v1949_v47 }
 0xfc5   :  { %v1929_v50 = vrot.slane %v1928_v13, 2  ;;  %v1952_v55 = vrot.slane %v1951_v19, 4 }
 0xfc7   :  { %v1930_v56 = vadd.f32 %v1929_v50, %v1928_v13  ;;  %v1953_v22 = vadd.f32 %v1952_v55, %v1951_v19 }
 0xfc9   :  { %v1931_v18 = vrot.slane %v1930_v56, 1  ;;  %v1954_v59 = vrot.slane %v1953_v22, 2 }
 0xfcb   :  { %v1932_v21 = vadd.f32 %v1931_v18, %v1930_v56  ;;  %v1955_v61 = vadd.f32 %v1954_v59, %v1953_v22 }
 0xfcd   :  { %3791 = vrcp.f32 %v1932_v21  ;;  %v1956_v63 = vrot.slane %v1955_v61, 1 }
 0xfcf   :  { %v1957_v11 = vadd.f32 %v1956_v63, %v1955_v61 }
 0xfd1   :  { %3793 = vrcp.f32 %v1957_v11 }
 0xfd7   :  { %v3792_v0 = vpop.eup %3791 }
 0xfd8   :  { %1936 = vperm.xlu1 %3710, %v3792_v0  }
 0xfdb   :  { %v3794_v1 = vpop.eup %3793 }
 0xfdc   :  { %1969 = vrot.lane.b32.xlu1 %v4444_v33, %s3945_s0  ;;  %1961 = vperm.xlu0 %3709, %v3794_v1  }
 0xfe0   :  { %1973 = vrot.lane.b32.xlu1 %v4454_v17, %s3945_s0  ;;  %1971 = vrot.lane.b32.xlu0 %v4440_v31, %s3945_s0 }
 0xfe4   :  { %1975 = vrot.lane.b32.xlu0 %v4450_v43, %s3945_s0 }
0x103c   :  { %v1894_v39 = vpop.permute.xlu0 %1893 }
0x103d   :  { %v1899_v25 = vpop.permute.xlu1 %1898  ;;  %v1911_v30 = vmul.f32 %v1894_v39, %v4090_v4 }
0x103e   :  { %v1912_v7 = vmul.f32 %v4088_v3, %v1899_v25 }
0x103f   :  { %v1915_v10 = vsel %vm81_vm1, %v1911_v30, 0.0 }
0x1040   :  { %v1916_v33 = vsel %vm81_vm1, %v1912_v7, 0.0 }
0x1041   :  { %v1917_v37 = vadd.f32 %v1916_v33, %v1915_v10  ;;  %v1904_v49 = vpop.permute.xlu1 %1903  ;;  %v1909_v12 = vpop.permute.xlu0 %1908 }
0x1042   :  { %v1913_v17 = vmul.f32 %v1904_v49, %v4099_v57  ;;  %v1914_v31 = vmul.f32 %v4094_v51, %v1909_v12 }
0x1043   :  { %v1918_v15 = vrot.slane %v1917_v37, 4 }
0x1044   :  { %v1940_v43 = vsel %vm81_vm1, %v1913_v17, 0.0  ;;  %v1941_v48 = vsel %vm81_vm1, %v1914_v31, 0.0 }
0x1045   :  { %v1942_v58 = vadd.f32 %v1941_v48, %v1940_v43  ;;  %v1919_v40 = vadd.f32 %v1918_v15, %v1917_v37 }
0x1047   :  { %v1943_v20 = vrot.slane %v1942_v58, 4  ;;  %v1920_v35 = vrot.slane %v1919_v40, 2 }
0x1049   :  { %v1944_v38 = vadd.f32 %v1943_v20, %v1942_v58  ;;  %v1921_v34 = vadd.f32 %v1920_v35, %v1919_v40 }
0x104b   :  { %v1945_v23 = vrot.slane %v1944_v38, 2  ;;  %v1922_v24 = vrot.slane %v1921_v34, 1 }
0x104d   :  { %v1946_v26 = vadd.f32 %v1945_v23, %v1944_v38  ;;  %v1923_v28 = vadd.f32 %v1922_v24, %v1921_v34 }
0x104f   :  { %v1947_v29 = vrot.slane %v1946_v26, 1 }
0x1051   :  { %v1948_v42 = vadd.f32 %v1947_v29, %v1946_v26 }
0x1057   :  { %v1937_v27 = vpop.permute.xlu1 %1936 }
0x1058   :  { %v1939_v36 = vmul.f32 %v1937_v27, %v1923_v28 }
0x105b   :  { %v1970_v62 = vpop.permute.xlu1 %1969  ;;  %v1962_v32 = vpop.permute.xlu0 %1961 }
0x105c   :  { %v1981_v41 = vadd.f32 %v1970_v62, %v1939_v36  ;;  %v1964_v45 = vmul.f32 %v1962_v32, %v1948_v42 }
0x105e   :  { %v1985_v9 = vadd.f32 %v1981_v41, %v4118_v54 }
0x105f   :  { %v1974_v47 = vpop.permute.xlu1 %1973  ;;  %v1972_v5 = vpop.permute.xlu0 %1971 }
0x1060   :  { %v1983_v13 = vadd.f32 %v1974_v47, %v1964_v45  ;;  %v1982_v19 = vadd.f32 %v1972_v5, %v1939_v36  ;;  %3514 = vmatprep.mubr.msk.f32.mxu1 %vm81_vm1, %v1985_v9 }
0x1062   :  { %v1987_v50 = vadd.f32 %v1983_v13, %v4118_v54  ;;  %v1986_v55 = vadd.f32 %v1982_v19, %v4118_v54 }
0x1063   :  { %v1976_v56 = vpop.permute.xlu0 %1975 }
0x1064   :  { %v1984_v22 = vadd.f32 %v1976_v56, %v1964_v45  ;;  %3515 = vmatmul.mubr.msk.f32.vlgmr.msra.gmra.mrb[16].mxu1 %vm81_vm1, %v1986_v55 }
0x1065   :  { %3517 = vmatprep.mubr.msk.f32.mxu1 %vm81_vm1, %v1987_v50  ;;  %3665 = vmatpush3.bf16.msra.mxu1 %v3997_v6 }
0x1066   :  { %v1988_v18 = vadd.f32 %v1984_v22, %v4118_v54  ;;  %3667 = vmatprep.subr.bf16.mxu1 %v3999_v8 }
0x1068   :  { %3518 = vmatmul.mubr.msk.f32.gmra.mrb[18].mxu1 %vm81_vm1, %v1988_v18 }
0x1069   :  { %3669 = vmatpush3.bf16.msra.mxu1 %v3999_v8 }
0x106a   :  { %3679 = vmatprep.subr.bf16.mxu1 %v3997_v6 }
0x1137   :  { %v4500_v59 = vpop.f32.mrb[16].mxu1 }
0x1138   :  { %v2087_v21 = vmul.f32 %v4500_v59, %v4058_v44  ;;  %v4504_v61 = vpop.f32.mrb[17].mxu1 }
0x1139   :  { %v2086_v63 = vmul.f32 %v4504_v61, %v4058_v44 }
0x113a   :  { %v2091_v11 = vadd.f32 %v2087_v21, %v4071_v52 }
0x113b   :  { %v2090_v0 = vadd.f32 %v2086_v63, %v4071_v52  ;;  %v4510_v1 = vpop.f32.mrb[18].mxu1 }
0x113c   :  { %v2089_v39 = vmul.f32 %v4510_v1, %v4061_v46  ;;  %v4514_v25 = vpop.f32.mrb[19].mxu1  ;;  %v2095_v30 = vmul.f32 %v4328_v16, %v2091_v11 }
0x113d   :  { %v2088_v7 = vmul.f32 %v4514_v25, %v4061_v46  ;;  %v2094_v10 = vmul.f32 %v4333_v2, %v2090_v0 }
0x113e   :  { %v2093_v33 = vadd.f32 %v2089_v39, %v4074_v53  ;;  %v2101_v37 = vsel %vm81_vm1, %v2095_v30, 0.0 }
0x113f   :  { %v2092_v49 = vadd.f32 %v2088_v7, %v4074_v53  ;;  %2102 = vadd.xlane.f32.xlu0 %v2101_v37  ;;  %v2098_v12 = vsel %vm81_vm1, %v2094_v10, 0.0 }
0x1140   :  { %2099 = vadd.xlane.f32.xlu1 %v2098_v12  ;;  %v2097_v17 = vmul.f32 %v4340_v14, %v2093_v33 }
0x1141   :  { %v2096_v31 = vmul.f32 %v4343_v60, %v2092_v49 }
0x1142   :  { %v2107_v16 = vsel %vm81_vm1, %v2097_v17, 0.0 }
0x1143   :  { %v2104_v15 = vsel %vm81_vm1, %v2096_v31, 0.0 }
0x1144   :  { %2108 = vadd.xlane.f32.xlu1 %v2107_v16  ;;  %2105 = vadd.xlane.f32.xlu0 %v2104_v15 }
0x11cc   :  { %v2103_v2 = vpop.xlane.xlu0 %2102 }
0x11cd   :  { %v2100_v43 = vpop.xlane.xlu1 %2099 }
0x11ce   :  { %v2110_v48 = vmax.f32 %v2100_v43, %v2103_v2 }
0x11d0   :  { %v2111_v58 = vrot.slane %v2110_v48, 4 }
0x11d1   :  { %v2109_v40 = vpop.xlane.xlu1 %2108  ;;  %v2106_v20 = vpop.xlane.xlu0 %2105 }
0x11d2   :  { %v2112_v38 = vmax.f32 %v2110_v48, %v2111_v58  ;;  %v2117_v35 = vmax.f32 %v2106_v20, %v2109_v40 }
0x11d4   :  { %v2113_v34 = vrot.slane %v2112_v38, 2  ;;  %v2118_v23 = vrot.slane %v2117_v35, 4 }
0x11d6   :  { %v2114_v24 = vmax.f32 %v2112_v38, %v2113_v34  ;;  %v2119_v14 = vmax.f32 %v2117_v35, %v2118_v23 }
0x11d8   :  { %v2115_v26 = vrot.slane %v2114_v24, 1  ;;  %v2120_v60 = vrot.slane %v2119_v14, 2 }
0x11da   :  { %v2116_v27 = vmax.f32 %v2114_v24, %v2115_v26  ;;  %v2121_v28 = vmax.f32 %v2119_v14, %v2120_v60 }
0x11dc   :  { %v2124_v29 = vsub.f32 %v2100_v43, %v2116_v27  ;;  %v2125_v36 = vsub.f32 %v2103_v2, %v2116_v27  ;;  %v2122_v62 = vrot.slane %v2121_v28, 1 }
0x11de   :  { %v2128_v32 = vmul.f32 1.442695, %v2124_v29  ;;  %v2130_v41 = vmul.f32 1.442695, %v2125_v36  ;;  %v2123_v42 = vmax.f32 %v2121_v28, %v2122_v62 }
0x11e0   :  { %3795 = vpow2.f32 %v2128_v32  ;;  %v2126_v9 = vsub.f32 %v2106_v20, %v2123_v42  ;;  %v2127_v45 = vsub.f32 %v2109_v40, %v2123_v42 }
0x11e1   :  { %3797 = vpow2.f32 %v2130_v41 }
0x11e2   :  { %v2132_v47 = vmul.f32 1.442695, %v2126_v9  ;;  %v2134_v5 = vmul.f32 1.442695, %v2127_v45 }
0x11e4   :  { %3799 = vpow2.f32 %v2132_v47 }
0x11e5   :  { %3801 = vpow2.f32 %v2134_v5 }
0x11ea   :  { %v3796_v13 = vpop.eup %3795 }
0x11eb   :  { %v3798_v19 = vpop.eup %3797  ;;  %v2169_v50 = vsel %vm453_vm2, %v3796_v13, 0.0  ;;  %2138 = vperm.xlu0 %3709, %v3796_v13  }
0x11ec   :  { %v2170_v55 = vsel %vm453_vm2, %v3798_v19, 0.0  ;;  %2143 = vperm.xlu1 %3710, %v3798_v19  }
0x11ed   :  { %v2171_v56 = vadd.f32 %v2170_v55, %v2169_v50 }
0x11ee   :  { %v3800_v22 = vpop.eup %3799 }
0x11ef   :  { %v3802_v18 = vpop.eup %3801  ;;  %v2172_v21 = vrot.slane %v2171_v56, 4  ;;  %v2194_v63 = vsel %vm453_vm2, %v3800_v22, 0.0 }
0x11f0   :  { %v2195_v11 = vsel %vm453_vm2, %v3802_v18, 0.0  ;;  %2153 = vperm.xlu0 %3709, %v3802_v18   ;;  %2148 = vperm.xlu1 %3710, %v3800_v22  }
0x11f1   :  { %v2173_v0 = vadd.f32 %v2172_v21, %v2171_v56  ;;  %v2196_v39 = vadd.f32 %v2195_v11, %v2194_v63 }
0x11f3   :  { %v2174_v30 = vrot.slane %v2173_v0, 2  ;;  %v2197_v7 = vrot.slane %v2196_v39, 4 }
0x11f5   :  { %v2175_v10 = vadd.f32 %v2174_v30, %v2173_v0  ;;  %v2198_v33 = vadd.f32 %v2197_v7, %v2196_v39 }
0x11f7   :  { %v2176_v37 = vrot.slane %v2175_v10, 1  ;;  %v2199_v49 = vrot.slane %v2198_v33, 2 }
0x11f9   :  { %v2177_v12 = vadd.f32 %v2176_v37, %v2175_v10  ;;  %v2200_v17 = vadd.f32 %v2199_v49, %v2198_v33 }
0x11fb   :  { %3803 = vrcp.f32 %v2177_v12  ;;  %v2201_v31 = vrot.slane %v2200_v17, 1 }
0x11fd   :  { %v2202_v16 = vadd.f32 %v2201_v31, %v2200_v17 }
0x11ff   :  { %3805 = vrcp.f32 %v2202_v16 }
0x1205   :  { %v3804_v15 = vpop.eup %3803 }
0x1206   :  { %2181 = vperm.xlu1 %3710, %v3804_v15   ;;  %v4575_v15 = vld [vmem:[#allocation2 + $0x8] sm:$0xff] }
0x1209   :  { %v3806_v2 = vpop.eup %3805 }
0x120a   :  { %2214 = vrot.lane.b32.xlu1 %v4504_v61, %s3945_s0  ;;  %2206 = vperm.xlu0 %3709, %v3806_v2  }
0x120e   :  { %2218 = vrot.lane.b32.xlu1 %v4514_v25, %s3945_s0  ;;  %2216 = vrot.lane.b32.xlu0 %v4500_v59, %s3945_s0 }
0x1212   :  { %2220 = vrot.lane.b32.xlu0 %v4510_v1, %s3945_s0 }
0x126a   :  { %v2139_v43 = vpop.permute.xlu0 %2138 }
0x126b   :  { %v2144_v48 = vpop.permute.xlu1 %2143  ;;  %v2156_v58 = vmul.f32 %v2139_v43, %v4090_v4 }
0x126c   :  { %v2157_v40 = vmul.f32 %v4088_v3, %v2144_v48  ;;  %v4580_v48 = vld [vmem:[#allocation2] sm:$0xff] }
0x126d   :  { %v2160_v20 = vsel %vm81_vm1, %v2156_v58, 0.0 }
0x126e   :  { %v2161_v61 = vsel %vm81_vm1, %v2157_v40, 0.0 }
0x126f   :  { %v2162_v38 = vadd.f32 %v2161_v61, %v2160_v20  ;;  %v2149_v35 = vpop.permute.xlu1 %2148  ;;  %v2154_v34 = vpop.permute.xlu0 %2153 }
0x1270   :  { %v2158_v25 = vmul.f32 %v2149_v35, %v4099_v57  ;;  %v2159_v59 = vmul.f32 %v4094_v51, %v2154_v34  ;;  %v4587_v35 = vld [vmem:[#allocation2 + $0x18] sm:$0xff] }
0x1271   :  { %v2163_v23 = vrot.slane %v2162_v38, 4 }
0x1272   :  { %v2185_v1 = vsel %vm81_vm1, %v2158_v25, 0.0  ;;  %v2186_v24 = vsel %vm81_vm1, %v2159_v59, 0.0  ;;  %v4590_v25 = vld [vmem:[#allocation2 + $0x10] sm:$0xff] }
0x1273   :  { %v2187_v14 = vadd.f32 %v2186_v24, %v2185_v1  ;;  %v2164_v26 = vadd.f32 %v2163_v23, %v2162_v38 }
0x1275   :  { %v2188_v60 = vrot.slane %v2187_v14, 4  ;;  %v2165_v28 = vrot.slane %v2164_v26, 2 }
0x1277   :  { %v2189_v27 = vadd.f32 %v2188_v60, %v2187_v14  ;;  %v2166_v29 = vadd.f32 %v2165_v28, %v2164_v26 }
0x1279   :  { %v2190_v36 = vrot.slane %v2189_v27, 2  ;;  %v2167_v62 = vrot.slane %v2166_v29, 1 }
0x127b   :  { %v2191_v32 = vadd.f32 %v2190_v36, %v2189_v27  ;;  %v2168_v42 = vadd.f32 %v2167_v62, %v2166_v29 }
0x127d   :  { %v2192_v9 = vrot.slane %v2191_v32, 1 }
0x127f   :  { %v2193_v19 = vadd.f32 %v2192_v9, %v2191_v32 }
0x1285   :  { %v2182_v41 = vpop.permute.xlu1 %2181 }
0x1286   :  { %v2184_v45 = vmul.f32 %v2182_v41, %v2168_v42 }
0x1289   :  { %v2215_v47 = vpop.permute.xlu1 %2214  ;;  %v2207_v5 = vpop.permute.xlu0 %2206 }
0x128a   :  { %v2226_v13 = vadd.f32 %v2215_v47, %v2184_v45  ;;  %v2209_v55 = vmul.f32 %v2207_v5, %v2193_v19 }
0x128c   :  { %v2230_v50 = vadd.f32 %v2226_v13, %v4118_v54 }
0x128d   :  { %v2219_v56 = vpop.permute.xlu1 %2218  ;;  %v2217_v22 = vpop.permute.xlu0 %2216 }
0x128e   :  { %v2228_v18 = vadd.f32 %v2219_v56, %v2209_v55  ;;  %v2227_v21 = vadd.f32 %v2217_v22, %v2184_v45  ;;  %3528 = vmatprep.mubr.msk.f32.mxu0 %vm81_vm1, %v2230_v50 }
0x1290   :  { %v2232_v63 = vadd.f32 %v2228_v18, %v4118_v54  ;;  %v2231_v11 = vadd.f32 %v2227_v21, %v4118_v54 }
0x1291   :  { %v2221_v0 = vpop.permute.xlu0 %2220 }
0x1292   :  { %v2229_v39 = vadd.f32 %v2221_v0, %v2209_v55  ;;  %3529 = vmatmul.mubr.msk.f32.vlgmr.msra.gmra.mrb[18].mxu0 %vm81_vm1, %v2231_v11 }
0x1293   :  { %3531 = vmatprep.mubr.msk.f32.mxu0 %vm81_vm1, %v2232_v63  ;;  %3673 = vmatpush3.bf16.msra.mxu0 %v3997_v6 }
0x1294   :  { %v2233_v30 = vadd.f32 %v2229_v39, %v4118_v54  ;;  %3675 = vmatprep.subr.bf16.mxu0 %v3999_v8 }
0x1296   :  { %3532 = vmatmul.mubr.msk.f32.gmra.mrb[20].mxu0 %vm81_vm1, %v2233_v30 }
0x1297   :  { %3677 = vmatpush3.bf16.msra.mxu0 %v3999_v8 }
0x1365   :  { %v4559_v7 = vpop.f32.mrb[18].mxu0 }
0x1366   :  { %v2332_v10 = vmul.f32 %v4559_v7, %v4058_v44  ;;  %v4563_v33 = vpop.f32.mrb[19].mxu0 }
0x1367   :  { %v2331_v37 = vmul.f32 %v4563_v33, %v4058_v44 }
0x1368   :  { %v2336_v49 = vadd.f32 %v2332_v10, %v4071_v52 }
0x1369   :  { %v2335_v12 = vadd.f32 %v2331_v37, %v4071_v52  ;;  %v4569_v17 = vpop.f32.mrb[20].mxu0 }
0x136a   :  { %v2334_v31 = vmul.f32 %v4569_v17, %v4061_v46  ;;  %v4573_v16 = vpop.f32.mrb[21].mxu0  ;;  %v2340_v2 = vmul.f32 %v4575_v15, %v2336_v49 }
0x136b   :  { %v2333_v43 = vmul.f32 %v4573_v16, %v4061_v46  ;;  %v2339_v58 = vmul.f32 %v4580_v48, %v2335_v12 }
0x136c   :  { %v2338_v40 = vadd.f32 %v2334_v31, %v4074_v53  ;;  %v2346_v20 = vsel %vm81_vm1, %v2340_v2, 0.0 }
0x136d   :  { %v2337_v61 = vadd.f32 %v2333_v43, %v4074_v53  ;;  %2347 = vadd.xlane.f32.xlu0 %v2346_v20  ;;  %v2343_v38 = vsel %vm81_vm1, %v2339_v58, 0.0 }
0x136e   :  { %2344 = vadd.xlane.f32.xlu1 %v2343_v38  ;;  %v2342_v34 = vmul.f32 %v4587_v35, %v2338_v40 }
0x136f   :  { %v2341_v59 = vmul.f32 %v4590_v25, %v2337_v61 }
0x1370   :  { %v2352_v23 = vsel %vm81_vm1, %v2342_v34, 0.0 }
0x1371   :  { %v2349_v1 = vsel %vm81_vm1, %v2341_v59, 0.0 }
0x1372   :  { %2353 = vadd.xlane.f32.xlu1 %v2352_v23  ;;  %2350 = vadd.xlane.f32.xlu0 %v2349_v1 }
0x13fa   :  { %v2348_v24 = vpop.xlane.xlu0 %2347 }
0x13fb   :  { %v2345_v14 = vpop.xlane.xlu1 %2344 }
0x13fc   :  { %v2355_v26 = vmax.f32 %v2345_v14, %v2348_v24 }
0x13fe   :  { %v2356_v60 = vrot.slane %v2355_v26, 4 }
0x13ff   :  { %v2354_v27 = vpop.xlane.xlu1 %2353  ;;  %v2351_v28 = vpop.xlane.xlu0 %2350 }
0x1400   :  { %v2357_v29 = vmax.f32 %v2355_v26, %v2356_v60  ;;  %v2362_v36 = vmax.f32 %v2351_v28, %v2354_v27 }
0x1402   :  { %v2358_v62 = vrot.slane %v2357_v29, 2  ;;  %v2363_v32 = vrot.slane %v2362_v36, 4 }
0x1404   :  { %v2359_v41 = vmax.f32 %v2357_v29, %v2358_v62  ;;  %v2364_v42 = vmax.f32 %v2362_v36, %v2363_v32 }
0x1406   :  { %v2360_v9 = vrot.slane %v2359_v41, 1  ;;  %v2365_v45 = vrot.slane %v2364_v42, 2 }
0x1408   :  { %v2361_v47 = vmax.f32 %v2359_v41, %v2360_v9  ;;  %v2366_v5 = vmax.f32 %v2364_v42, %v2365_v45 }
0x140a   :  { %v2369_v13 = vsub.f32 %v2345_v14, %v2361_v47  ;;  %v2370_v19 = vsub.f32 %v2348_v24, %v2361_v47  ;;  %v2367_v50 = vrot.slane %v2366_v5, 1 }
0x140c   :  { %v2373_v55 = vmul.f32 1.442695, %v2369_v13  ;;  %v2375_v56 = vmul.f32 1.442695, %v2370_v19  ;;  %v2368_v22 = vmax.f32 %v2366_v5, %v2367_v50 }
0x140e   :  { %3807 = vpow2.f32 %v2373_v55  ;;  %v2371_v18 = vsub.f32 %v2351_v28, %v2368_v22  ;;  %v2372_v21 = vsub.f32 %v2354_v27, %v2368_v22 }
0x140f   :  { %3809 = vpow2.f32 %v2375_v56 }
0x1410   :  { %v2377_v63 = vmul.f32 1.442695, %v2371_v18  ;;  %v2379_v11 = vmul.f32 1.442695, %v2372_v21 }
0x1412   :  { %3811 = vpow2.f32 %v2377_v63 }
0x1413   :  { %3813 = vpow2.f32 %v2379_v11 }
0x1418   :  { %v3808_v0 = vpop.eup %3807 }
0x1419   :  { %v3810_v39 = vpop.eup %3809  ;;  %v2414_v30 = vsel %vm453_vm2, %v3808_v0, 0.0  ;;  %2383 = vperm.xlu0 %3709, %v3808_v0  }
0x141a   :  { %v2415_v10 = vsel %vm453_vm2, %v3810_v39, 0.0  ;;  %2388 = vperm.xlu1 %3710, %v3810_v39  }
0x141b   :  { %v2416_v37 = vadd.f32 %v2415_v10, %v2414_v30 }
0x141c   :  { %v3812_v49 = vpop.eup %3811 }
0x141d   :  { %v3814_v12 = vpop.eup %3813  ;;  %v2417_v31 = vrot.slane %v2416_v37, 4  ;;  %v2439_v2 = vsel %vm453_vm2, %v3812_v49, 0.0 }
0x141e   :  { %v2440_v43 = vsel %vm453_vm2, %v3814_v12, 0.0  ;;  %2398 = vperm.xlu0 %3709, %v3814_v12   ;;  %2393 = vperm.xlu1 %3710, %v3812_v49  }
0x141f   :  { %v2418_v58 = vadd.f32 %v2417_v31, %v2416_v37  ;;  %v2441_v40 = vadd.f32 %v2440_v43, %v2439_v2 }
0x1421   :  { %v2419_v20 = vrot.slane %v2418_v58, 2  ;;  %v2442_v61 = vrot.slane %v2441_v40, 4 }
0x1423   :  { %v2420_v38 = vadd.f32 %v2419_v20, %v2418_v58  ;;  %v2443_v34 = vadd.f32 %v2442_v61, %v2441_v40 }
0x1425   :  { %v2421_v59 = vrot.slane %v2420_v38, 1  ;;  %v2444_v23 = vrot.slane %v2443_v34, 2 }
0x1427   :  { %v2422_v1 = vadd.f32 %v2421_v59, %v2420_v38  ;;  %v2445_v24 = vadd.f32 %v2444_v23, %v2443_v34 }
0x1429   :  { %3815 = vrcp.f32 %v2422_v1  ;;  %v2446_v14 = vrot.slane %v2445_v24, 1 }
0x142b   :  { %v2447_v26 = vadd.f32 %v2446_v14, %v2445_v24 }
0x142d   :  { %3817 = vrcp.f32 %v2447_v26 }
0x1433   :  { %v3816_v60 = vpop.eup %3815 }
0x1434   :  { %2426 = vperm.xlu1 %3710, %v3816_v60  }
0x1437   :  { %v3818_v27 = vpop.eup %3817 }
0x1438   :  { %2459 = vrot.lane.b32.xlu1 %v4563_v33, %s3945_s0  ;;  %2451 = vperm.xlu0 %3709, %v3818_v27  }
0x143c   :  { %2463 = vrot.lane.b32.xlu1 %v4573_v16, %s3945_s0  ;;  %2461 = vrot.lane.b32.xlu0 %v4559_v7, %s3945_s0 }
0x1440   :  { %2465 = vrot.lane.b32.xlu0 %v4569_v17, %s3945_s0 }
0x1498   :  { %v2384_v28 = vpop.permute.xlu0 %2383 }
0x1499   :  { %v2389_v29 = vpop.permute.xlu1 %2388  ;;  %v2401_v36 = vmul.f32 %v2384_v28, %v4090_v4 }
0x149a   :  { %v2402_v62 = vmul.f32 %v4088_v3, %v2389_v29 }
0x149b   :  { %v2405_v32 = vsel %vm81_vm1, %v2401_v36, 0.0 }
0x149c   :  { %v2406_v33 = vsel %vm81_vm1, %v2402_v62, 0.0 }
0x149d   :  { %v2407_v41 = vadd.f32 %v2406_v33, %v2405_v32  ;;  %v2394_v42 = vpop.permute.xlu1 %2393  ;;  %v2399_v9 = vpop.permute.xlu0 %2398 }
0x149e   :  { %v2403_v16 = vmul.f32 %v2394_v42, %v4099_v57  ;;  %v2404_v7 = vmul.f32 %v4094_v51, %v2399_v9 }
0x149f   :  { %v2408_v45 = vrot.slane %v2407_v41, 4 }
0x14a0   :  { %v2430_v17 = vsel %vm81_vm1, %v2403_v16, 0.0  ;;  %v2431_v47 = vsel %vm81_vm1, %v2404_v7, 0.0 }
0x14a1   :  { %v2432_v5 = vadd.f32 %v2431_v47, %v2430_v17  ;;  %v2409_v13 = vadd.f32 %v2408_v45, %v2407_v41 }
0x14a3   :  { %v2433_v19 = vrot.slane %v2432_v5, 4  ;;  %v2410_v55 = vrot.slane %v2409_v13, 2 }
0x14a5   :  { %v2434_v50 = vadd.f32 %v2433_v19, %v2432_v5  ;;  %v2411_v56 = vadd.f32 %v2410_v55, %v2409_v13 }
0x14a7   :  { %v2435_v22 = vrot.slane %v2434_v50, 2  ;;  %v2412_v18 = vrot.slane %v2411_v56, 1 }
0x14a9   :  { %v2436_v21 = vadd.f32 %v2435_v22, %v2434_v50  ;;  %v2413_v11 = vadd.f32 %v2412_v18, %v2411_v56 }
0x14ab   :  { %v2437_v0 = vrot.slane %v2436_v21, 1 }
0x14ad   :  { %v2438_v49 = vadd.f32 %v2437_v0, %v2436_v21 }
0x14b3   :  { %v2427_v63 = vpop.permute.xlu1 %2426 }
0x14b4   :  { %v2429_v39 = vmul.f32 %v2427_v63, %v2413_v11 }
0x14b7   :  { %v2460_v30 = vpop.permute.xlu1 %2459  ;;  %v2452_v10 = vpop.permute.xlu0 %2451 }
0x14b8   :  { %v2471_v37 = vadd.f32 %v2460_v30, %v2429_v39  ;;  %v2454_v31 = vmul.f32 %v2452_v10, %v2438_v49 }
0x14ba   :  { %v2475_v12 = vadd.f32 %v2471_v37, %v4118_v54 }
0x14bb   :  { %v2464_v2 = vpop.permute.xlu1 %2463  ;;  %v2462_v43 = vpop.permute.xlu0 %2461 }
0x14bc   :  { %v2473_v58 = vadd.f32 %v2464_v2, %v2454_v31  ;;  %v2472_v40 = vadd.f32 %v2462_v43, %v2429_v39  ;;  %3542 = vmatprep.mubr.msk.f32.mxu1 %vm81_vm1, %v2475_v12 }
0x14be   :  { %v2477_v20 = vadd.f32 %v2473_v58, %v4118_v54  ;;  %v2476_v61 = vadd.f32 %v2472_v40, %v4118_v54 }
0x14bf   :  { %v2466_v38 = vpop.permute.xlu0 %2465 }
0x14c0   :  { %v2474_v34 = vadd.f32 %v2466_v38, %v2454_v31  ;;  %3543 = vmatmul.mubr.msk.f32.vlgmr.msra.gmra.mrb[20].mxu1 %vm81_vm1, %v2476_v61 }
0x14c1   :  { %3545 = vmatprep.mubr.msk.f32.mxu1 %vm81_vm1, %v2477_v20  ;;  %3681 = vmatpush3.bf16.msra.mxu1 %v3997_v6 }
0x14c2   :  { %v2478_v59 = vadd.f32 %v2474_v34, %v4118_v54  ;;  %3683 = vmatprep.subr.bf16.mxu1 %v3999_v8 }
0x14c4   :  { %3546 = vmatmul.mubr.msk.f32.gmra.mrb[22].mxu1 %vm81_vm1, %v2478_v59 }
0x14c5   :  { %3685 = vmatpush3.bf16.msra.mxu1 %v3999_v8 }
0x1593   :  { %v4626_v23 = vpop.f32.mrb[20].mxu1 }
0x1594   :  { %v2577_v1 = vmul.f32 %v4626_v23, %v4058_v44  ;;  %v4630_v24 = vpop.f32.mrb[21].mxu1 }
0x1595   :  { %v2576_v14 = vmul.f32 %v4630_v24, %v4058_v44 }
0x1596   :  { %v2581_v6 = vadd.f32 %v2577_v1, %v4071_v52 }
0x1597   :  { %v2580_v26 = vadd.f32 %v2576_v14, %v4071_v52  ;;  %v4636_v60 = vpop.f32.mrb[22].mxu1 }
0x1598   :  { %v2579_v27 = vmul.f32 %v4636_v60, %v4061_v46  ;;  %v4640_v8 = vpop.f32.mrb[23].mxu1  ;;  %v2585_v28 = vmul.f32 %v4575_v15, %v2581_v6 }
0x1599   :  { %v2578_v29 = vmul.f32 %v4640_v8, %v4061_v46  ;;  %v2584_v36 = vmul.f32 %v4580_v48, %v2580_v26 }
0x159a   :  { %v2583_v62 = vadd.f32 %v2579_v27, %v4074_v53  ;;  %v2591_v32 = vsel %vm81_vm1, %v2585_v28, 0.0 }
0x159b   :  { %v2582_v33 = vadd.f32 %v2578_v29, %v4074_v53  ;;  %2592 = vadd.xlane.f32.xlu0 %v2591_v32  ;;  %v2588_v41 = vsel %vm81_vm1, %v2584_v36, 0.0 }
0x159c   :  { %2589 = vadd.xlane.f32.xlu1 %v2588_v41  ;;  %v2587_v42 = vmul.f32 %v4587_v35, %v2583_v62 }
0x159d   :  { %v2586_v9 = vmul.f32 %v4590_v25, %v2582_v33 }
0x159e   :  { %v2597_v16 = vsel %vm81_vm1, %v2587_v42, 0.0 }
0x159f   :  { %v2594_v7 = vsel %vm81_vm1, %v2586_v9, 0.0 }
0x15a0   :  { %2598 = vadd.xlane.f32.xlu1 %v2597_v16  ;;  %2595 = vadd.xlane.f32.xlu0 %v2594_v7 }
0x1628   :  { %v2593_v45 = vpop.xlane.xlu0 %2592 }
0x1629   :  { %v2590_v17 = vpop.xlane.xlu1 %2589 }
0x162a   :  { %v2600_v47 = vmax.f32 %v2590_v17, %v2593_v45 }
0x162c   :  { %v2601_v5 = vrot.slane %v2600_v47, 4 }
0x162d   :  { %v2599_v13 = vpop.xlane.xlu1 %2598  ;;  %v2596_v19 = vpop.xlane.xlu0 %2595 }
0x162e   :  { %v2602_v50 = vmax.f32 %v2600_v47, %v2601_v5  ;;  %v2607_v55 = vmax.f32 %v2596_v19, %v2599_v13 }
0x1630   :  { %v2603_v56 = vrot.slane %v2602_v50, 2  ;;  %v2608_v22 = vrot.slane %v2607_v55, 4 }
0x1632   :  { %v2604_v18 = vmax.f32 %v2602_v50, %v2603_v56  ;;  %v2609_v21 = vmax.f32 %v2607_v55, %v2608_v22 }
0x1634   :  { %v2605_v63 = vrot.slane %v2604_v18, 1  ;;  %v2610_v11 = vrot.slane %v2609_v21, 2 }
0x1636   :  { %v2606_v0 = vmax.f32 %v2604_v18, %v2605_v63  ;;  %v2611_v39 = vmax.f32 %v2609_v21, %v2610_v11 }
0x1638   :  { %v2614_v30 = vsub.f32 %v2590_v17, %v2606_v0  ;;  %v2615_v10 = vsub.f32 %v2593_v45, %v2606_v0  ;;  %v2612_v37 = vrot.slane %v2611_v39, 1 }
0x163a   :  { %v2618_v49 = vmul.f32 1.442695, %v2614_v30  ;;  %v2620_v12 = vmul.f32 1.442695, %v2615_v10  ;;  %v2613_v31 = vmax.f32 %v2611_v39, %v2612_v37 }
0x163c   :  { %3819 = vpow2.f32 %v2618_v49  ;;  %v2616_v2 = vsub.f32 %v2596_v19, %v2613_v31  ;;  %v2617_v43 = vsub.f32 %v2599_v13, %v2613_v31 }
0x163d   :  { %3821 = vpow2.f32 %v2620_v12 }
0x163e   :  { %v2622_v58 = vmul.f32 1.442695, %v2616_v2  ;;  %v2624_v40 = vmul.f32 1.442695, %v2617_v43 }
0x1640   :  { %3823 = vpow2.f32 %v2622_v58 }
0x1641   :  { %3825 = vpow2.f32 %v2624_v40 }
0x1646   :  { %v3820_v20 = vpop.eup %3819 }
0x1647   :  { %v3822_v61 = vpop.eup %3821  ;;  %v2659_v38 = vsel %vm453_vm2, %v3820_v20, 0.0  ;;  %2628 = vperm.xlu0 %3709, %v3820_v20  }
0x1648   :  { %v2660_v34 = vsel %vm453_vm2, %v3822_v61, 0.0  ;;  %2633 = vperm.xlu1 %3710, %v3822_v61  }
0x1649   :  { %v2661_v59 = vadd.f32 %v2660_v34, %v2659_v38 }
0x164a   :  { %v3824_v1 = vpop.eup %3823 }
0x164b   :  { %v3826_v14 = vpop.eup %3825  ;;  %v2662_v6 = vrot.slane %v2661_v59, 4  ;;  %v2684_v26 = vsel %vm453_vm2, %v3824_v1, 0.0 }
0x164c   :  { %v2685_v27 = vsel %vm453_vm2, %v3826_v14, 0.0  ;;  %2643 = vperm.xlu0 %3709, %v3826_v14   ;;  %2638 = vperm.xlu1 %3710, %v3824_v1  }
0x164d   :  { %v2663_v28 = vadd.f32 %v2662_v6, %v2661_v59  ;;  %v2686_v29 = vadd.f32 %v2685_v27, %v2684_v26 }
0x164f   :  { %v2664_v36 = vrot.slane %v2663_v28, 2  ;;  %v2687_v62 = vrot.slane %v2686_v29, 4 }
0x1651   :  { %v2665_v32 = vadd.f32 %v2664_v36, %v2663_v28  ;;  %v2688_v33 = vadd.f32 %v2687_v62, %v2686_v29 }
0x1653   :  { %v2666_v41 = vrot.slane %v2665_v32, 1  ;;  %v2689_v42 = vrot.slane %v2688_v33, 2 }
0x1655   :  { %v2667_v9 = vadd.f32 %v2666_v41, %v2665_v32  ;;  %v2690_v16 = vadd.f32 %v2689_v42, %v2688_v33 }
0x1657   :  { %3827 = vrcp.f32 %v2667_v9  ;;  %v2691_v7 = vrot.slane %v2690_v16, 1 }
0x1659   :  { %v2692_v45 = vadd.f32 %v2691_v7, %v2690_v16 }
0x165b   :  { %3829 = vrcp.f32 %v2692_v45 }
0x1661   :  { %v3828_v17 = vpop.eup %3827 }
0x1662   :  { %2671 = vperm.xlu1 %3710, %v3828_v17  }
0x1665   :  { %v3830_v47 = vpop.eup %3829 }
0x1666   :  { %2704 = vrot.lane.b32.xlu1 %v4630_v24, %s3945_s0  ;;  %2696 = vperm.xlu0 %3709, %v3830_v47  }
0x166a   :  { %2708 = vrot.lane.b32.xlu1 %v4640_v8, %s3945_s0  ;;  %2706 = vrot.lane.b32.xlu0 %v4626_v23, %s3945_s0 }
0x166e   :  { %2710 = vrot.lane.b32.xlu0 %v4636_v60, %s3945_s0 }
0x16c6   :  { %v2629_v5 = vpop.permute.xlu0 %2628 }
0x16c7   :  { %v2634_v13 = vpop.permute.xlu1 %2633  ;;  %v2646_v19 = vmul.f32 %v2629_v5, %v4090_v4 }
0x16c8   :  { %v2647_v50 = vmul.f32 %v4088_v3, %v2634_v13 }
0x16c9   :  { %v2650_v55 = vsel %vm81_vm1, %v2646_v19, 0.0 }
0x16ca   :  { %v2651_v24 = vsel %vm81_vm1, %v2647_v50, 0.0 }
0x16cb   :  { %v2652_v56 = vadd.f32 %v2651_v24, %v2650_v55  ;;  %v2639_v22 = vpop.permute.xlu1 %2638  ;;  %v2644_v18 = vpop.permute.xlu0 %2643 }
0x16cc   :  { %v2648_v8 = vmul.f32 %v2639_v22, %v4099_v57  ;;  %v2649_v23 = vmul.f32 %v4094_v51, %v2644_v18 }
0x16cd   :  { %v2653_v21 = vrot.slane %v2652_v56, 4 }
0x16ce   :  { %v2675_v60 = vsel %vm81_vm1, %v2648_v8, 0.0  ;;  %v2676_v63 = vsel %vm81_vm1, %v2649_v23, 0.0 }
0x16cf   :  { %v2677_v11 = vadd.f32 %v2676_v63, %v2675_v60  ;;  %v2654_v0 = vadd.f32 %v2653_v21, %v2652_v56 }
0x16d1   :  { %v2678_v39 = vrot.slane %v2677_v11, 4  ;;  %v2655_v10 = vrot.slane %v2654_v0, 2 }
0x16d3   :  { %v2679_v30 = vadd.f32 %v2678_v39, %v2677_v11  ;;  %v2656_v37 = vadd.f32 %v2655_v10, %v2654_v0 }
0x16d5   :  { %v2680_v49 = vrot.slane %v2679_v30, 2  ;;  %v2657_v12 = vrot.slane %v2656_v37, 1 }
0x16d7   :  { %v2681_v31 = vadd.f32 %v2680_v49, %v2679_v30  ;;  %v2658_v43 = vadd.f32 %v2657_v12, %v2656_v37 }
0x16d9   :  { %v2682_v58 = vrot.slane %v2681_v31, 1 }
0x16db   :  { %v2683_v34 = vadd.f32 %v2682_v58, %v2681_v31 }
0x16e1   :  { %v2672_v2 = vpop.permute.xlu1 %2671 }
0x16e2   :  { %v2674_v40 = vmul.f32 %v2672_v2, %v2658_v43 }
0x16e5   :  { %v2705_v20 = vpop.permute.xlu1 %2704  ;;  %v2697_v61 = vpop.permute.xlu0 %2696 }
0x16e6   :  { %v2716_v38 = vadd.f32 %v2705_v20, %v2674_v40  ;;  %v2699_v1 = vmul.f32 %v2697_v61, %v2683_v34 }
0x16e8   :  { %v2720_v59 = vadd.f32 %v2716_v38, %v4118_v54 }
0x16e9   :  { %v2709_v14 = vpop.permute.xlu1 %2708  ;;  %v2707_v6 = vpop.permute.xlu0 %2706 }
0x16ea   :  { %v2718_v26 = vadd.f32 %v2709_v14, %v2699_v1  ;;  %v2717_v27 = vadd.f32 %v2707_v6, %v2674_v40  ;;  %3556 = vmatprep.mubr.msk.f32.mxu0 %vm81_vm1, %v2720_v59 }
0x16ec   :  { %v2722_v28 = vadd.f32 %v2718_v26, %v4118_v54  ;;  %v2721_v29 = vadd.f32 %v2717_v27, %v4118_v54 }
0x16ed   :  { %v2711_v36 = vpop.permute.xlu0 %2710 }
0x16ee   :  { %v2719_v62 = vadd.f32 %v2711_v36, %v2699_v1  ;;  %3557 = vmatmul.mubr.msk.f32.vlgmr.msra.gmra.mrb[22].mxu0 %vm81_vm1, %v2721_v29 }
0x16ef   :  { %3559 = vmatprep.mubr.msk.f32.mxu0 %vm81_vm1, %v2722_v28 }
0x16f0   :  { %v2723_v32 = vadd.f32 %v2719_v62, %v4118_v54 }
0x16f2   :  { %3560 = vmatmul.mubr.msk.f32.gmra.mrb[24].mxu0 %vm81_vm1, %v2723_v32 }
0x17c1   :  { %v4682_v33 = vpop.f32.mrb[22].mxu0 }
0x17c2   :  { %v2822_v41 = vmul.f32 %v4682_v33, %v4058_v44  ;;  %v4686_v42 = vpop.f32.mrb[23].mxu0 }
0x17c3   :  { %v2821_v9 = vmul.f32 %v4686_v42, %v4058_v44 }
0x17c4   :  { %v2826_v16 = vadd.f32 %v2822_v41, %v4071_v52 }
0x17c5   :  { %v2825_v7 = vadd.f32 %v2821_v9, %v4071_v52  ;;  %v4692_v45 = vpop.f32.mrb[24].mxu0 }
0x17c6   :  { %v2824_v17 = vmul.f32 %v4692_v45, %v4061_v46  ;;  %v4696_v47 = vpop.f32.mrb[25].mxu0  ;;  %v2830_v5 = vmul.f32 %v4575_v15, %v2826_v16 }
0x17c7   :  { %v2823_v13 = vmul.f32 %v4696_v47, %v4061_v46  ;;  %v2829_v19 = vmul.f32 %v4580_v48, %v2825_v7 }
0x17c8   :  { %v2828_v50 = vadd.f32 %v2824_v17, %v4074_v53  ;;  %v2836_v55 = vsel %vm81_vm1, %v2830_v5, 0.0 }
0x17c9   :  { %v2827_v24 = vadd.f32 %v2823_v13, %v4074_v53  ;;  %2837 = vadd.xlane.f32.xlu0 %v2836_v55  ;;  %v2833_v56 = vsel %vm81_vm1, %v2829_v19, 0.0 }
0x17ca   :  { %2834 = vadd.xlane.f32.xlu1 %v2833_v56  ;;  %v2832_v22 = vmul.f32 %v4587_v35, %v2828_v50 }
0x17cb   :  { %v2831_v18 = vmul.f32 %v4590_v25, %v2827_v24 }
0x17cc   :  { %v2842_v8 = vsel %vm81_vm1, %v2832_v22, 0.0 }
0x17cd   :  { %v2839_v23 = vsel %vm81_vm1, %v2831_v18, 0.0 }
0x17ce   :  { %2843 = vadd.xlane.f32.xlu1 %v2842_v8  ;;  %2840 = vadd.xlane.f32.xlu0 %v2839_v23 }
0x1856   :  { %v2838_v21 = vpop.xlane.xlu0 %2837 }
0x1857   :  { %v2835_v60 = vpop.xlane.xlu1 %2834 }
0x1858   :  { %v2845_v63 = vmax.f32 %v2835_v60, %v2838_v21 }
0x185a   :  { %v2846_v11 = vrot.slane %v2845_v63, 4 }
0x185b   :  { %v2844_v0 = vpop.xlane.xlu1 %2843  ;;  %v2841_v39 = vpop.xlane.xlu0 %2840 }
0x185c   :  { %v2847_v30 = vmax.f32 %v2845_v63, %v2846_v11  ;;  %v2852_v10 = vmax.f32 %v2841_v39, %v2844_v0 }
0x185e   :  { %v2848_v37 = vrot.slane %v2847_v30, 2  ;;  %v2853_v49 = vrot.slane %v2852_v10, 4 }
0x1860   :  { %v2849_v12 = vmax.f32 %v2847_v30, %v2848_v37  ;;  %v2854_v31 = vmax.f32 %v2852_v10, %v2853_v49 }
0x1862   :  { %v2850_v2 = vrot.slane %v2849_v12, 1  ;;  %v2855_v43 = vrot.slane %v2854_v31, 2 }
0x1864   :  { %v2851_v58 = vmax.f32 %v2849_v12, %v2850_v2  ;;  %v2856_v40 = vmax.f32 %v2854_v31, %v2855_v43 }
0x1866   :  { %v2859_v20 = vsub.f32 %v2835_v60, %v2851_v58  ;;  %v2860_v61 = vsub.f32 %v2838_v21, %v2851_v58  ;;  %v2857_v38 = vrot.slane %v2856_v40, 1 }
0x1868   :  { %v2863_v34 = vmul.f32 1.442695, %v2859_v20  ;;  %v2865_v59 = vmul.f32 1.442695, %v2860_v61  ;;  %v2858_v1 = vmax.f32 %v2856_v40, %v2857_v38 }
0x186a   :  { %3831 = vpow2.f32 %v2863_v34  ;;  %v2861_v14 = vsub.f32 %v2841_v39, %v2858_v1  ;;  %v2862_v6 = vsub.f32 %v2844_v0, %v2858_v1 }
0x186b   :  { %3833 = vpow2.f32 %v2865_v59 }
0x186c   :  { %v2867_v26 = vmul.f32 1.442695, %v2861_v14  ;;  %v2869_v27 = vmul.f32 1.442695, %v2862_v6 }
0x186e   :  { %3835 = vpow2.f32 %v2867_v26 }
0x186f   :  { %3837 = vpow2.f32 %v2869_v27 }
0x1874   :  { %v3832_v28 = vpop.eup %3831 }
0x1875   :  { %v3834_v29 = vpop.eup %3833  ;;  %v2904_v36 = vsel %vm453_vm2, %v3832_v28, 0.0  ;;  %2873 = vperm.xlu0 %3709, %v3832_v28  }
0x1876   :  { %v2905_v62 = vsel %vm453_vm2, %v3834_v29, 0.0  ;;  %2878 = vperm.xlu1 %3710, %v3834_v29  }
0x1877   :  { %v2906_v32 = vadd.f32 %v2905_v62, %v2904_v36 }
0x1878   :  { %v3836_v41 = vpop.eup %3835 }
0x1879   :  { %v3838_v9 = vpop.eup %3837  ;;  %v2907_v16 = vrot.slane %v2906_v32, 4  ;;  %v2929_v7 = vsel %vm453_vm2, %v3836_v41, 0.0 }
0x187a   :  { %v2930_v17 = vsel %vm453_vm2, %v3838_v9, 0.0  ;;  %2888 = vperm.xlu0 %3709, %v3838_v9   ;;  %2883 = vperm.xlu1 %3710, %v3836_v41  }
0x187b   :  { %v2908_v5 = vadd.f32 %v2907_v16, %v2906_v32  ;;  %v2931_v13 = vadd.f32 %v2930_v17, %v2929_v7 }
0x187d   :  { %v2909_v19 = vrot.slane %v2908_v5, 2  ;;  %v2932_v50 = vrot.slane %v2931_v13, 4 }
0x187f   :  { %v2910_v55 = vadd.f32 %v2909_v19, %v2908_v5  ;;  %v2933_v24 = vadd.f32 %v2932_v50, %v2931_v13 }
0x1881   :  { %v2911_v56 = vrot.slane %v2910_v55, 1  ;;  %v2934_v22 = vrot.slane %v2933_v24, 2 }
0x1883   :  { %v2912_v18 = vadd.f32 %v2911_v56, %v2910_v55  ;;  %v2935_v8 = vadd.f32 %v2934_v22, %v2933_v24 }
0x1885   :  { %3839 = vrcp.f32 %v2912_v18  ;;  %v2936_v23 = vrot.slane %v2935_v8, 1 }
0x1887   :  { %v2937_v21 = vadd.f32 %v2936_v23, %v2935_v8 }
0x1889   :  { %3841 = vrcp.f32 %v2937_v21 }
0x188f   :  { %v3840_v60 = vpop.eup %3839 }
0x1890   :  { %2916 = vperm.xlu1 %3710, %v3840_v60  }
0x1893   :  { %v3842_v63 = vpop.eup %3841 }
0x1894   :  { %2949 = vrot.lane.b32.xlu1 %v4686_v42, %s3945_s0  ;;  %2941 = vperm.xlu0 %3709, %v3842_v63  }
0x1898   :  { %2953 = vrot.lane.b32.xlu1 %v4696_v47, %s3945_s0  ;;  %2951 = vrot.lane.b32.xlu0 %v4682_v33, %s3945_s0 }
0x189c   :  { %2955 = vrot.lane.b32.xlu0 %v4692_v45, %s3945_s0 }
0x18f4   :  { %v2874_v11 = vpop.permute.xlu0 %2873 }
0x18f5   :  { %v2879_v0 = vpop.permute.xlu1 %2878  ;;  %v2891_v39 = vmul.f32 %v2874_v11, %v4090_v4 }
0x18f6   :  { %v2892_v30 = vmul.f32 %v4088_v3, %v2879_v0 }
0x18f7   :  { %v2895_v10 = vsel %vm81_vm1, %v2891_v39, 0.0 }
0x18f8   :  { %v2896_v42 = vsel %vm81_vm1, %v2892_v30, 0.0 }
0x18f9   :  { %v2897_v37 = vadd.f32 %v2896_v42, %v2895_v10  ;;  %v2884_v49 = vpop.permute.xlu1 %2883  ;;  %v2889_v12 = vpop.permute.xlu0 %2888 }
0x18fa   :  { %v2893_v47 = vmul.f32 %v2884_v49, %v4099_v57  ;;  %v2894_v33 = vmul.f32 %v4094_v51, %v2889_v12 }
0x18fb   :  { %v2898_v31 = vrot.slane %v2897_v37, 4 }
0x18fc   :  { %v2920_v45 = vsel %vm81_vm1, %v2893_v47, 0.0  ;;  %v2921_v2 = vsel %vm81_vm1, %v2894_v33, 0.0 }
0x18fd   :  { %v2922_v43 = vadd.f32 %v2921_v2, %v2920_v45  ;;  %v2899_v58 = vadd.f32 %v2898_v31, %v2897_v37 }
0x18ff   :  { %v2923_v40 = vrot.slane %v2922_v43, 4  ;;  %v2900_v61 = vrot.slane %v2899_v58, 2 }
0x1901   :  { %v2924_v20 = vadd.f32 %v2923_v40, %v2922_v43  ;;  %v2901_v38 = vadd.f32 %v2900_v61, %v2899_v58 }
0x1903   :  { %v2925_v34 = vrot.slane %v2924_v20, 2  ;;  %v2902_v59 = vrot.slane %v2901_v38, 1 }
0x1905   :  { %v2926_v1 = vadd.f32 %v2925_v34, %v2924_v20  ;;  %v2903_v6 = vadd.f32 %v2902_v59, %v2901_v38 }
0x1907   :  { %v2927_v26 = vrot.slane %v2926_v1, 1 }
0x1909   :  { %v2928_v62 = vadd.f32 %v2927_v26, %v2926_v1 }
0x190f   :  { %v2917_v14 = vpop.permute.xlu1 %2916 }
0x1910   :  { %v2919_v27 = vmul.f32 %v2917_v14, %v2903_v6 }
0x1913   :  { %v2950_v28 = vpop.permute.xlu1 %2949  ;;  %v2942_v29 = vpop.permute.xlu0 %2941 }
0x1914   :  { %v2961_v36 = vadd.f32 %v2950_v28, %v2919_v27  ;;  %v2944_v41 = vmul.f32 %v2942_v29, %v2928_v62 }
0x1916   :  { %v2965_v32 = vadd.f32 %v2961_v36, %v4118_v54 }
0x1917   :  { %v2954_v9 = vpop.permute.xlu1 %2953  ;;  %v2952_v16 = vpop.permute.xlu0 %2951 }
0x1918   :  { %v2963_v7 = vadd.f32 %v2954_v9, %v2944_v41  ;;  %v2962_v17 = vadd.f32 %v2952_v16, %v2919_v27  ;;  %3570 = vmatprep.mubr.msk.f32.mxu1 %vm81_vm1, %v2965_v32 }
0x191a   :  { %v2967_v5 = vadd.f32 %v2963_v7, %v4118_v54  ;;  %v2966_v13 = vadd.f32 %v2962_v17, %v4118_v54 }
0x191b   :  { %v2956_v19 = vpop.permute.xlu0 %2955 }
0x191c   :  { %v2964_v50 = vadd.f32 %v2956_v19, %v2944_v41  ;;  %3571 = vmatmul.mubr.msk.f32.vlgmr.msra.gmra.mrb[24].mxu1 %vm81_vm1, %v2966_v13 }
0x191d   :  { %3573 = vmatprep.mubr.msk.f32.mxu1 %vm81_vm1, %v2967_v5 }
0x191e   :  { %v2968_v55 = vadd.f32 %v2964_v50, %v4118_v54 }
0x1920   :  { %3574 = vmatmul.mubr.msk.f32.gmra.mrb[26].mxu1 %vm81_vm1, %v2968_v55 }
0x19ef   :  { %v3572_v24 = vpop.f32.mrb[24].mxu1 }
0x19f0   :  { %v4738_v56 = vpop.f32.mrb[25].mxu1  ;;  %v3067_v18 = vmul.f32 %v3572_v24, %v4058_v44 }
0x19f1   :  { %v3066_v22 = vmul.f32 %v4738_v56, %v4058_v44 }
0x19f2   :  { %v3071_v0 = vadd.f32 %v3067_v18, %v4071_v52 }
0x19f3   :  { %v3575_v8 = vpop.f32.mrb[26].mxu1  ;;  %v3070_v63 = vadd.f32 %v3066_v22, %v4071_v52 }
0x19f4   :  { %v3069_v23 = vmul.f32 %v3575_v8, %v4061_v46  ;;  %v4744_v21 = vpop.f32.mrb[27].mxu1 }
0x19f5   :  { %v3068_v60 = vmul.f32 %v4744_v21, %v4061_v46  ;;  %v3074_v42 = vmul.f32 %v4580_v48, %v3070_v63  ;;  %v3075_v46 = vmul.f32 %v4575_v15, %v3071_v0 }
0x19f6   :  { %v3073_v11 = vadd.f32 %v3069_v23, %v4074_v53 }
0x19f7   :  { %v3072_v39 = vadd.f32 %v3068_v60, %v4074_v53  ;;  %v3078_v49 = vsel %vm81_vm1, %v3074_v42, 0.0  ;;  %v3081_v52 = vsel %vm81_vm1, %v3075_v46, 0.0 }
0x19f8   :  { %v3077_v30 = vmul.f32 %v4587_v35, %v3073_v11 }
0x19f9   :  { %v3076_v44 = vmul.f32 %v4590_v25, %v3072_v39 }
0x19fa   :  { %v3087_v10 = vsel %vm81_vm1, %v3077_v30, 0.0 }
0x19fb   :  { %3088 = vadd.xlane.f32.xlu0 %v3087_v10  ;;  %v3084_v37 = vsel %vm81_vm1, %v3076_v44, 0.0 }
0x19fc   :  { %3085 = vadd.xlane.f32.xlu1 %v3084_v37 }
0x19ff   :  { %3079 = vadd.xlane.f32.xlu0 %v3078_v49 }
0x1a00   :  { %3082 = vadd.xlane.f32.xlu1 %v3081_v52 }
0x1a88   :  { %v3089_v53 = vpop.xlane.xlu0 %3088 }
0x1a89   :  { %v3086_v35 = vpop.xlane.xlu1 %3085 }
0x1a8a   :  { %v3097_v12 = vmax.f32 %v3086_v35, %v3089_v53 }
0x1a8c   :  { %v3098_v25 = vrot.slane %v3097_v12, 4  ;;  %v3080_v47 = vpop.xlane.xlu0 %3079 }
0x1a8d   :  { %v3083_v33 = vpop.xlane.xlu1 %3082 }
0x1a8e   :  { %v3099_v31 = vmax.f32 %v3097_v12, %v3098_v25  ;;  %v3090_v48 = vmax.f32 %v3080_v47, %v3083_v33 }
0x1a90   :  { %v3100_v45 = vrot.slane %v3099_v31, 2  ;;  %v3091_v2 = vrot.slane %v3090_v48, 4 }
0x1a92   :  { %v3101_v43 = vmax.f32 %v3099_v31, %v3100_v45  ;;  %v3092_v58 = vmax.f32 %v3090_v48, %v3091_v2 }
0x1a94   :  { %v3102_v15 = vrot.slane %v3101_v43, 1  ;;  %v3093_v40 = vrot.slane %v3092_v58, 2 }
0x1a96   :  { %v3103_v20 = vmax.f32 %v3101_v43, %v3102_v15  ;;  %v3094_v61 = vmax.f32 %v3092_v58, %v3093_v40 }
0x1a98   :  { %v3106_v38 = vsub.f32 %v3086_v35, %v3103_v20  ;;  %v3107_v34 = vsub.f32 %v3089_v53, %v3103_v20  ;;  %v3095_v59 = vrot.slane %v3094_v61, 1 }
0x1a9a   :  { %v3112_v1 = vmul.f32 1.442695, %v3106_v38  ;;  %v3114_v14 = vmul.f32 1.442695, %v3107_v34  ;;  %v3096_v6 = vmax.f32 %v3094_v61, %v3095_v59 }
0x1a9c   :  { %3843 = vpow2.f32 %v3112_v1  ;;  %v3104_v26 = vsub.f32 %v3080_v47, %v3096_v6  ;;  %v3105_v27 = vsub.f32 %v3083_v33, %v3096_v6 }
0x1a9d   :  { %3845 = vpow2.f32 %v3114_v14 }
0x1a9e   :  { %v3108_v28 = vmul.f32 1.442695, %v3104_v26  ;;  %v3110_v29 = vmul.f32 1.442695, %v3105_v27 }
0x1aa0   :  { %3847 = vpow2.f32 %v3108_v28 }
0x1aa1   :  { %3849 = vpow2.f32 %v3110_v29 }
0x1aa6   :  { %v3844_v36 = vpop.eup %3843 }
0x1aa7   :  { %v3846_v62 = vpop.eup %3845  ;;  %v3174_v32 = vsel %vm453_vm2, %v3844_v36, 0.0  ;;  %3128 = vperm.xlu0 %3709, %v3844_v36  }
0x1aa8   :  { %v3175_v41 = vsel %vm453_vm2, %v3846_v62, 0.0  ;;  %3133 = vperm.xlu1 %3710, %v3846_v62  }
0x1aa9   :  { %v3176_v9 = vadd.f32 %v3175_v41, %v3174_v32 }
0x1aaa   :  { %v3848_v16 = vpop.eup %3847 }
0x1aab   :  { %v3850_v7 = vpop.eup %3849  ;;  %v3177_v17 = vrot.slane %v3176_v9, 4  ;;  %v3149_v5 = vsel %vm453_vm2, %v3848_v16, 0.0 }
0x1aac   :  { %v3150_v13 = vsel %vm453_vm2, %v3850_v7, 0.0  ;;  %3123 = vperm.xlu0 %3709, %v3850_v7   ;;  %3118 = vperm.xlu1 %3710, %v3848_v16  }
0x1aad   :  { %v3178_v19 = vadd.f32 %v3177_v17, %v3176_v9  ;;  %v3151_v50 = vadd.f32 %v3150_v13, %v3149_v5 }
0x1aaf   :  { %v3179_v55 = vrot.slane %v3178_v19, 2  ;;  %v3152_v24 = vrot.slane %v3151_v50, 4 }
0x1ab1   :  { %v3180_v22 = vadd.f32 %v3179_v55, %v3178_v19  ;;  %v3153_v18 = vadd.f32 %v3152_v24, %v3151_v50 }
0x1ab3   :  { %v3181_v8 = vrot.slane %v3180_v22, 1  ;;  %v3154_v23 = vrot.slane %v3153_v18, 2 }
0x1ab5   :  { %v3182_v60 = vadd.f32 %v3181_v8, %v3180_v22  ;;  %v3155_v63 = vadd.f32 %v3154_v23, %v3153_v18 }
0x1ab7   :  { %3851 = vrcp.f32 %v3182_v60  ;;  %v3156_v11 = vrot.slane %v3155_v63, 1 }
0x1ab9   :  { %v3157_v0 = vadd.f32 %v3156_v11, %v3155_v63 }
0x1abb   :  { %3853 = vrcp.f32 %v3157_v0 }
0x1ac1   :  { %v3852_v39 = vpop.eup %3851 }
0x1ac2   :  { %3186 = vperm.xlu1 %3710, %v3852_v39  }
0x1ac5   :  { %v3854_v30 = vpop.eup %3853 }
0x1ac6   :  { %3194 = vrot.lane.b32.xlu1 %v4744_v21, %s3945_s0  ;;  %3161 = vperm.xlu0 %3709, %v3854_v30  }
0x1aca   :  { %3192 = vrot.lane.b32.xlu0 %v4738_v56, %s3945_s0 }
0x1b26   :  { %v3129_v44 = vpop.permute.xlu0 %3128 }
0x1b27   :  { %v3138_v10 = vmul.f32 %v3129_v44, %v4099_v57  ;;  %v3134_v42 = vpop.permute.xlu1 %3133 }
0x1b28   :  { %v3139_v37 = vmul.f32 %v4094_v51, %v3134_v42 }
0x1b29   :  { %v3165_v46 = vsel %vm81_vm1, %v3138_v10, 0.0 }
0x1b2a   :  { %v3166_v49 = vsel %vm81_vm1, %v3139_v37, 0.0 }
0x1b2b   :  { %v3167_v52 = vadd.f32 %v3166_v49, %v3165_v46  ;;  %v3124_v53 = vpop.permute.xlu0 %3123  ;;  %v3119_v35 = vpop.permute.xlu1 %3118 }
0x1b2c   :  { %v3137_v12 = vmul.f32 %v4088_v3, %v3124_v53  ;;  %v3136_v21 = vmul.f32 %v3119_v35, %v4090_v4 }
0x1b2d   :  { %v3168_v25 = vrot.slane %v3167_v52, 4 }
0x1b2e   :  { %v3141_v56 = vsel %vm81_vm1, %v3137_v12, 0.0  ;;  %v3140_v47 = vsel %vm81_vm1, %v3136_v21, 0.0 }
0x1b2f   :  { %v3142_v57 = vadd.f32 %v3141_v56, %v3140_v47  ;;  %v3169_v33 = vadd.f32 %v3168_v25, %v3167_v52 }
0x1b31   :  { %v3143_v31 = vrot.slane %v3142_v57, 4  ;;  %v3170_v48 = vrot.slane %v3169_v33, 2 }
0x1b33   :  { %v3144_v51 = vadd.f32 %v3143_v31, %v3142_v57  ;;  %v3171_v45 = vadd.f32 %v3170_v48, %v3169_v33 }
0x1b35   :  { %v3145_v2 = vrot.slane %v3144_v51, 2  ;;  %v3172_v43 = vrot.slane %v3171_v45, 1 }
0x1b37   :  { %v3146_v58 = vadd.f32 %v3145_v2, %v3144_v51  ;;  %v3173_v40 = vadd.f32 %v3172_v43, %v3171_v45 }
0x1b39   :  { %v3147_v20 = vrot.slane %v3146_v58, 1 }
0x1b3b   :  { %v3148_v38 = vadd.f32 %v3147_v20, %v3146_v58 }
0x1b41   :  { %v3187_v15 = vpop.permute.xlu1 %3186 }
0x1b42   :  { %v3189_v3 = vmul.f32 %v3187_v15, %v3173_v40 }
0x1b45   :  { %v3162_v61 = vpop.permute.xlu0 %3161  ;;  %v3195_v4 = vpop.permute.xlu1 %3194 }
0x1b46   :  { %v3199_v34 = vadd.f32 %v3195_v4, %v3189_v3  ;;  %v3164_v59 = vmul.f32 %v3162_v61, %v3148_v38 }
0x1b48   :  { %v3201_v1 = vadd.f32 %v3199_v34, %v4118_v54 }
0x1b49   :  { %v3193_v14 = vpop.permute.xlu0 %3192 }
0x1b4a   :  { %v3198_v6 = vadd.f32 %v3193_v14, %v3164_v59  ;;  %v3203_v26 = vrot.slane %v3201_v1, 7 }
0x1b4c   :  { %v3200_v27 = vadd.f32 %v3198_v6, %v4118_v54 }
0x1b4e   :  { %v3206_v28 = vsel %vm3205_vm3, %v3200_v27, %v3203_v26 }
0x1b4f   :  { %3208 = vst.msk [vmem:[#allocation7] sm:$0x3] %vm3207_vm4, %v3206_v28 }
0x1b50   :  { %3918 = shalt.err (!%p3915_p6)
}
0x1b51   :  { %s3919_s24 = scalar_lea.hbm %s4794_s4, 32 }
0x1b52   :  { %p3920_p7 = scmp.ne.s32.totalorder %s4794_s4, %s3919_s24  ;;  %p3923_p8 = scmp.lt.u32.totalorder %s3919_s24, %s4794_s4 }
0x1b54   :  { %p3925_p9 = pnand %p3923_p8, %p3920_p7 }
0x1b56   :  { %3928 = shalt.err (!%p3925_p9)
}
0x1b57   :  { %3218 = dma.vmem_to_hbm [thread:$0]  %s3216_s20, 32, %s4794_s4, [#allocation4]  }
0x1b58   :  { %3933 = dma.done.wait [#allocation4], 32  }
0x1b59   :  { %3934 = vsyncadd [#allocation4], 4294967264 }
0x1b5a   :  { %3222 = vsyncpa [#allocation3], 1 }
0x1b5b   :  { %3223 = vsyncpa [#allocation6], 1 }
0x1b5c   :  { %3224 = vsyncpa [#allocation4], 1 }

</bundles_post_ra>
